<compile_context>
chip_gen: v5e
topology: v5e:2x2
jax: 0.10.0
libtpu: 0.0.40
codegen_flags: <defaults>
</compile_context>

<pallas_src>
import functools
import math

import jax
import jax.numpy as jnp
from jax.experimental import pallas as pl
from jax.experimental.pallas import tpu as pltpu

NEG_SLOPE = 0.2       # module default negative_slope
HP = 128              # heads padded to one full lane group (lane-dense outputs)


def _round_up(x, m):
    return ((x + m - 1) // m) * m


def _leaky_relu(x):
    return jnp.where(x > 0, x, NEG_SLOPE * x)


def _dotT(a, b):
    """a^T @ b  (contract the leading/edge axis of both operands) on the MXU."""
    return jax.lax.dot_general(a, b, (((0,), (0,)), ((), ())),
                               preferred_element_type=jnp.float32)


# --------------------------------------------------------------------------- #
# Kernel 1: node feature transform + per-node attention scores
# --------------------------------------------------------------------------- #
def _node_kernel(x_ref, w_ref, al_ref, ar_ref, h_ref, hl_ref, hr_ref):
    h = jnp.dot(x_ref[...], w_ref[...], preferred_element_type=jnp.float32)
    h = jnp.where(jnp.isnan(h), 0.0, h)                 # h[isnan(h)] = 0
    h_ref[...] = h
    hl_ref[...] = jnp.dot(h, al_ref[...], preferred_element_type=jnp.float32)
    hr_ref[...] = jnp.dot(h, ar_ref[...], preferred_element_type=jnp.float32)


# --------------------------------------------------------------------------- #
# Kernel 2: edge logits -> exp -> accumulate softmax denominator + aggregation
# --------------------------------------------------------------------------- #
def _edge_accum_kernel(sd_ref, ss_ref, hee_ref, hl_ref, hr_ref,
                       h_ref, c_ref, exp_ref, p_ref, denom_ref, out_ref):
    e_i = pl.program_id(0)

    @pl.when(e_i == 0)
    def _init():
        denom_ref[...] = jnp.zeros_like(denom_ref)
        out_ref[...] = jnp.zeros_like(out_ref)

    sd = sd_ref[...]                                     # [te, N]  one-hot dst selector
    ss = ss_ref[...]                                     # [te, N]  one-hot src selector

    # gather per-edge scores via one-hot matmuls (edge-type term pre-gathered),
    # then LeakyReLU + overflow-free shifted exp
    logit = (jnp.dot(sd, hl_ref[...], preferred_element_type=jnp.float32)
             + jnp.dot(ss, hr_ref[...], preferred_element_type=jnp.float32)
             + hee_ref[...])
    logit = _leaky_relu(logit)
    p = jnp.exp(logit - c_ref[...])                      # exact per-segment softmax after /denom
    p_ref[...] = p
    # TODO(synk): training-mode feat_drop / attn_drop(0.5) masks not emitted (inference semantics).

    # softmax denominator per destination node (segment-sum via Sd^T @ p)
    denom_ref[...] += _dotT(sd, p)

    # un-normalised multi-head SpMM:  out[dst] += p * h[src]
    gh = jnp.dot(ss, h_ref[...], preferred_element_type=jnp.float32)       # gather h[src]
    p_exp = jnp.dot(p, exp_ref[...], preferred_element_type=jnp.float32)   # per-head -> per-feature
    out_ref[...] += _dotT(sd, gh * p_exp)

    @pl.when(e_i == pl.num_programs(0) - 1)
    def _finalize():
        denom_exp = jnp.dot(denom_ref[...], exp_ref[...],
                            preferred_element_type=jnp.float32)
        out_ref[...] = jnp.where(denom_exp > 0, out_ref[...] / denom_exp, 0.0)


# --------------------------------------------------------------------------- #
# Kernel 3: normalised edge attention (returned by the module)
# --------------------------------------------------------------------------- #
def _edge_att_kernel(sd_ref, p_ref, denom_ref, att_ref):
    d = jnp.dot(sd_ref[...], denom_ref[...], preferred_element_type=jnp.float32)
    att_ref[...] = jnp.where(d > 0, p_ref[...] / d, 0.0)


# --------------------------------------------------------------------------- #
# Wrapper
# --------------------------------------------------------------------------- #
@functools.partial(jax.jit, static_argnames=("nhead", "tile_n", "tile_e"))
def mygat_conv_forward(x, edge_row, edge_col, edge_type, params, *,
                       nhead, tile_n=128, tile_e=128):
    """x: [N, in_features]. edge_row = destination idx, edge_col = source idx.

    Returns (out [N, nhead*out_features], edge_attention [E, nhead]) — eval-mode
    semantics of myGATConv with residual=False, activation=None, res_attn=None.
    """
    assert tile_n % 128 == 0 and tile_e % 128 == 0

    N, Din = x.shape
    E = edge_row.shape[0]
    HF = params["W"].shape[1]
    H = nhead
    F = HF // H
    T, Fe = params["edge_emb"].shape

    HF_pad = _round_up(HF, 128)
    N_pad = _round_up(N, tile_n)
    E_pad = _round_up(E, tile_e)

    f32 = jnp.float32

    # ---- constant parameter folding (outside the kernels) -------------------
    W_pad = jnp.zeros((Din, HF_pad), f32).at[:, :HF].set(params["W"].astype(f32))

    rows = jnp.arange(HF)
    heads_of = rows // F
    AL = jnp.zeros((HF_pad, HP), f32).at[rows, heads_of].set(params["a_l"].reshape(HF))
    AR = jnp.zeros((HF_pad, HP), f32).at[rows, heads_of].set(params["a_r"].reshape(HF))
    # head -> feature broadcast matrix (used on the MXU inside kernel 2)
    exp_mat = jnp.zeros((HP, HF_pad), f32).at[heads_of, rows].set(1.0)

    # edge-type scores are parameter-only: fold to a [T, H] constant table and
    # gather it per edge here (cheap XLA gather of a constant), lane-dense padded.
    e3 = jnp.dot(params["edge_emb"], params["W_e"]).reshape(T, H, Fe)
    he = (params["a_e"] * e3).sum(-1)                                # [T, H]
    he_edge = jnp.zeros((E_pad, HP), f32).at[:E, :H].set(he[edge_type.astype(jnp.int32)])

    # ---- pad inputs / build one-hot graph selectors --------------------------
    x_pad = jnp.zeros((N_pad, Din), f32).at[:N, :].set(x.astype(f32))

    def _pad_idx(idx, n_pad):
        pad = jnp.full((n_pad - idx.shape[0],), -1, jnp.int32)       # -1 -> all-zero one-hot row
        return jnp.concatenate([idx.astype(jnp.int32), pad])

    row_p = _pad_idx(edge_row, E_pad)
    col_p = _pad_idx(edge_col, E_pad)
    Sd = jax.nn.one_hot(row_p, N_pad, dtype=f32)                     # [E_pad, N_pad]
    Ss = jax.nn.one_hot(col_p, N_pad, dtype=f32)
    # TODO(synk): dense one-hot selectors are O(E*N); for large graphs use scalar-prefetch /
    # DMA gather and a node-tiled accumulator instead of matmul-gather/scatter.

    # ---- kernel 1: node transform -------------------------------------------
    n_tiles = N_pad // tile_n
    h_pad, hl_pad, hr_pad = pl.pallas_call(
        _node_kernel,
        out_shape=(
            jax.ShapeDtypeStruct((N_pad, HF_pad), f32),
            jax.ShapeDtypeStruct((N_pad, HP), f32),
            jax.ShapeDtypeStruct((N_pad, HP), f32),
        ),
        grid_spec=pltpu.PrefetchScalarGridSpec(
            num_scalar_prefetch=0,
            grid=(n_tiles,),
            in_specs=[
                pl.BlockSpec((tile_n, Din), lambda i: (i, 0)),
                pl.BlockSpec((Din, HF_pad), lambda i: (0, 0)),
                pl.BlockSpec((HF_pad, HP), lambda i: (0, 0)),
                pl.BlockSpec((HF_pad, HP), lambda i: (0, 0)),
            ],
            out_specs=(
                pl.BlockSpec((tile_n, HF_pad), lambda i: (i, 0)),
                pl.BlockSpec((tile_n, HP), lambda i: (i, 0)),
                pl.BlockSpec((tile_n, HP), lambda i: (i, 0)),
            ),
        ),
        compiler_params=pltpu.CompilerParams(dimension_semantics=("parallel",)),
    )(x_pad, W_pad, AL, AR)

    # per-head upper bound of the logits -> exact, overflow-free softmax shift
    he_max = jnp.zeros((HP,), f32).at[:H].set(he.max(axis=0))
    bound = hl_pad.max(axis=0) + hr_pad.max(axis=0) + he_max
    c = _leaky_relu(bound).reshape(1, HP)

    # ---- kernel 2: edge attention (unnormalised) + aggregation ---------------
    e_tiles = E_pad // tile_e
    p_pad, denom_pad, out_pad = pl.pallas_call(
        _edge_accum_kernel,
        out_shape=(
            jax.ShapeDtypeStruct((E_pad, HP), f32),
            jax.ShapeDtypeStruct((N_pad, HP), f32),
            jax.ShapeDtypeStruct((N_pad, HF_pad), f32),
        ),
        grid_spec=pltpu.PrefetchScalarGridSpec(
            num_scalar_prefetch=0,
            grid=(e_tiles,),
            in_specs=[
                pl.BlockSpec((tile_e, N_pad), lambda e: (e, 0)),    # Sd
                pl.BlockSpec((tile_e, N_pad), lambda e: (e, 0)),    # Ss
                pl.BlockSpec((tile_e, HP), lambda e: (e, 0)),       # he[tp] (pre-gathered)
                pl.BlockSpec((N_pad, HP), lambda e: (0, 0)),        # hl
                pl.BlockSpec((N_pad, HP), lambda e: (0, 0)),        # hr
                pl.BlockSpec((N_pad, HF_pad), lambda e: (0, 0)),    # h
                pl.BlockSpec((1, HP), lambda e: (0, 0)),            # softmax shift c
                pl.BlockSpec((HP, HF_pad), lambda e: (0, 0)),       # head->feature expand
            ],
            out_specs=(
                pl.BlockSpec((tile_e, HP), lambda e: (e, 0)),       # p (exp logits)
                pl.BlockSpec((N_pad, HP), lambda e: (0, 0)),        # denom (accumulator)
                pl.BlockSpec((N_pad, HF_pad), lambda e: (0, 0)),    # out   (accumulator)
            ),
        ),
        compiler_params=pltpu.CompilerParams(dimension_semantics=("arbitrary",)),
    )(Sd, Ss, he_edge, hl_pad, hr_pad, h_pad, c, exp_mat)

    # ---- kernel 3: normalised edge attention (module's second return value) --
    att_pad = pl.pallas_call(
        _edge_att_kernel,
        out_shape=jax.ShapeDtypeStruct((E_pad, HP), f32),
        grid_spec=pltpu.PrefetchScalarGridSpec(
            num_scalar_prefetch=0,
            grid=(e_tiles,),
            in_specs=[
                pl.BlockSpec((tile_e, N_pad), lambda e: (e, 0)),    # Sd
                pl.BlockSpec((tile_e, HP), lambda e: (e, 0)),       # p
                pl.BlockSpec((N_pad, HP), lambda e: (0, 0)),        # denom
            ],
            out_specs=pl.BlockSpec((tile_e, HP), lambda e: (e, 0)),
        ),
        compiler_params=pltpu.CompilerParams(dimension_semantics=("parallel",)),
    )(Sd, p_pad, denom_pad)

    # TODO(synk): residual Linear, activation, res_attn*alpha blending are disabled by the
    # module defaults (residual=False, activation=None, res_attn=None) and not emitted here.
    out = out_pad[:N, :HF]
    att = att_pad[:E, :H]
    return out, att


# --------------------------------------------------------------------------- #
# Parameter init (mirrors myGATConv.reset_parameters)
# --------------------------------------------------------------------------- #
def init_params(key, edge_feats, num_etypes, in_features, out_features, nhead):
    def reset(k, shape):
        stdv = math.sqrt(6.0 / (shape[-2] + shape[-1]))
        return jax.random.uniform(k, shape, jnp.float32, -stdv, stdv)

    ks = jax.random.split(key, 6)
    return {
        "edge_emb": reset(ks[0], (num_etypes, edge_feats)),
        "W":        reset(ks[1], (in_features, out_features * nhead)),
        "W_e":      reset(ks[2], (edge_feats, edge_feats * nhead)),
        "a_l":      reset(ks[3], (1, nhead, out_features)),
        "a_r":      reset(ks[4], (1, nhead, out_features)),
        "a_e":      reset(ks[5], (1, nhead, edge_feats)),
    }


# --------------------------------------------------------------------------- #
# Plain-JAX reference of the same eval-mode forward (sanity check)
# --------------------------------------------------------------------------- #
def _reference_forward(x, row, col, tp, p, nhead):
    N = x.shape[0]
    HF = p["W"].shape[1]
    H = nhead
    F = HF // H
    Fe = p["W_e"].shape[0]
    hi = jax.lax.Precision.HIGHEST

    h = jnp.dot(x, p["W"], precision=hi)
    h = jnp.where(jnp.isnan(h), 0.0, h).reshape(N, H, F)
    e = jnp.dot(p["edge_emb"], p["W_e"], precision=hi).reshape(-1, H, Fe)
    hl = (p["a_l"] * h).sum(-1)            # [N, H]
    hr = (p["a_r"] * h).sum(-1)
    he = (p["a_e"] * e).sum(-1)            # [T, H]

    logit = hl[row] + hr[col] + he[tp]
    logit = jnp.where(logit > 0, logit, NEG_SLOPE * logit)
    seg_max = jax.ops.segment_max(logit, row, num_segments=N)
    z = jnp.exp(logit - seg_max[row])
    denom = jax.ops.segment_sum(z, row, num_segments=N)
    att = z / denom[row]

    msg = att[:, :, None] * h[col]         # [E, H, F]
    out = jax.ops.segment_sum(msg, row, num_segments=N).reshape(N, HF)
    return out, att


if __name__ == "__main__":
    key = jax.random.PRNGKey(0)
    k_x, k_row, k_col, k_tp, k_par = jax.random.split(key, 5)

    num_nodes, in_features = 12, 64
    nhead, out_features = 4, 32
    edge_feats, num_etypes = 16, 3
    num_edges = 40

    x = jax.random.normal(k_x, (num_nodes, in_features), jnp.float32)
    row = jax.random.randint(k_row, (num_edges,), 0, num_nodes, jnp.int32)   # destination
    col = jax.random.randint(k_col, (num_edges,), 0, num_nodes, jnp.int32)   # source
    etype = jax.random.randint(k_tp, (num_edges,), 0, num_etypes, jnp.int32)
    params = init_params(k_par, edge_feats, num_etypes, in_features, out_features, nhead)

    out, att = mygat_conv_forward(x, row, col, etype, params, nhead=nhead)
    out = jax.block_until_ready(out)
    att = jax.block_until_ready(att)

    ref_out, ref_att = _reference_forward(x, row, col, etype, params, nhead)
    assert out.shape == (num_nodes, nhead * out_features)
    assert att.shape == (num_edges, nhead)
    # loose tolerance: MXU f32 matmul path may differ slightly from HIGHEST-precision reference
    assert jnp.allclose(out, ref_out, atol=2e-2, rtol=2e-2)
    assert jnp.allclose(att, ref_att, atol=2e-2, rtol=2e-2)

    print("KERNEL_OK")
</pallas_src>

<mosaic_0001>
module attributes {stable_mosaic.version = 11 : i64} {
  func.func @_node_kernel(%arg0: i32, %arg1: memref<128x64xf32, #tpu.memory_space<vmem>>, %arg2: memref<64x128xf32, #tpu.memory_space<vmem>>, %arg3: memref<128x128xf32, #tpu.memory_space<vmem>>, %arg4: memref<128x128xf32, #tpu.memory_space<vmem>>, %arg5: memref<128x128xf32, #tpu.memory_space<vmem>>, %arg6: memref<128x128xf32, #tpu.memory_space<vmem>>, %arg7: memref<128x128xf32, #tpu.memory_space<vmem>>) attributes {dimension_semantics = [#tpu.dimension_semantics<parallel>], iteration_bounds = array<i64: 1>, scalar_prefetch = 0 : i64, scratch_operands = 0 : i64, tpu.core_type = #tpu.core_type<tc>, window_params = [{transform_indices = @transform_0, window_bounds = array<i64: 128, 64>}, {pipeline_mode = #tpu.pipeline_mode<synchronous>, transform_indices = @transform_1, window_bounds = array<i64: 64, 128>}, {pipeline_mode = #tpu.pipeline_mode<synchronous>, transform_indices = @transform_2, window_bounds = array<i64: 128, 128>}, {pipeline_mode = #tpu.pipeline_mode<synchronous>, transform_indices = @transform_3, window_bounds = array<i64: 128, 128>}, {transform_indices = @transform_4, window_bounds = array<i64: 128, 128>}, {transform_indices = @transform_5, window_bounds = array<i64: 128, 128>}, {transform_indices = @transform_6, window_bounds = array<i64: 128, 128>}]} {
    %c0 = arith.constant 0 : index
    %c0_0 = arith.constant 0 : index
    %0 = vector.load %arg1[%c0, %c0_0] : memref<128x64xf32, #tpu.memory_space<vmem>>, vector<128x64xf32>
    %c0_1 = arith.constant 0 : index
    %c0_2 = arith.constant 0 : index
    %1 = vector.load %arg2[%c0_1, %c0_2] : memref<64x128xf32, #tpu.memory_space<vmem>>, vector<64x128xf32>
    %cst = arith.constant dense<0.000000e+00> : vector<128x128xf32>
    %2 = tpu.matmul %0, %1, %cst {dimension_numbers = #tpu.dot_dimension_numbers<[1], [0], [0], [1], [0, 0, 1, 1], [], []>} : vector<128x64xf32>, vector<64x128xf32>, vector<128x128xf32> -> vector<128x128xf32>
    %3 = arith.cmpf one, %2, %2 : vector<128x128xf32>
    %cst_3 = arith.constant 0.000000e+00 : f32
    %4 = vector.broadcast %cst_3 : f32 to vector<128x128xf32>
    %5 = arith.select %3, %4, %2 : vector<128x128xi1>, vector<128x128xf32>
    %c0_4 = arith.constant 0 : index
    %c0_5 = arith.constant 0 : index
    %6 = vector.load %arg5[%c0_4, %c0_5] : memref<128x128xf32, #tpu.memory_space<vmem>>, vector<128x128xf32>
    tpu.vector_store %arg5[%c0_4, %c0_5], %5 {strides = array<i32>} : memref<128x128xf32, #tpu.memory_space<vmem>>, vector<128x128xf32>,
    %c0_6 = arith.constant 0 : index
    %c0_7 = arith.constant 0 : index
    %7 = vector.load %arg3[%c0_6, %c0_7] : memref<128x128xf32, #tpu.memory_space<vmem>>, vector<128x128xf32>
    %cst_8 = arith.constant dense<0.000000e+00> : vector<128x128xf32>
    %8 = tpu.matmul %5, %7, %cst_8 {dimension_numbers = #tpu.dot_dimension_numbers<[1], [0], [0], [1], [0, 0, 1, 1], [], []>} : vector<128x128xf32>, vector<128x128xf32>, vector<128x128xf32> -> vector<128x128xf32>
    %c0_9 = arith.constant 0 : index
    %c0_10 = arith.constant 0 : index
    %9 = vector.load %arg6[%c0_9, %c0_10] : memref<128x128xf32, #tpu.memory_space<vmem>>, vector<128x128xf32>
    tpu.vector_store %arg6[%c0_9, %c0_10], %8 {strides = array<i32>} : memref<128x128xf32, #tpu.memory_space<vmem>>, vector<128x128xf32>,
    %c0_11 = arith.constant 0 : index
    %c0_12 = arith.constant 0 : index
    %10 = vector.load %arg4[%c0_11, %c0_12] : memref<128x128xf32, #tpu.memory_space<vmem>>, vector<128x128xf32>
    %cst_13 = arith.constant dense<0.000000e+00> : vector<128x128xf32>
    %11 = tpu.matmul %5, %10, %cst_13 {dimension_numbers = #tpu.dot_dimension_numbers<[1], [0], [0], [1], [0, 0, 1, 1], [], []>} : vector<128x128xf32>, vector<128x128xf32>, vector<128x128xf32> -> vector<128x128xf32>
    %c0_14 = arith.constant 0 : index
    %c0_15 = arith.constant 0 : index
    %12 = vector.load %arg7[%c0_14, %c0_15] : memref<128x128xf32, #tpu.memory_space<vmem>>, vector<128x128xf32>
    tpu.vector_store %arg7[%c0_14, %c0_15], %11 {strides = array<i32>} : memref<128x128xf32, #tpu.memory_space<vmem>>, vector<128x128xf32>,
    return
  }
  func.func @transform_0(%arg0: i32) -> (i32, i32) {
    %c0_i32 = arith.constant 0 : i32
    %c0_i32_0 = arith.constant 0 : i32
    return %arg0, %c0_i32 : i32, i32
  }
  func.func @transform_1(%arg0: i32) -> (i32, i32) {
    %c0_i32 = arith.constant 0 : i32
    %c0_i32_0 = arith.constant 0 : i32
    %c0_i32_1 = arith.constant 0 : i32
    return %c0_i32, %c0_i32_0 : i32, i32
  }
  func.func @transform_2(%arg0: i32) -> (i32, i32) {
    %c0_i32 = arith.constant 0 : i32
    %c0_i32_0 = arith.constant 0 : i32
    %c0_i32_1 = arith.constant 0 : i32
    return %c0_i32, %c0_i32_0 : i32, i32
  }
  func.func @transform_3(%arg0: i32) -> (i32, i32) {
    %c0_i32 = arith.constant 0 : i32
    %c0_i32_0 = arith.constant 0 : i32
    %c0_i32_1 = arith.constant 0 : i32
    return %c0_i32, %c0_i32_0 : i32, i32
  }
  func.func @transform_4(%arg0: i32) -> (i32, i32) {
    %c0_i32 = arith.constant 0 : i32
    %c0_i32_0 = arith.constant 0 : i32
    return %arg0, %c0_i32 : i32, i32
  }
  func.func @transform_5(%arg0: i32) -> (i32, i32) {
    %c0_i32 = arith.constant 0 : i32
    %c0_i32_0 = arith.constant 0 : i32
    return %arg0, %c0_i32 : i32, i32
  }
  func.func @transform_6(%arg0: i32) -> (i32, i32) {
    %c0_i32 = arith.constant 0 : i32
    %c0_i32_0 = arith.constant 0 : i32
    return %arg0, %c0_i32 : i32, i32
  }
}

module attributes {stable_mosaic.version = 11 : i64} {
  func.func @_edge_att_kernel(%arg0: i32, %arg1: memref<128x128xf32, #tpu.memory_space<vmem>>, %arg2: memref<128x128xf32, #tpu.memory_space<vmem>>, %arg3: memref<128x128xf32, #tpu.memory_space<vmem>>, %arg4: memref<128x128xf32, #tpu.memory_space<vmem>>) attributes {dimension_semantics = [#tpu.dimension_semantics<parallel>], iteration_bounds = array<i64: 1>, scalar_prefetch = 0 : i64, scratch_operands = 0 : i64, tpu.core_type = #tpu.core_type<tc>, window_params = [{transform_indices = @transform_0, window_bounds = array<i64: 128, 128>}, {transform_indices = @transform_1, window_bounds = array<i64: 128, 128>}, {pipeline_mode = #tpu.pipeline_mode<synchronous>, transform_indices = @transform_2, window_bounds = array<i64: 128, 128>}, {transform_indices = @transform_3, window_bounds = array<i64: 128, 128>}]} {
    %c0 = arith.constant 0 : index
    %c0_0 = arith.constant 0 : index
    %0 = vector.load %arg1[%c0, %c0_0] : memref<128x128xf32, #tpu.memory_space<vmem>>, vector<128x128xf32>
    %c0_1 = arith.constant 0 : index
    %c0_2 = arith.constant 0 : index
    %1 = vector.load %arg3[%c0_1, %c0_2] : memref<128x128xf32, #tpu.memory_space<vmem>>, vector<128x128xf32>
    %cst = arith.constant dense<0.000000e+00> : vector<128x128xf32>
    %2 = tpu.matmul %0, %1, %cst {dimension_numbers = #tpu.dot_dimension_numbers<[1], [0], [0], [1], [0, 0, 1, 1], [], []>} : vector<128x128xf32>, vector<128x128xf32>, vector<128x128xf32> -> vector<128x128xf32>
    %cst_3 = arith.constant 0.000000e+00 : f32
    %3 = vector.broadcast %cst_3 : f32 to vector<128x128xf32>
    %4 = arith.cmpf ogt, %2, %3 : vector<128x128xf32>
    %c0_4 = arith.constant 0 : index
    %c0_5 = arith.constant 0 : index
    %5 = vector.load %arg2[%c0_4, %c0_5] : memref<128x128xf32, #tpu.memory_space<vmem>>, vector<128x128xf32>
    %6 = arith.divf %5, %2 : vector<128x128xf32>
    %cst_6 = arith.constant 0.000000e+00 : f32
    %7 = vector.broadcast %cst_6 : f32 to vector<128x128xf32>
    %8 = arith.select %4, %6, %7 : vector<128x128xi1>, vector<128x128xf32>
    %c0_7 = arith.constant 0 : index
    %c0_8 = arith.constant 0 : index
    %9 = vector.load %arg4[%c0_7, %c0_8] : memref<128x128xf32, #tpu.memory_space<vmem>>, vector<128x128xf32>
    tpu.vector_store %arg4[%c0_7, %c0_8], %8 {strides = array<i32>} : memref<128x128xf32, #tpu.memory_space<vmem>>, vector<128x128xf32>,
    return
  }
  func.func @transform_0(%arg0: i32) -> (i32, i32) {
    %c0_i32 = arith.constant 0 : i32
    %c0_i32_0 = arith.constant 0 : i32
    return %arg0, %c0_i32 : i32, i32
  }
  func.func @transform_1(%arg0: i32) -> (i32, i32) {
    %c0_i32 = arith.constant 0 : i32
    %c0_i32_0 = arith.constant 0 : i32
    return %arg0, %c0_i32 : i32, i32
  }
  func.func @transform_2(%arg0: i32) -> (i32, i32) {
    %c0_i32 = arith.constant 0 : i32
    %c0_i32_0 = arith.constant 0 : i32
    %c0_i32_1 = arith.constant 0 : i32
    return %c0_i32, %c0_i32_0 : i32, i32
  }
  func.func @transform_3(%arg0: i32) -> (i32, i32) {
    %c0_i32 = arith.constant 0 : i32
    %c0_i32_0 = arith.constant 0 : i32
    return %arg0, %c0_i32 : i32, i32
  }
}

module attributes {stable_mosaic.version = 11 : i64} {
  func.func @_edge_accum_kernel(%arg0: i32, %arg1: memref<128x128xf32, #tpu.memory_space<vmem>>, %arg2: memref<128x128xf32, #tpu.memory_space<vmem>>, %arg3: memref<128x128xf32, #tpu.memory_space<vmem>>, %arg4: memref<128x128xf32, #tpu.memory_space<vmem>>, %arg5: memref<128x128xf32, #tpu.memory_space<vmem>>, %arg6: memref<128x128xf32, #tpu.memory_space<vmem>>, %arg7: memref<1x128xf32, #tpu.memory_space<vmem>>, %arg8: memref<128x128xf32, #tpu.memory_space<vmem>>, %arg9: memref<128x128xf32, #tpu.memory_space<vmem>>, %arg10: memref<128x128xf32, #tpu.memory_space<vmem>>, %arg11: memref<128x128xf32, #tpu.memory_space<vmem>>) attributes {dimension_semantics = [#tpu.dimension_semantics<arbitrary>], iteration_bounds = array<i64: 1>, scalar_prefetch = 0 : i64, scratch_operands = 0 : i64, tpu.core_type = #tpu.core_type<tc>, window_params = [{transform_indices = @transform_0, window_bounds = array<i64: 128, 128>}, {transform_indices = @transform_1, window_bounds = array<i64: 128, 128>}, {transform_indices = @transform_2, window_bounds = array<i64: 128, 128>}, {pipeline_mode = #tpu.pipeline_mode<synchronous>, transform_indices = @transform_3, window_bounds = array<i64: 128, 128>}, {pipeline_mode = #tpu.pipeline_mode<synchronous>, transform_indices = @transform_4, window_bounds = array<i64: 128, 128>}, {pipeline_mode = #tpu.pipeline_mode<synchronous>, transform_indices = @transform_5, window_bounds = array<i64: 128, 128>}, {pipeline_mode = #tpu.pipeline_mode<synchronous>, transform_indices = @transform_6, window_bounds = array<i64: 1, 128>}, {pipeline_mode = #tpu.pipeline_mode<synchronous>, transform_indices = @transform_7, window_bounds = array<i64: 128, 128>}, {transform_indices = @transform_8, window_bounds = array<i64: 128, 128>}, {pipeline_mode = #tpu.pipeline_mode<synchronous>, transform_indices = @transform_9, window_bounds = array<i64: 128, 128>}, {pipeline_mode = #tpu.pipeline_mode<synchronous>, transform_indices = @transform_10, window_bounds = array<i64: 128, 128>}]} {
    %c0_i32 = arith.constant 0 : i32
    %0 = arith.cmpi eq, %arg0, %c0_i32 : i32
    %1 = arith.extui %0 : i1 to i32
    %c0_i32_0 = arith.constant 0 : i32
    %2 = arith.cmpi ne, %1, %c0_i32_0 : i32
    scf.if %2 {
      %cst_35 = arith.constant 0.000000e+00 : f32
      %38 = vector.broadcast %cst_35 : f32 to vector<128x128xf32>
      %c0_36 = arith.constant 0 : index
      %c0_37 = arith.constant 0 : index
      %39 = vector.load %arg10[%c0_36, %c0_37] : memref<128x128xf32, #tpu.memory_space<vmem>>, vector<128x128xf32>
      tpu.vector_store %arg10[%c0_36, %c0_37], %38 {strides = array<i32>} : memref<128x128xf32, #tpu.memory_space<vmem>>, vector<128x128xf32>,
      %cst_38 = arith.constant 0.000000e+00 : f32
      %40 = vector.broadcast %cst_38 : f32 to vector<128x128xf32>
      %c0_39 = arith.constant 0 : index
      %c0_40 = arith.constant 0 : index
      %41 = vector.load %arg11[%c0_39, %c0_40] : memref<128x128xf32, #tpu.memory_space<vmem>>, vector<128x128xf32>
      tpu.vector_store %arg11[%c0_39, %c0_40], %40 {strides = array<i32>} : memref<128x128xf32, #tpu.memory_space<vmem>>, vector<128x128xf32>,
    } else {
    }
    %c0 = arith.constant 0 : index
    %c0_1 = arith.constant 0 : index
    %3 = vector.load %arg1[%c0, %c0_1] : memref<128x128xf32, #tpu.memory_space<vmem>>, vector<128x128xf32>
    %c0_2 = arith.constant 0 : index
    %c0_3 = arith.constant 0 : index
    %4 = vector.load %arg2[%c0_2, %c0_3] : memref<128x128xf32, #tpu.memory_space<vmem>>, vector<128x128xf32>
    %c0_4 = arith.constant 0 : index
    %c0_5 = arith.constant 0 : index
    %5 = vector.load %arg4[%c0_4, %c0_5] : memref<128x128xf32, #tpu.memory_space<vmem>>, vector<128x128xf32>
    %cst = arith.constant dense<0.000000e+00> : vector<128x128xf32>
    %6 = tpu.matmul %3, %5, %cst {dimension_numbers = #tpu.dot_dimension_numbers<[1], [0], [0], [1], [0, 0, 1, 1], [], []>} : vector<128x128xf32>, vector<128x128xf32>, vector<128x128xf32> -> vector<128x128xf32>
    %c0_6 = arith.constant 0 : index
    %c0_7 = arith.constant 0 : index
    %7 = vector.load %arg5[%c0_6, %c0_7] : memref<128x128xf32, #tpu.memory_space<vmem>>, vector<128x128xf32>
    %cst_8 = arith.constant dense<0.000000e+00> : vector<128x128xf32>
    %8 = tpu.matmul %4, %7, %cst_8 {dimension_numbers = #tpu.dot_dimension_numbers<[1], [0], [0], [1], [0, 0, 1, 1], [], []>} : vector<128x128xf32>, vector<128x128xf32>, vector<128x128xf32> -> vector<128x128xf32>
    %9 = arith.addf %6, %8 : vector<128x128xf32>
    %c0_9 = arith.constant 0 : index
    %c0_10 = arith.constant 0 : index
    %10 = vector.load %arg3[%c0_9, %c0_10] : memref<128x128xf32, #tpu.memory_space<vmem>>, vector<128x128xf32>
    %11 = arith.addf %9, %10 : vector<128x128xf32>
    %cst_11 = arith.constant 0.000000e+00 : f32
    %12 = vector.broadcast %cst_11 : f32 to vector<128x128xf32>
    %13 = arith.cmpf ogt, %11, %12 : vector<128x128xf32>
    %cst_12 = arith.constant 2.000000e-01 : f32
    %14 = vector.broadcast %cst_12 : f32 to vector<128x128xf32>
    %15 = arith.mulf %14, %11 : vector<128x128xf32>
    %16 = arith.select %13, %11, %15 : vector<128x128xi1>, vector<128x128xf32>
    %c0_13 = arith.constant 0 : index
    %c0_14 = arith.constant 0 : index
    %17 = vector.load %arg7[%c0_13, %c0_14] : memref<1x128xf32, #tpu.memory_space<vmem>>, vector<1x128xf32>
    %18 = vector.broadcast %17 : vector<1x128xf32> to vector<128x128xf32>
    %19 = arith.subf %16, %18 : vector<128x128xf32>
    %20 = math.exp %19 : vector<128x128xf32>
    %c0_15 = arith.constant 0 : index
    %c0_16 = arith.constant 0 : index
    %21 = vector.load %arg9[%c0_15, %c0_16] : memref<128x128xf32, #tpu.memory_space<vmem>>, vector<128x128xf32>
    tpu.vector_store %arg9[%c0_15, %c0_16], %20 {strides = array<i32>} : memref<128x128xf32, #tpu.memory_space<vmem>>, vector<128x128xf32>,
    %c0_17 = arith.constant 0 : index
    %c0_18 = arith.constant 0 : index
    %22 = vector.load %arg10[%c0_17, %c0_18] : memref<128x128xf32, #tpu.memory_space<vmem>>, vector<128x128xf32>
    %cst_19 = arith.constant dense<0.000000e+00> : vector<128x128xf32>
    %23 = tpu.matmul %3, %20, %cst_19 {dimension_numbers = #tpu.dot_dimension_numbers<[0], [0], [1], [1], [0, 1, 1, 1], [], []>} : vector<128x128xf32>, vector<128x128xf32>, vector<128x128xf32> -> vector<128x128xf32>
    %24 = arith.addf %22, %23 : vector<128x128xf32>
    %c0_20 = arith.constant 0 : index
    %c0_21 = arith.constant 0 : index
    %25 = vector.load %arg10[%c0_20, %c0_21] : memref<128x128xf32, #tpu.memory_space<vmem>>, vector<128x128xf32>
    tpu.vector_store %arg10[%c0_20, %c0_21], %24 {strides = array<i32>} : memref<128x128xf32, #tpu.memory_space<vmem>>, vector<128x128xf32>,
    %c0_22 = arith.constant 0 : index
    %c0_23 = arith.constant 0 : index
    %26 = vector.load %arg6[%c0_22, %c0_23] : memref<128x128xf32, #tpu.memory_space<vmem>>, vector<128x128xf32>
    %cst_24 = arith.constant dense<0.000000e+00> : vector<128x128xf32>
    %27 = tpu.matmul %4, %26, %cst_24 {dimension_numbers = #tpu.dot_dimension_numbers<[1], [0], [0], [1], [0, 0, 1, 1], [], []>} : vector<128x128xf32>, vector<128x128xf32>, vector<128x128xf32> -> vector<128x128xf32>
    %c0_25 = arith.constant 0 : index
    %c0_26 = arith.constant 0 : index
    %28 = vector.load %arg8[%c0_25, %c0_26] : memref<128x128xf32, #tpu.memory_space<vmem>>, vector<128x128xf32>
    %cst_27 = arith.constant dense<0.000000e+00> : vector<128x128xf32>
    %29 = tpu.matmul %20, %28, %cst_27 {dimension_numbers = #tpu.dot_dimension_numbers<[1], [0], [0], [1], [0, 0, 1, 1], [], []>} : vector<128x128xf32>, vector<128x128xf32>, vector<128x128xf32> -> vector<128x128xf32>
    %c0_28 = arith.constant 0 : index
    %c0_29 = arith.constant 0 : index
    %30 = vector.load %arg11[%c0_28, %c0_29] : memref<128x128xf32, #tpu.memory_space<vmem>>, vector<128x128xf32>
    %31 = arith.mulf %27, %29 : vector<128x128xf32>
    %cst_30 = arith.constant dense<0.000000e+00> : vector<128x128xf32>
    %32 = tpu.matmul %3, %31, %cst_30 {dimension_numbers = #tpu.dot_dimension_numbers<[0], [0], [1], [1], [0, 1, 1, 1], [], []>} : vector<128x128xf32>, vector<128x128xf32>, vector<128x128xf32> -> vector<128x128xf32>
    %33 = arith.addf %30, %32 : vector<128x128xf32>
    %c0_31 = arith.constant 0 : index
    %c0_32 = arith.constant 0 : index
    %34 = vector.load %arg11[%c0_31, %c0_32] : memref<128x128xf32, #tpu.memory_space<vmem>>, vector<128x128xf32>
    tpu.vector_store %arg11[%c0_31, %c0_32], %33 {strides = array<i32>} : memref<128x128xf32, #tpu.memory_space<vmem>>, vector<128x128xf32>,
    %c0_i32_33 = arith.constant 0 : i32
    %35 = arith.cmpi eq, %arg0, %c0_i32_33 : i32
    %36 = arith.extui %35 : i1 to i32
    %c0_i32_34 = arith.constant 0 : i32
    %37 = arith.cmpi ne, %36, %c0_i32_34 : i32
    scf.if %37 {
      %c0_35 = arith.constant 0 : index
      %c0_36 = arith.constant 0 : index
      %38 = vector.load %arg10[%c0_35, %c0_36] : memref<128x128xf32, #tpu.memory_space<vmem>>, vector<128x128xf32>
      %c0_37 = arith.constant 0 : index
      %c0_38 = arith.constant 0 : index
      %39 = vector.load %arg8[%c0_37, %c0_38] : memref<128x128xf32, #tpu.memory_space<vmem>>, vector<128x128xf32>
      %cst_39 = arith.constant dense<0.000000e+00> : vector<128x128xf32>
      %40 = tpu.matmul %38, %39, %cst_39 {dimension_numbers = #tpu.dot_dimension_numbers<[1], [0], [0], [1], [0, 0, 1, 1], [], []>} : vector<128x128xf32>, vector<128x128xf32>, vector<128x128xf32> -> vector<128x128xf32>
      %cst_40 = arith.constant 0.000000e+00 : f32
      %41 = vector.broadcast %cst_40 : f32 to vector<128x128xf32>
      %42 = arith.cmpf ogt, %40, %41 : vector<128x128xf32>
      %c0_41 = arith.constant 0 : index
      %c0_42 = arith.constant 0 : index
      %43 = vector.load %arg11[%c0_41, %c0_42] : memref<128x128xf32, #tpu.memory_space<vmem>>, vector<128x128xf32>
      %44 = arith.divf %43, %40 : vector<128x128xf32>
      %cst_43 = arith.constant 0.000000e+00 : f32
      %45 = vector.broadcast %cst_43 : f32 to vector<128x128xf32>
      %46 = arith.select %42, %44, %45 : vector<128x128xi1>, vector<128x128xf32>
      %c0_44 = arith.constant 0 : index
      %c0_45 = arith.constant 0 : index
      %47 = vector.load %arg11[%c0_44, %c0_45] : memref<128x128xf32, #tpu.memory_space<vmem>>, vector<128x128xf32>
      tpu.vector_store %arg11[%c0_44, %c0_45], %46 {strides = array<i32>} : memref<128x128xf32, #tpu.memory_space<vmem>>, vector<128x128xf32>,
    } else {
    }
    return
  }
  func.func @transform_0(%arg0: i32) -> (i32, i32) {
    %c0_i32 = arith.constant 0 : i32
    %c0_i32_0 = arith.constant 0 : i32
    return %arg0, %c0_i32 : i32, i32
  }
  func.func @transform_1(%arg0: i32) -> (i32, i32) {
    %c0_i32 = arith.constant 0 : i32
    %c0_i32_0 = arith.constant 0 : i32
    return %arg0, %c0_i32 : i32, i32
  }
  func.func @transform_2(%arg0: i32) -> (i32, i32) {
    %c0_i32 = arith.constant 0 : i32
    %c0_i32_0 = arith.constant 0 : i32
    return %arg0, %c0_i32 : i32, i32
  }
  func.func @transform_3(%arg0: i32) -> (i32, i32) {
    %c0_i32 = arith.constant 0 : i32
    %c0_i32_0 = arith.constant 0 : i32
    %c0_i32_1 = arith.constant 0 : i32
    return %c0_i32, %c0_i32_0 : i32, i32
  }
  func.func @transform_4(%arg0: i32) -> (i32, i32) {
    %c0_i32 = arith.constant 0 : i32
    %c0_i32_0 = arith.constant 0 : i32
    %c0_i32_1 = arith.constant 0 : i32
    return %c0_i32, %c0_i32_0 : i32, i32
  }
  func.func @transform_5(%arg0: i32) -> (i32, i32) {
    %c0_i32 = arith.constant 0 : i32
    %c0_i32_0 = arith.constant 0 : i32
    %c0_i32_1 = arith.constant 0 : i32
    return %c0_i32, %c0_i32_0 : i32, i32
  }
  func.func @transform_6(%arg0: i32) -> (i32, i32) {
    %c0_i32 = arith.constant 0 : i32
    %c0_i32_0 = arith.constant 0 : i32
    %c0_i32_1 = arith.constant 0 : i32
    return %c0_i32, %c0_i32_0 : i32, i32
  }
  func.func @transform_7(%arg0: i32) -> (i32, i32) {
    %c0_i32 = arith.constant 0 : i32
    %c0_i32_0 = arith.constant 0 : i32
    %c0_i32_1 = arith.constant 0 : i32
    return %c0_i32, %c0_i32_0 : i32, i32
  }
  func.func @transform_8(%arg0: i32) -> (i32, i32) {
    %c0_i32 = arith.constant 0 : i32
    %c0_i32_0 = arith.constant 0 : i32
    return %arg0, %c0_i32 : i32, i32
  }
  func.func @transform_9(%arg0: i32) -> (i32, i32) {
    %c0_i32 = arith.constant 0 : i32
    %c0_i32_0 = arith.constant 0 : i32
    %c0_i32_1 = arith.constant 0 : i32
    return %c0_i32, %c0_i32_0 : i32, i32
  }
  func.func @transform_10(%arg0: i32) -> (i32, i32) {
    %c0_i32 = arith.constant 0 : i32
    %c0_i32_0 = arith.constant 0 : i32
    %c0_i32_1 = arith.constant 0 : i32
    return %c0_i32, %c0_i32_0 : i32, i32
  }
}

</mosaic_0001>

<bundles_post_ra>
// kernel: mygat_conv_forward.5
= control target key start
LH: loop header
LB: loop body
LE: loop exit
PB: predicated region body
PF: predicated region fallthrough
CT: control target
= control target key end

     0   :  { %s924_s2 = inlined_call_operand.vmem [shape: f32[128,128], index: 2, kind: input, shape index: {}]   ;;  %s925_s0 = inlined_call_operand.vmem [shape: f32[128,128], index: 0, kind: input, shape index: {}]   ;;  %s926_s1 = inlined_call_operand.vmem [shape: f32[128,128], index: 1, kind: input, shape index: {}]   ;;  %s927_s3 = inlined_call_operand.vmem [shape: f32[128,128], index: 3, kind: output, shape index: {}]  }
   0x1   :  { %v45_v0 = vld [vmem:[%s924_s2 + $0x78] sm:$0xff]  ;;  %v44_v1 = vld [vmem:[%s924_s2 + $0x70] sm:$0xff]  ;;  %v43_v2 = vld [vmem:[%s924_s2 + $0x68] sm:$0xff] }
   0x2   :  { %46 = vmatpush.msra.mxu0 %v45_v0  ;;  %419 = vmatpush.msra.mxu1 %v45_v0  ;;  %v42_v3 = vld [vmem:[%s924_s2 + $0x60] sm:$0xff]  ;;  %v41_v4 = vld [vmem:[%s924_s2 + $0x58] sm:$0xff]  ;;  %v40_v5 = vld [vmem:[%s924_s2 + $0x50] sm:$0xff] }
   0x3   :  { %420 = vmatpush.msra.mxu2 %v45_v0  ;;  %421 = vmatpush.msra.mxu3 %v45_v0  ;;  %v39_v6 = vld [vmem:[%s924_s2 + $0x48] sm:$0xff]  ;;  %v38_v7 = vld [vmem:[%s924_s2 + $0x40] sm:$0xff]  ;;  %v37_v8 = vld [vmem:[%s924_s2 + $0x38] sm:$0xff] }
   0x4   :  { %47 = vmatpush.msra.mxu0 %v44_v1  ;;  %422 = vmatpush.msra.mxu1 %v44_v1  ;;  %v36_v9 = vld [vmem:[%s924_s2 + $0x30] sm:$0xff]  ;;  %v35_v10 = vld [vmem:[%s924_s2 + $0x28] sm:$0xff]  ;;  %v34_v11 = vld [vmem:[%s924_s2 + $0x20] sm:$0xff] }
   0x5   :  { %423 = vmatpush.msra.mxu2 %v44_v1  ;;  %424 = vmatpush.msra.mxu3 %v44_v1  ;;  %v33_v12 = vld [vmem:[%s924_s2 + $0x18] sm:$0xff]  ;;  %v32_v13 = vld [vmem:[%s924_s2 + $0x10] sm:$0xff]  ;;  %v31_v14 = vld [vmem:[%s924_s2 + $0x8] sm:$0xff] }
   0x6   :  { %48 = vmatpush.msra.mxu0 %v43_v2  ;;  %425 = vmatpush.msra.mxu1 %v43_v2  ;;  %v30_v15 = vld [vmem:[%s924_s2] sm:$0xff]  ;;  %v15_v20 = vld [vmem:[%s925_s0 + $0x8] sm:$0xff]  ;;  %v16_v24 = vld [vmem:[%s925_s0 + $0x10] sm:$0xff] }
   0x7   :  { %426 = vmatpush.msra.mxu2 %v43_v2  ;;  %427 = vmatpush.msra.mxu3 %v43_v2  ;;  %v14_v16 = vld [vmem:[%s925_s0] sm:$0xff]  ;;  %v19_v21 = vld [vmem:[%s925_s0 + $0x28] sm:$0xff]  ;;  %v20_v25 = vld [vmem:[%s925_s0 + $0x30] sm:$0xff] }
   0x8   :  { %49 = vmatpush.msra.mxu0 %v42_v3  ;;  %428 = vmatpush.msra.mxu1 %v42_v3  ;;  %v18_v17 = vld [vmem:[%s925_s0 + $0x20] sm:$0xff]  ;;  %v23_v22 = vld [vmem:[%s925_s0 + $0x48] sm:$0xff]  ;;  %v24_v26 = vld [vmem:[%s925_s0 + $0x50] sm:$0xff] }
   0x9   :  { %429 = vmatpush.msra.mxu2 %v42_v3  ;;  %430 = vmatpush.msra.mxu3 %v42_v3  ;;  %v22_v18 = vld [vmem:[%s925_s0 + $0x40] sm:$0xff]  ;;  %v27_v23 = vld [vmem:[%s925_s0 + $0x68] sm:$0xff]  ;;  %v28_v27 = vld [vmem:[%s925_s0 + $0x70] sm:$0xff] }
   0xa   :  { %50 = vmatpush.msra.mxu0 %v41_v4  ;;  %431 = vmatpush.msra.mxu1 %v41_v4  ;;  %v26_v19 = vld [vmem:[%s925_s0 + $0x60] sm:$0xff]  ;;  %v17_v28 = vld [vmem:[%s925_s0 + $0x18] sm:$0xff] }
   0xb   :  { %432 = vmatpush.msra.mxu2 %v41_v4  ;;  %433 = vmatpush.msra.mxu3 %v41_v4  ;;  %v21_v29 = vld [vmem:[%s925_s0 + $0x38] sm:$0xff]  ;;  %v127_v58 = vld [vmem:[%s926_s1] sm:$0xff] }
   0xc   :  { %51 = vmatpush.msra.mxu0 %v40_v5  ;;  %434 = vmatpush.msra.mxu1 %v40_v5  ;;  %v25_v30 = vld [vmem:[%s925_s0 + $0x58] sm:$0xff]  ;;  %v131_v0 = vld [vmem:[%s926_s1 + $0x20] sm:$0xff] }
   0xd   :  { %435 = vmatpush.msra.mxu2 %v40_v5  ;;  %436 = vmatpush.msra.mxu3 %v40_v5  ;;  %v29_v31 = vld [vmem:[%s925_s0 + $0x78] sm:$0xff] }
   0xe   :  { %52 = vmatpush.msra.mxu0 %v39_v6  ;;  %437 = vmatpush.msra.mxu1 %v39_v6 }
   0xf   :  { %438 = vmatpush.msra.mxu2 %v39_v6  ;;  %439 = vmatpush.msra.mxu3 %v39_v6 }
  0x10   :  { %53 = vmatpush.msra.mxu0 %v38_v7  ;;  %440 = vmatpush.msra.mxu1 %v38_v7 }
  0x11   :  { %441 = vmatpush.msra.mxu2 %v38_v7  ;;  %442 = vmatpush.msra.mxu3 %v38_v7 }
  0x12   :  { %54 = vmatpush.msra.mxu0 %v37_v8  ;;  %443 = vmatpush.msra.mxu1 %v37_v8 }
  0x13   :  { %444 = vmatpush.msra.mxu2 %v37_v8  ;;  %445 = vmatpush.msra.mxu3 %v37_v8 }
  0x14   :  { %55 = vmatpush.msra.mxu0 %v36_v9  ;;  %446 = vmatpush.msra.mxu1 %v36_v9 }
  0x15   :  { %447 = vmatpush.msra.mxu2 %v36_v9  ;;  %448 = vmatpush.msra.mxu3 %v36_v9 }
  0x16   :  { %56 = vmatpush.msra.mxu0 %v35_v10  ;;  %449 = vmatpush.msra.mxu1 %v35_v10 }
  0x17   :  { %450 = vmatpush.msra.mxu2 %v35_v10  ;;  %451 = vmatpush.msra.mxu3 %v35_v10 }
  0x18   :  { %57 = vmatpush.msra.mxu0 %v34_v11  ;;  %452 = vmatpush.msra.mxu1 %v34_v11 }
  0x19   :  { %453 = vmatpush.msra.mxu2 %v34_v11  ;;  %454 = vmatpush.msra.mxu3 %v34_v11 }
  0x1a   :  { %58 = vmatpush.msra.mxu0 %v33_v12  ;;  %455 = vmatpush.msra.mxu1 %v33_v12 }
  0x1b   :  { %456 = vmatpush.msra.mxu2 %v33_v12  ;;  %457 = vmatpush.msra.mxu3 %v33_v12 }
  0x1c   :  { %59 = vmatpush.msra.mxu0 %v32_v13  ;;  %458 = vmatpush.msra.mxu1 %v32_v13 }
  0x1d   :  { %459 = vmatpush.msra.mxu2 %v32_v13  ;;  %460 = vmatpush.msra.mxu3 %v32_v13 }
  0x1e   :  { %60 = vmatpush.msra.mxu0 %v31_v14  ;;  %461 = vmatpush.msra.mxu1 %v31_v14 }
  0x1f   :  { %462 = vmatpush.msra.mxu2 %v31_v14  ;;  %463 = vmatpush.msra.mxu3 %v31_v14 }
  0x20   :  { %61 = vmatpush.msra.mxu0 %v30_v15  ;;  %464 = vmatpush.msra.mxu1 %v30_v15 }
  0x21   :  { %465 = vmatpush.msra.mxu2 %v30_v15  ;;  %466 = vmatpush.msra.mxu3 %v30_v15 }
  0x22   :  { %62 = vmatmul.f32.vlgmr.msra.gmra.mxu0 %v14_v16  ;;  %74 = vmatmul.f32.vlgmr.msra.gmra.mxu1 %v18_v17 }
  0x23   :  { %86 = vmatmul.f32.vlgmr.msra.gmra.mxu2 %v22_v18  ;;  %98 = vmatmul.f32.vlgmr.msra.gmra.mxu3 %v26_v19 }
  0x2a   :  { %65 = vmatmul.f32.gmra.mxu0 %v15_v20  ;;  %77 = vmatmul.f32.gmra.mxu1 %v19_v21 }
  0x2b   :  { %89 = vmatmul.f32.gmra.mxu2 %v23_v22  ;;  %101 = vmatmul.f32.gmra.mxu3 %v27_v23  ;;  %v135_v23 = vld [vmem:[%s926_s1 + $0x40] sm:$0xff] }
  0x32   :  { %68 = vmatmul.f32.gmra.mxu0 %v16_v24  ;;  %80 = vmatmul.f32.gmra.mxu1 %v20_v25 }
  0x33   :  { %92 = vmatmul.f32.gmra.mxu2 %v24_v26  ;;  %104 = vmatmul.f32.gmra.mxu3 %v28_v27 }
  0x3a   :  { %71 = vmatmul.f32.gmra.mxu0 %v17_v28  ;;  %83 = vmatmul.f32.gmra.mxu1 %v21_v29 }
  0x3b   :  { %95 = vmatmul.f32.gmra.mxu2 %v25_v30  ;;  %107 = vmatmul.f32.gmra.mxu3 %v29_v31  ;;  %v139_v31 = vld [vmem:[%s926_s1 + $0x60] sm:$0xff] }
  0x9f   :  { %v615_v32 = vpop.f32.mrf.mxu0  ;;  %v617_v33 = vpop.f32.mrf.mxu1 }
  0xa0   :  { %467 = vrcp.f32 %v615_v32  ;;  %v152_v39 = vand.u32 2147483647, %v615_v32  ;;  %v154_v40 = vand.u32 2147483648, %v615_v32  ;;  %v212_v43 = vand.u32 2147483647, %v617_v33 }
  0xa1   :  { %469 = vrcp.f32 %v617_v33  ;;  %v214_v44 = vand.u32 2147483648, %v617_v33  ;;  %vm111_vm0 = vcmp.gt.f32.partialorder %v615_v32, 0.0  ;;  %vm148_vm1 = vweird.f32 %v615_v32 }
  0xa2   :  { %vm638_vm3 = vcmp.eq.f32.partialorder %v152_v39, 8.507059e+37  ;;  %vm115_vm4 = vcmp.gt.f32.partialorder %v617_v33, 0.0  ;;  %vm208_vm5 = vweird.f32 %v617_v33  ;;  %v155_v50 = vor.u32 1.1754944e-38, %v154_v40 }
  0xa3   :  { %vm647_vm7 = vcmp.eq.f32.partialorder %v212_v43, 8.507059e+37  ;;  %v215_v56 = vor.u32 1.1754944e-38, %v214_v44 }
  0xa6   :  { %v468_v34 = vpop.eup %467  ;;  %v621_v35 = vpop.f32.mrf.mxu2 }
  0xa7   :  { %v623_v36 = vpop.f32.mrf.mxu3  ;;  %v470_v37 = vpop.eup %469  ;;  %v144_v38 = vmul.f32 %v468_v34, %v615_v32  ;;  %471 = vrcp.f32 %v621_v35  ;;  %v272_v47 = vand.u32 2147483647, %v621_v35  ;;  %vm149_vm2 = vweird.f32 %v468_v34 }
  0xa8   :  { %v204_v41 = vmul.f32 %v470_v37, %v617_v33  ;;  %473 = vrcp.f32 %v623_v36  ;;  %v633_v45 = vpop.f32.mrf.mxu0  ;;  %vm209_vm6 = vweird.f32 %v470_v37  ;;  %v645_v52 = vpop.f32.mrf.mxu1  ;;  %v274_v57 = vand.u32 2147483648, %v621_v35  ;;  %vm150_vm8 = vmor %vm148_vm1, %vm149_vm2 }
  0xa9   :  { %v145_v42 = vsub.f32 1.0, %v144_v38  ;;  %475 = vrcp.f32 %v633_v45  ;;  %vm268_vm9 = vweird.f32 %v621_v35  ;;  %vm660_vm10 = vcmp.eq.f32.partialorder %v272_v47, 8.507059e+37  ;;  %vm210_vm11 = vmor %vm208_vm5, %vm209_vm6  ;;  %v128_v47 = vld [vmem:[%s926_s1 + $0x8] sm:$0xff] }
  0xaa   :  { %v205_v46 = vsub.f32 1.0, %v204_v41  ;;  %vm328_vm12 = vweird.f32 %v623_v36  ;;  %v332_v1 = vand.u32 2147483647, %v623_v36  ;;  %477 = vrcp.f32 %v645_v52 }
  0xab   :  { %v146_v48 = vmul.f32 %v468_v34, %v145_v42  ;;  %vm119_vm13 = vcmp.gt.f32.partialorder %v621_v35, 0.0  ;;  %v275_v8 = vor.u32 1.1754944e-38, %v274_v57  ;;  %v334_v9 = vand.u32 2147483648, %v623_v36 }
  0xac   :  { %v206_v51 = vmul.f32 %v470_v37, %v205_v46  ;;  %vm684_vm15 = vcmp.eq.f32.partialorder %v332_v1, 8.507059e+37  ;;  %v169_v18 = vand.u32 2147483648, %v633_v45  ;;  %vm163_vm2 = vweird.f32 %v633_v45 }
  0xad   :  { %v472_v53 = vpop.eup %471  ;;  %v147_v54 = vadd.f32 %v468_v34, %v146_v48  ;;  %v335_v24 = vor.u32 1.1754944e-38, %v334_v9  ;;  %v167_v28 = vand.u32 2147483647, %v633_v45  ;;  %vm223_vm5 = vweird.f32 %v645_v52 }
  0xae   :  { %v207_v59 = vadd.f32 %v470_v37, %v206_v51  ;;  %v264_v60 = vmul.f32 %v472_v53, %v621_v35  ;;  %v474_v62 = vpop.eup %473  ;;  %vm269_vm14 = vweird.f32 %v472_v53  ;;  %v680_v14 = vpop.f32.mrf.mxu2  ;;  %v170_v33 = vor.u32 1.1754944e-38, %v169_v18 }
  0xaf   :  { %v151_v63 = vsel %vm150_vm8, %v468_v34, %v147_v54  ;;  %v324_v5 = vmul.f32 %v474_v62, %v623_v36  ;;  %v476_v10 = vpop.eup %475  ;;  %vm329_vm1 = vweird.f32 %v474_v62  ;;  %479 = vrcp.f32 %v680_v14  ;;  %v717_v39 = vpop.f32.mrf.mxu3 }
  0xb0   :  { %v156_v2 = vsel %vm638_vm3, %v155_v50, %v151_v63  ;;  %v211_v3 = vsel %vm210_vm11, %v470_v37, %v207_v59  ;;  %v265_v4 = vsub.f32 1.0, %v264_v60  ;;  %v159_v17 = vmul.f32 %v476_v10, %v633_v45  ;;  %v478_v22 = vpop.eup %477  ;;  %vm330_vm3 = vmor %vm328_vm12, %vm329_vm1  ;;  %v735_v35 = vpop.f32.mrf.mxu0 }
  0xb1   :  { %v157_v6 = vmul.f32 %v156_v2, %v127_v58  ;;  %v216_v7 = vsel %vm647_vm7, %v215_v56, %v211_v3  ;;  %v325_v13 = vsub.f32 1.0, %v324_v5  ;;  %v219_v29 = vmul.f32 %v478_v22, %v645_v52  ;;  %v749_v60 = vpop.f32.mrf.mxu1 }
  0xb2   :  { %v217_v11 = vmul.f32 %v216_v7, %v131_v0  ;;  %v266_v12 = vmul.f32 %v472_v53, %v265_v4  ;;  %v160_v25 = vsub.f32 1.0, %v159_v17  ;;  %v227_v42 = vand.u32 2147483647, %v645_v52 }
  0xb3   :  { %v383_v15 = vsel %vm111_vm0, %v157_v6, 0.0  ;;  %v326_v21 = vmul.f32 %v474_v62, %v325_v13  ;;  %vm270_vm0 = vmor %vm268_vm9, %vm269_vm14  ;;  %v220_v38 = vsub.f32 1.0, %v219_v29  ;;  %v229_v43 = vand.u32 2147483648, %v645_v52  ;;  %v140_v29 = vld [vmem:[%s926_s1 + $0x68] sm:$0xff] }
  0xb4   :  { %399 = vst [vmem:[%s927_s3] sm:$0xff] %v383_v15  ;;  %v387_v19 = vsel %vm115_vm4, %v217_v11, 0.0  ;;  %v267_v20 = vadd.f32 %v472_v53, %v266_v12  ;;  %v161_v32 = vmul.f32 %v476_v10, %v160_v25  ;;  %vm164_vm4 = vweird.f32 %v476_v10 }
  0xb5   :  { %403 = vst [vmem:[%s927_s3 + $0x20] sm:$0xff] %v387_v19  ;;  %v327_v27 = vadd.f32 %v474_v62, %v326_v21  ;;  %vm165_vm6 = vmor %vm163_vm2, %vm164_vm4  ;;  %v221_v48 = vmul.f32 %v478_v22, %v220_v38  ;;  %vm224_vm7 = vweird.f32 %v478_v22  ;;  %v480_v49 = vpop.eup %479  ;;  %vm123_vm8 = vcmp.gt.f32.partialorder %v623_v36, 0.0  ;;  %v132_v36 = vld [vmem:[%s926_s1 + $0x28] sm:$0xff] }
  0xb6   :  { %v271_v26 = vsel %vm270_vm0, %v472_v53, %v267_v20  ;;  %v162_v41 = vadd.f32 %v476_v10, %v161_v32  ;;  %vm168_vm9 = vcmp.eq.f32.partialorder %v167_v28, 8.507059e+37  ;;  %481 = vrcp.f32 %v717_v39  ;;  %vm225_vm11 = vmor %vm223_vm5, %vm224_vm7  ;;  %v759_v4 = vpop.f32.mrf.mxu2 }
  0xb7   :  { %v276_v30 = vsel %vm660_vm10, %v275_v8, %v271_v26  ;;  %v331_v37 = vsel %vm330_vm3, %v474_v62, %v327_v27  ;;  %v222_v54 = vadd.f32 %v478_v22, %v221_v48  ;;  %v279_v55 = vmul.f32 %v480_v49, %v680_v14  ;;  %v773_v13 = vpop.f32.mrf.mxu3 }
  0xb8   :  { %v277_v34 = vmul.f32 %v276_v30, %v135_v23  ;;  %v336_v40 = vsel %vm684_vm15, %v335_v24, %v331_v37  ;;  %v166_v50 = vsel %vm165_vm6, %v476_v10, %v162_v41  ;;  %vm112_vm10 = vcmp.gt.f32.partialorder %v633_v45, 0.0  ;;  %v804_v38 = vpop.f32.mrf.mxu0 }
  0xb9   :  { %v337_v46 = vmul.f32 %v336_v40, %v139_v31  ;;  %v171_v53 = vsel %vm168_vm9, %v170_v33, %v166_v50  ;;  %v230_v57 = vor.u32 1.1754944e-38, %v229_v43  ;;  %v226_v58 = vsel %vm225_vm11, %v478_v22, %v222_v54 }
  0xba   :  { %v391_v44 = vsel %vm119_vm13, %v277_v34, 0.0  ;;  %v172_v56 = vmul.f32 %v171_v53, %v128_v47  ;;  %vm228_vm12 = vcmp.eq.f32.partialorder %v227_v42, 8.507059e+37  ;;  %v280_v59 = vsub.f32 1.0, %v279_v55 }
  0xbb   :  { %407 = vst [vmem:[%s927_s3 + $0x40] sm:$0xff] %v391_v44  ;;  %v395_v51 = vsel %vm123_vm8, %v337_v46, 0.0  ;;  %483 = vrcp.f32 %v735_v35  ;;  %v231_v62 = vsel %vm228_vm12, %v230_v57, %v226_v58  ;;  %v287_v45 = vand.u32 2147483647, %v680_v14  ;;  %v129_v46 = vld [vmem:[%s926_s1 + $0x10] sm:$0xff] }
  0xbc   :  { %411 = vst [vmem:[%s927_s3 + $0x60] sm:$0xff] %v395_v51  ;;  %v384_v61 = vsel %vm112_vm10, %v172_v56, 0.0  ;;  %v289_v63 = vand.u32 2147483648, %v680_v14  ;;  %v232_v0 = vmul.f32 %v231_v62, %v132_v36  ;;  %v281_v1 = vmul.f32 %v480_v49, %v280_v59  ;;  %v482_v2 = vpop.eup %481  ;;  %v133_v58 = vld [vmem:[%s926_s1 + $0x30] sm:$0xff] }
  0xbd   :  { %400 = vst [vmem:[%s927_s3 + $0x8] sm:$0xff] %v384_v61  ;;  %vm284_vm13 = vweird.f32 %v480_v49  ;;  %vm116_vm14 = vcmp.gt.f32.partialorder %v645_v52, 0.0  ;;  %v347_v3 = vand.u32 2147483647, %v717_v39  ;;  %485 = vrcp.f32 %v749_v60  ;;  %v136_v52 = vld [vmem:[%s926_s1 + $0x48] sm:$0xff] }
  0xbe   :  { %v388_v5 = vsel %vm116_vm14, %v232_v0, 0.0  ;;  %v282_v6 = vadd.f32 %v480_v49, %v281_v1  ;;  %vm283_vm15 = vweird.f32 %v680_v14  ;;  %v339_v7 = vmul.f32 %v482_v2, %v717_v39 }
  0xbf   :  { %404 = vst [vmem:[%s927_s3 + $0x28] sm:$0xff] %v388_v5  ;;  %vm120_vm1 = vcmp.gt.f32.partialorder %v680_v14, 0.0  ;;  %vm285_vm0 = vmor %vm283_vm15, %vm284_vm13  ;;  %vm288_vm2 = vcmp.eq.f32.partialorder %v287_v45, 8.507059e+37  ;;  %v290_v8 = vor.u32 1.1754944e-38, %v289_v63  ;;  %v349_v9 = vand.u32 2147483648, %v717_v39  ;;  %v837_v63 = vpop.f32.mrf.mxu1 }
  0xc0   :  { %v286_v11 = vsel %vm285_vm0, %v480_v49, %v282_v6  ;;  %v340_v12 = vsub.f32 1.0, %v339_v7  ;;  %vm343_vm3 = vweird.f32 %v717_v39  ;;  %487 = vrcp.f32 %v759_v4  ;;  %v137_v6 = vld [vmem:[%s926_s1 + $0x50] sm:$0xff] }
  0xc1   :  { %v484_v10 = vpop.eup %483  ;;  %v291_v15 = vsel %vm288_vm2, %v290_v8, %v286_v11  ;;  %vm124_vm4 = vcmp.gt.f32.partialorder %v717_v39, 0.0  ;;  %vm776_vm5 = vcmp.eq.f32.partialorder %v347_v3, 8.507059e+37  ;;  %v182_v18 = vand.u32 2147483647, %v735_v35 }
  0xc2   :  { %v174_v17 = vmul.f32 %v484_v10, %v735_v35  ;;  %v292_v19 = vmul.f32 %v291_v15, %v136_v52  ;;  %v341_v20 = vmul.f32 %v482_v2, %v340_v12  ;;  %vm344_vm6 = vweird.f32 %v482_v2 }
  0xc3   :  { %v184_v21 = vand.u32 2147483648, %v735_v35  ;;  %v486_v22 = vpop.eup %485  ;;  %v350_v23 = vor.u32 1.1754944e-38, %v349_v9  ;;  %v242_v25 = vand.u32 2147483647, %v749_v60  ;;  %489 = vrcp.f32 %v773_v13  ;;  %vm345_vm9 = vmor %vm343_vm3, %vm344_vm6  ;;  %v853_v9 = vpop.f32.mrf.mxu2 }
  0xc4   :  { %v175_v24 = vsub.f32 1.0, %v174_v17  ;;  %v392_v26 = vsel %vm120_vm1, %v292_v19, 0.0  ;;  %v342_v27 = vadd.f32 %v482_v2, %v341_v20  ;;  %vm113_vm7 = vcmp.gt.f32.partialorder %v735_v35, 0.0  ;;  %v141_v17 = vld [vmem:[%s926_s1 + $0x70] sm:$0xff]  ;;  %v867_v20 = vpop.f32.mrf.mxu3 }
  0xc5   :  { %vm178_vm8 = vweird.f32 %v735_v35  ;;  %v234_v28 = vmul.f32 %v486_v22, %v749_v60  ;;  %408 = vst [vmem:[%s927_s3 + $0x48] sm:$0xff] %v392_v26  ;;  %vm179_vm10 = vweird.f32 %v484_v10  ;;  %vm238_vm11 = vweird.f32 %v749_v60 }
  0xc6   :  { %v176_v14 = vmul.f32 %v484_v10, %v175_v24  ;;  %v244_v30 = vand.u32 2147483648, %v749_v60  ;;  %v488_v31 = vpop.eup %487  ;;  %v346_v32 = vsel %vm345_vm9, %v482_v2, %v342_v27  ;;  %vm800_vm12 = vcmp.eq.f32.partialorder %v182_v18, 8.507059e+37  ;;  %vm180_vm15 = vmor %vm178_vm8, %vm179_vm10 }
  0xc7   :  { %v185_v34 = vor.u32 1.1754944e-38, %v184_v21  ;;  %v235_v37 = vsub.f32 1.0, %v234_v28  ;;  %v351_v40 = vsel %vm776_vm5, %v350_v23, %v346_v32  ;;  %vm117_vm13 = vcmp.gt.f32.partialorder %v749_v60, 0.0 }
  0xc8   :  { %v177_v41 = vadd.f32 %v484_v10, %v176_v14  ;;  %vm809_vm14 = vcmp.eq.f32.partialorder %v242_v25, 8.507059e+37  ;;  %v294_v43 = vmul.f32 %v488_v31, %v759_v4  ;;  %v352_v44 = vmul.f32 %v351_v40, %v140_v29  ;;  %v130_v14 = vld [vmem:[%s926_s1 + $0x18] sm:$0xff] }
  0xc9   :  { %v236_v47 = vmul.f32 %v486_v22, %v235_v37  ;;  %vm239_vm1 = vweird.f32 %v486_v22  ;;  %v304_v48 = vand.u32 2147483648, %v759_v4  ;;  %v490_v49 = vpop.eup %489  ;;  %v245_v51 = vor.u32 1.1754944e-38, %v244_v30 }
  0xca   :  { %v181_v50 = vsel %vm180_vm15, %v484_v10, %v177_v41  ;;  %v295_v53 = vsub.f32 1.0, %v294_v43  ;;  %491 = vrcp.f32 %v804_v38  ;;  %v396_v54 = vsel %vm124_vm4, %v352_v44, 0.0  ;;  %vm240_vm0 = vmor %vm238_vm11, %vm239_vm1 }
  0xcb   :  { %v186_v55 = vsel %vm800_vm12, %v185_v34, %v181_v50  ;;  %v237_v56 = vadd.f32 %v486_v22, %v236_v47  ;;  %v354_v36 = vmul.f32 %v490_v49, %v773_v13  ;;  %412 = vst [vmem:[%s927_s3 + $0x68] sm:$0xff] %v396_v54  ;;  %vm299_vm2 = vweird.f32 %v488_v31  ;;  %v134_v50 = vld [vmem:[%s926_s1 + $0x38] sm:$0xff] }
  0xcc   :  { %v187_v57 = vmul.f32 %v186_v55, %v129_v46  ;;  %v296_v39 = vmul.f32 %v488_v31, %v295_v53  ;;  %v302_v59 = vand.u32 2147483647, %v759_v4  ;;  %vm298_vm3 = vweird.f32 %v759_v4 }
  0xcd   :  { %v241_v61 = vsel %vm240_vm0, %v486_v22, %v237_v56  ;;  %v305_v62 = vor.u32 1.1754944e-38, %v304_v48  ;;  %v355_v45 = vsub.f32 1.0, %v354_v36  ;;  %v364_v3 = vand.u32 2147483648, %v773_v13  ;;  %vm300_vm4 = vmor %vm298_vm3, %vm299_vm2 }
  0xce   :  { %v385_v0 = vsel %vm113_vm7, %v187_v57, 0.0  ;;  %v246_v1 = vsel %vm809_vm14, %v245_v51, %v241_v61  ;;  %v297_v2 = vadd.f32 %v488_v31, %v296_v39  ;;  %vm359_vm5 = vweird.f32 %v490_v49 }
  0xcf   :  { %401 = vst [vmem:[%s927_s3 + $0x10] sm:$0xff] %v385_v0  ;;  %v247_v5 = vmul.f32 %v246_v1, %v133_v58  ;;  %v356_v7 = vmul.f32 %v490_v49, %v355_v45  ;;  %v362_v35 = vand.u32 2147483647, %v773_v13  ;;  %vm303_vm6 = vcmp.eq.f32.partialorder %v302_v59, 8.507059e+37  ;;  %v138_v59 = vld [vmem:[%s926_s1 + $0x58] sm:$0xff] }
  0xd0   :  { %v492_v52 = vpop.eup %491  ;;  %v301_v8 = vsel %vm300_vm4, %v488_v31, %v297_v2  ;;  %vm358_vm7 = vweird.f32 %v773_v13  ;;  %493 = vrcp.f32 %v837_v63  ;;  %vm121_vm8 = vcmp.gt.f32.partialorder %v759_v4, 0.0 }
  0xd1   :  { %v389_v10 = vsel %vm117_vm13, %v247_v5, 0.0  ;;  %v306_v11 = vsel %vm303_vm6, %v305_v62, %v301_v8  ;;  %v357_v12 = vadd.f32 %v490_v49, %v356_v7  ;;  %v189_v15 = vmul.f32 %v492_v52, %v804_v38  ;;  %vm360_vm9 = vmor %vm358_vm7, %vm359_vm5  ;;  %v142_v5 = vld [vmem:[%s926_s1 + $0x78] sm:$0xff] }
  0xd2   :  { %405 = vst [vmem:[%s927_s3 + $0x30] sm:$0xff] %v389_v10  ;;  %v307_v16 = vmul.f32 %v306_v11, %v137_v6  ;;  %v365_v18 = vor.u32 1.1754944e-38, %v364_v3  ;;  %vm363_vm10 = vcmp.eq.f32.partialorder %v362_v35, 8.507059e+37  ;;  %495 = vrcp.f32 %v853_v9 }
  0xd3   :  { %v361_v60 = vsel %vm360_vm9, %v490_v49, %v357_v12  ;;  %v190_v19 = vsub.f32 1.0, %v189_v15  ;;  %vm193_vm11 = vweird.f32 %v804_v38  ;;  %v199_v4 = vand.u32 2147483648, %v804_v38 }
  0xd4   :  { %v393_v21 = vsel %vm121_vm8, %v307_v16, 0.0  ;;  %v366_v22 = vsel %vm363_vm10, %v365_v18, %v361_v60  ;;  %vm194_vm12 = vweird.f32 %v492_v52  ;;  %v197_v25 = vand.u32 2147483647, %v804_v38 }
  0xd5   :  { %409 = vst [vmem:[%s927_s3 + $0x50] sm:$0xff] %v393_v21  ;;  %v367_v23 = vmul.f32 %v366_v22, %v141_v17  ;;  %v191_v24 = vmul.f32 %v492_v52, %v190_v19  ;;  %vm125_vm13 = vcmp.gt.f32.partialorder %v773_v13, 0.0  ;;  %497 = vrcp.f32 %v867_v20  ;;  %vm195_vm14 = vmor %vm193_vm11, %vm194_vm12 }
  0xd6   :  { %v494_v26 = vpop.eup %493  ;;  %v200_v30 = vor.u32 1.1754944e-38, %v199_v4  ;;  %vm198_vm15 = vcmp.eq.f32.partialorder %v197_v25, 8.507059e+37  ;;  %vm253_vm1 = vweird.f32 %v837_v63  ;;  %v259_v34 = vand.u32 2147483648, %v837_v63 }
  0xd7   :  { %v397_v27 = vsel %vm125_vm13, %v367_v23, 0.0  ;;  %v192_v28 = vadd.f32 %v492_v52, %v191_v24  ;;  %v249_v29 = vmul.f32 %v494_v26, %v837_v63  ;;  %vm254_vm0 = vweird.f32 %v494_v26 }
  0xd8   :  { %413 = vst [vmem:[%s927_s3 + $0x70] sm:$0xff] %v397_v27  ;;  %v496_v31 = vpop.eup %495  ;;  %v257_v42 = vand.u32 2147483647, %v837_v63  ;;  %vm114_vm2 = vcmp.gt.f32.partialorder %v804_v38, 0.0  ;;  %v319_v48 = vand.u32 2147483648, %v853_v9  ;;  %vm255_vm3 = vmor %vm253_vm1, %vm254_vm0  ;;  %v260_v51 = vor.u32 1.1754944e-38, %v259_v34 }
  0xd9   :  { %v196_v13 = vsel %vm195_vm14, %v492_v52, %v192_v28  ;;  %v250_v32 = vsub.f32 1.0, %v249_v29  ;;  %v309_v37 = vmul.f32 %v496_v31, %v853_v9  ;;  %vm314_vm4 = vweird.f32 %v496_v31 }
  0xda   :  { %v201_v33 = vsel %vm198_vm15, %v200_v30, %v196_v13  ;;  %v317_v53 = vand.u32 2147483647, %v853_v9  ;;  %vm258_vm5 = vcmp.eq.f32.partialorder %v257_v42, 8.507059e+37  ;;  %vm313_vm6 = vweird.f32 %v853_v9 }
  0xdb   :  { %v202_v40 = vmul.f32 %v201_v33, %v130_v14  ;;  %v251_v41 = vmul.f32 %v494_v26, %v250_v32  ;;  %v498_v43 = vpop.eup %497  ;;  %v310_v44 = vsub.f32 1.0, %v309_v37  ;;  %v377_v57 = vand.u32 2147483647, %v867_v20  ;;  %vm315_vm7 = vmor %vm313_vm6, %vm314_vm4 }
  0xdc   :  { %v369_v49 = vmul.f32 %v498_v43, %v867_v20  ;;  %v379_v58 = vand.u32 2147483648, %v867_v20  ;;  %v320_v61 = vor.u32 1.1754944e-38, %v319_v48  ;;  %vm374_vm8 = vweird.f32 %v498_v43 }
  0xdd   :  { %v386_v46 = vsel %vm114_vm2, %v202_v40, 0.0  ;;  %v252_v47 = vadd.f32 %v494_v26, %v251_v41  ;;  %v311_v38 = vmul.f32 %v496_v31, %v310_v44  ;;  %vm118_vm9 = vcmp.gt.f32.partialorder %v837_v63, 0.0 }
  0xde   :  { %402 = vst [vmem:[%s927_s3 + $0x18] sm:$0xff] %v386_v46  ;;  %v370_v55 = vsub.f32 1.0, %v369_v49  ;;  %vm318_vm10 = vcmp.eq.f32.partialorder %v317_v53, 8.507059e+37  ;;  %vm373_vm11 = vweird.f32 %v867_v20  ;;  %v380_v6 = vor.u32 1.1754944e-38, %v379_v58 }
  0xdf   :  { %v256_v54 = vsel %vm255_vm3, %v494_v26, %v252_v47  ;;  %v312_v36 = vadd.f32 %v496_v31, %v311_v38  ;;  %vm375_vm12 = vmor %vm373_vm11, %vm374_vm8  ;;  %vm122_vm13 = vcmp.gt.f32.partialorder %v853_v9, 0.0  ;;  %vm378_vm14 = vcmp.eq.f32.partialorder %v377_v57, 8.507059e+37 }
  0xe0   :  { %v261_v56 = vsel %vm258_vm5, %v260_v51, %v256_v54  ;;  %v371_v62 = vmul.f32 %v498_v43, %v370_v55  ;;  %vm126_vm15 = vcmp.gt.f32.partialorder %v867_v20, 0.0 }
  0xe1   :  { %v262_v39 = vmul.f32 %v261_v56, %v134_v50  ;;  %v316_v45 = vsel %vm315_vm7, %v496_v31, %v312_v36 }
  0xe2   :  { %v321_v1 = vsel %vm318_vm10, %v320_v61, %v316_v45  ;;  %v372_v2 = vadd.f32 %v498_v43, %v371_v62 }
  0xe3   :  { %v390_v0 = vsel %vm118_vm9, %v262_v39, 0.0  ;;  %v322_v3 = vmul.f32 %v321_v1, %v138_v59 }
  0xe4   :  { %406 = vst [vmem:[%s927_s3 + $0x38] sm:$0xff] %v390_v0  ;;  %v376_v63 = vsel %vm375_vm12, %v498_v43, %v372_v2 }
  0xe5   :  { %v394_v7 = vsel %vm122_vm13, %v322_v3, 0.0  ;;  %v381_v35 = vsel %vm378_vm14, %v380_v6, %v376_v63 }
  0xe6   :  { %410 = vst [vmem:[%s927_s3 + $0x58] sm:$0xff] %v394_v7  ;;  %v382_v52 = vmul.f32 %v381_v35, %v142_v5 }
  0xe8   :  { %v398_v8 = vsel %vm126_vm15, %v382_v52, 0.0 }
  0xe9   :  { %414 = vst [vmem:[%s927_s3 + $0x78] sm:$0xff] %v398_v8 }

// kernel: mygat_conv_forward.3
= control target key start
LH: loop header
LB: loop body
LE: loop exit
PB: predicated region body
PF: predicated region fallthrough
CT: control target
= control target key end

     0   :  { %vm44_vm0 = vcmask 523264   ;;  %s951_s1 = inlined_call_operand.vmem [shape: f32[64,128], index: 1, kind: input, shape index: {}]   ;;  %s952_s0 = inlined_call_operand.vmem [shape: f32[128,64], index: 0, kind: input, shape index: {}]   ;;  %s953_s2 = inlined_call_operand.vmem [shape: f32[128,128], index: 2, kind: input, shape index: {}]   ;;  %s954_s3 = inlined_call_operand.vmem [shape: f32[128,128], index: 3, kind: input, shape index: {}]   ;;  %s955_s4 = inlined_call_operand.vmem [shape: f32[128,128], index: 4, kind: output, shape index: {0}]   ;;  %s956_s5 = inlined_call_operand.vmem [shape: f32[128,128], index: 5, kind: output, shape index: {1}]   ;;  %s957_s6 = inlined_call_operand.vmem [shape: f32[128,128], index: 6, kind: output, shape index: {2}]  }
   0x1   :  { %v43_v0 = vld [vmem:[%s951_s1 + $0x38] sm:$0xff]  ;;  %v42_v1 = vld [vmem:[%s951_s1 + $0x30] sm:$0xff]  ;;  %v41_v2 = vld [vmem:[%s951_s1 + $0x28] sm:$0xff] }
   0x2   :  { %101 = vmatpush.msra.mxu0 %v43_v0  ;;  %v40_v3 = vld [vmem:[%s951_s1 + $0x20] sm:$0xff]  ;;  %v39_v4 = vld [vmem:[%s951_s1 + $0x18] sm:$0xff]  ;;  %v38_v5 = vld [vmem:[%s951_s1 + $0x10] sm:$0xff] }
   0x3   :  { %v37_v6 = vld [vmem:[%s951_s1 + $0x8] sm:$0xff]  ;;  %v36_v7 = vld [vmem:[%s951_s1] sm:$0xff]  ;;  %v22_v10 = vld [vmem:[%s952_s0 + $0x10] sm:$0xff] }
   0x4   :  { %102 = vmatpush.msra.mxu0 %v42_v1  ;;  %v20_v8 = vld [vmem:[%s952_s0] sm:$0xff]  ;;  %v21_v9 = vld [vmem:[%s952_s0 + $0x8] sm:$0xff]  ;;  %v23_v11 = vld [vmem:[%s952_s0 + $0x18] sm:$0xff] }
   0x5   :  { %v24_v12 = vld [vmem:[%s952_s0 + $0x20] sm:$0xff]  ;;  %v25_v13 = vld [vmem:[%s952_s0 + $0x28] sm:$0xff]  ;;  %v26_v14 = vld [vmem:[%s952_s0 + $0x30] sm:$0xff] }
   0x6   :  { %103 = vmatpush.msra.mxu0 %v41_v2  ;;  %v27_v15 = vld [vmem:[%s952_s0 + $0x38] sm:$0xff]  ;;  %v28_v16 = vld [vmem:[%s952_s0 + $0x40] sm:$0xff]  ;;  %v220_v19 = vld [vmem:[%s953_s2 + $0x70] sm:$0xff] }
   0x7   :  { %v221_v17 = vld [vmem:[%s953_s2 + $0x78] sm:$0xff]  ;;  %v634_v20 = vld [vmem:[%s954_s3 + $0x70] sm:$0xff]  ;;  %v219_v21 = vld [vmem:[%s953_s2 + $0x68] sm:$0xff] }
   0x8   :  { %104 = vmatpush.msra.mxu0 %v40_v3  ;;  %v625_v18 = vld [vmem:[%s954_s3 + $0x78] sm:$0xff]  ;;  %222 = vmatpush.msra.mxu1 %v221_v17  ;;  %v642_v22 = vld [vmem:[%s954_s3 + $0x68] sm:$0xff]  ;;  %v218_v23 = vld [vmem:[%s953_s2 + $0x60] sm:$0xff] }
   0x9   :  { %319 = vmatpush.msra.mxu2 %v625_v18  ;;  %492 = vmatpush.msra.mxu3 %v221_v17  ;;  %v651_v24 = vld [vmem:[%s954_s3 + $0x60] sm:$0xff]  ;;  %v29_v25 = vld [vmem:[%s952_s0 + $0x48] sm:$0xff]  ;;  %v217_v26 = vld [vmem:[%s953_s2 + $0x58] sm:$0xff] }
   0xa   :  { %105 = vmatpush.msra.mxu0 %v39_v4  ;;  %223 = vmatpush.msra.mxu1 %v220_v19  ;;  %v665_v27 = vld [vmem:[%s954_s3 + $0x58] sm:$0xff]  ;;  %v216_v28 = vld [vmem:[%s953_s2 + $0x50] sm:$0xff]  ;;  %v215_v30 = vld [vmem:[%s953_s2 + $0x48] sm:$0xff] }
   0xb   :  { %320 = vmatpush.msra.mxu2 %v634_v20  ;;  %493 = vmatpush.msra.mxu3 %v220_v19  ;;  %v674_v29 = vld [vmem:[%s954_s3 + $0x50] sm:$0xff]  ;;  %v682_v31 = vld [vmem:[%s954_s3 + $0x48] sm:$0xff]  ;;  %v214_v32 = vld [vmem:[%s953_s2 + $0x40] sm:$0xff] }
   0xc   :  { %106 = vmatpush.msra.mxu0 %v38_v5  ;;  %224 = vmatpush.msra.mxu1 %v219_v21  ;;  %v691_v33 = vld [vmem:[%s954_s3 + $0x40] sm:$0xff]  ;;  %v30_v34 = vld [vmem:[%s952_s0 + $0x50] sm:$0xff]  ;;  %v213_v35 = vld [vmem:[%s953_s2 + $0x38] sm:$0xff] }
   0xd   :  { %321 = vmatpush.msra.mxu2 %v642_v22  ;;  %494 = vmatpush.msra.mxu3 %v219_v21  ;;  %v310_v36 = vld [vmem:[%s954_s3 + $0x38] sm:$0xff]  ;;  %v212_v37 = vld [vmem:[%s953_s2 + $0x30] sm:$0xff]  ;;  %v211_v39 = vld [vmem:[%s953_s2 + $0x28] sm:$0xff] }
   0xe   :  { %107 = vmatpush.msra.mxu0 %v37_v6  ;;  %225 = vmatpush.msra.mxu1 %v218_v23  ;;  %v309_v38 = vld [vmem:[%s954_s3 + $0x30] sm:$0xff]  ;;  %v308_v40 = vld [vmem:[%s954_s3 + $0x28] sm:$0xff]  ;;  %v210_v41 = vld [vmem:[%s953_s2 + $0x20] sm:$0xff] }
   0xf   :  { %322 = vmatpush.msra.mxu2 %v651_v24  ;;  %495 = vmatpush.msra.mxu3 %v218_v23  ;;  %v307_v42 = vld [vmem:[%s954_s3 + $0x20] sm:$0xff]  ;;  %v31_v43 = vld [vmem:[%s952_s0 + $0x58] sm:$0xff]  ;;  %v208_v46 = vld [vmem:[%s953_s2 + $0x10] sm:$0xff] }
  0x10   :  { %108 = vmatpush.msra.mxu0 %v36_v7  ;;  %226 = vmatpush.msra.mxu1 %v217_v26  ;;  %v209_v44 = vld [vmem:[%s953_s2 + $0x18] sm:$0xff]  ;;  %v305_v47 = vld [vmem:[%s954_s3 + $0x10] sm:$0xff]  ;;  %v207_v48 = vld [vmem:[%s953_s2 + $0x8] sm:$0xff] }
  0x11   :  { %412 = vmatmul.msk.f32.vlgmr.msra.gmra.mxu0 %vm44_vm0, %v20_v8  ;;  %323 = vmatpush.msra.mxu2 %v665_v27  ;;  %v306_v45 = vld [vmem:[%s954_s3 + $0x18] sm:$0xff]  ;;  %v304_v49 = vld [vmem:[%s954_s3 + $0x8] sm:$0xff]  ;;  %v32_v50 = vld [vmem:[%s952_s0 + $0x60] sm:$0xff] }
  0x12   :  { %496 = vmatpush.msra.mxu3 %v217_v26  ;;  %227 = vmatpush.msra.mxu1 %v216_v28  ;;  %v206_v51 = vld [vmem:[%s953_s2] sm:$0xff]  ;;  %v33_v53 = vld [vmem:[%s952_s0 + $0x68] sm:$0xff]  ;;  %v34_v54 = vld [vmem:[%s952_s0 + $0x70] sm:$0xff] }
  0x13   :  { %324 = vmatpush.msra.mxu2 %v674_v29  ;;  %v303_v52 = vld [vmem:[%s954_s3] sm:$0xff]  ;;  %v35_v55 = vld [vmem:[%s952_s0 + $0x78] sm:$0xff] }
  0x14   :  { %497 = vmatpush.msra.mxu3 %v216_v28  ;;  %228 = vmatpush.msra.mxu1 %v215_v30 }
  0x15   :  { %325 = vmatpush.msra.mxu2 %v682_v31 }
  0x16   :  { %498 = vmatpush.msra.mxu3 %v215_v30  ;;  %229 = vmatpush.msra.mxu1 %v214_v32 }
  0x17   :  { %326 = vmatpush.msra.mxu2 %v691_v33 }
  0x18   :  { %499 = vmatpush.msra.mxu3 %v214_v32  ;;  %230 = vmatpush.msra.mxu1 %v213_v35 }
  0x19   :  { %413 = vmatmul.msk.f32.gmra.mxu0 %vm44_vm0, %v21_v9  ;;  %327 = vmatpush.msra.mxu2 %v310_v36 }
  0x1a   :  { %500 = vmatpush.msra.mxu3 %v213_v35  ;;  %231 = vmatpush.msra.mxu1 %v212_v37 }
  0x1b   :  { %328 = vmatpush.msra.mxu2 %v309_v38 }
  0x1c   :  { %501 = vmatpush.msra.mxu3 %v212_v37  ;;  %232 = vmatpush.msra.mxu1 %v211_v39 }
  0x1d   :  { %329 = vmatpush.msra.mxu2 %v308_v40 }
  0x1e   :  { %502 = vmatpush.msra.mxu3 %v211_v39  ;;  %233 = vmatpush.msra.mxu1 %v210_v41 }
  0x1f   :  { %330 = vmatpush.msra.mxu2 %v307_v42 }
  0x20   :  { %503 = vmatpush.msra.mxu3 %v210_v41  ;;  %234 = vmatpush.msra.mxu1 %v209_v44 }
  0x21   :  { %414 = vmatmul.msk.f32.gmra.mxu0 %vm44_vm0, %v22_v10  ;;  %331 = vmatpush.msra.mxu2 %v306_v45 }
  0x22   :  { %504 = vmatpush.msra.mxu3 %v209_v44  ;;  %235 = vmatpush.msra.mxu1 %v208_v46 }
  0x23   :  { %332 = vmatpush.msra.mxu2 %v305_v47 }
  0x24   :  { %505 = vmatpush.msra.mxu3 %v208_v46  ;;  %236 = vmatpush.msra.mxu1 %v207_v48 }
  0x25   :  { %333 = vmatpush.msra.mxu2 %v304_v49 }
  0x26   :  { %506 = vmatpush.msra.mxu3 %v207_v48  ;;  %237 = vmatpush.msra.mxu1 %v206_v51 }
  0x27   :  { %334 = vmatpush.msra.mxu2 %v303_v52 }
  0x28   :  { %507 = vmatpush.msra.mxu3 %v206_v51 }
  0x29   :  { %415 = vmatmul.msk.f32.gmra.mxu0 %vm44_vm0, %v23_v11 }
  0x2a   :  { %508 = vmatpush.msrb.mxu3 %v625_v18 }
  0x2c   :  { %509 = vmatpush.msrb.mxu3 %v634_v20 }
  0x2e   :  { %510 = vmatpush.msrb.mxu3 %v642_v22 }
  0x30   :  { %511 = vmatpush.msrb.mxu3 %v651_v24 }
  0x31   :  { %416 = vmatmul.msk.f32.gmra.mxu0 %vm44_vm0, %v24_v12 }
  0x32   :  { %512 = vmatpush.msrb.mxu3 %v665_v27 }
  0x34   :  { %513 = vmatpush.msrb.mxu3 %v674_v29 }
  0x36   :  { %514 = vmatpush.msrb.mxu3 %v682_v31 }
  0x38   :  { %515 = vmatpush.msrb.mxu3 %v691_v33 }
  0x39   :  { %417 = vmatmul.msk.f32.gmra.mxu0 %vm44_vm0, %v25_v13 }
  0x3a   :  { %516 = vmatpush.msrb.mxu3 %v310_v36 }
  0x3c   :  { %517 = vmatpush.msrb.mxu3 %v309_v38 }
  0x3e   :  { %518 = vmatpush.msrb.mxu3 %v308_v40 }
  0x40   :  { %519 = vmatpush.msrb.mxu3 %v307_v42 }
  0x41   :  { %418 = vmatmul.msk.f32.gmra.mxu0 %vm44_vm0, %v26_v14 }
  0x42   :  { %520 = vmatpush.msrb.mxu3 %v306_v45 }
  0x44   :  { %521 = vmatpush.msrb.mxu3 %v305_v47 }
  0x46   :  { %522 = vmatpush.msrb.mxu3 %v304_v49 }
  0x48   :  { %523 = vmatpush.msrb.mxu3 %v303_v52 }
  0x49   :  { %419 = vmatmul.msk.f32.gmra.mxu0 %vm44_vm0, %v27_v15 }
  0x51   :  { %420 = vmatmul.msk.f32.gmra.mxu0 %vm44_vm0, %v28_v16 }
  0x59   :  { %421 = vmatmul.msk.f32.gmra.mxu0 %vm44_vm0, %v29_v25 }
  0x61   :  { %422 = vmatmul.msk.f32.gmra.mxu0 %vm44_vm0, %v30_v34 }
  0x69   :  { %423 = vmatmul.msk.f32.gmra.mxu0 %vm44_vm0, %v31_v43 }
  0x71   :  { %424 = vmatmul.msk.f32.gmra.mxu0 %vm44_vm0, %v32_v50 }
  0x79   :  { %425 = vmatmul.msk.f32.gmra.mxu0 %vm44_vm0, %v33_v53 }
  0x81   :  { %426 = vmatmul.msk.f32.gmra.mxu0 %vm44_vm0, %v34_v54 }
  0x89   :  { %427 = vmatmul.msk.f32.gmra.mxu0 %vm44_vm0, %v35_v55 }
  0x8e   :  { %v110_v56 = vpop.f32.mrf.mxu0 }
  0x8f   :  { %vm158_vm1 = vcmp.ne.f32.partialorder %v110_v56, %v110_v56 }
  0x90   :  { %v174_v57 = vsel %vm158_vm1, 0.0, %v110_v56  ;;  %vm428_vm2 = vmneg %vm158_vm1 }
  0x91   :  { %190 = vst [vmem:[%s955_s4] sm:$0xff] %v174_v57  ;;  %429 = vmatmul.msk.f32.vlgmr.msra.gmra.mxu1 %vm428_vm2, %v110_v56  ;;  %461 = vmatmul.msk.f32.vlgmr.msra.gmra.mxu2 %vm428_vm2, %v110_v56 }
  0x96   :  { %v113_v58 = vpop.f32.mrf.mxu0 }
  0x97   :  { %vm159_vm3 = vcmp.ne.f32.partialorder %v113_v58, %v113_v58 }
  0x98   :  { %v175_v59 = vsel %vm159_vm3, 0.0, %v113_v58  ;;  %vm430_vm4 = vmneg %vm159_vm3 }
  0x99   :  { %191 = vst [vmem:[%s955_s4 + $0x8] sm:$0xff] %v175_v59  ;;  %431 = vmatmul.msk.f32.gmra.mxu1 %vm430_vm4, %v113_v58  ;;  %463 = vmatmul.msk.f32.gmra.mxu2 %vm430_vm4, %v113_v58 }
  0x9e   :  { %v116_v60 = vpop.f32.mrf.mxu0 }
  0x9f   :  { %vm160_vm5 = vcmp.ne.f32.partialorder %v116_v60, %v116_v60 }
  0xa0   :  { %v176_v61 = vsel %vm160_vm5, 0.0, %v116_v60  ;;  %vm432_vm6 = vmneg %vm160_vm5 }
  0xa1   :  { %192 = vst [vmem:[%s955_s4 + $0x10] sm:$0xff] %v176_v61  ;;  %433 = vmatmul.msk.f32.gmra.mxu1 %vm432_vm6, %v116_v60  ;;  %465 = vmatmul.msk.f32.gmra.mxu2 %vm432_vm6, %v116_v60 }
  0xa6   :  { %v119_v62 = vpop.f32.mrf.mxu0 }
  0xa7   :  { %vm161_vm7 = vcmp.ne.f32.partialorder %v119_v62, %v119_v62 }
  0xa8   :  { %v177_v63 = vsel %vm161_vm7, 0.0, %v119_v62  ;;  %vm434_vm8 = vmneg %vm161_vm7 }
  0xa9   :  { %193 = vst [vmem:[%s955_s4 + $0x18] sm:$0xff] %v177_v63  ;;  %435 = vmatmul.msk.f32.gmra.mxu1 %vm434_vm8, %v119_v62  ;;  %467 = vmatmul.msk.f32.gmra.mxu2 %vm434_vm8, %v119_v62 }
  0xae   :  { %v122_v0 = vpop.f32.mrf.mxu0 }
  0xaf   :  { %vm162_vm9 = vcmp.ne.f32.partialorder %v122_v0, %v122_v0 }
  0xb0   :  { %v178_v1 = vsel %vm162_vm9, 0.0, %v122_v0  ;;  %vm436_vm10 = vmneg %vm162_vm9 }
  0xb1   :  { %194 = vst [vmem:[%s955_s4 + $0x20] sm:$0xff] %v178_v1  ;;  %437 = vmatmul.msk.f32.gmra.mxu1 %vm436_vm10, %v122_v0  ;;  %469 = vmatmul.msk.f32.gmra.mxu2 %vm436_vm10, %v122_v0 }
  0xb6   :  { %v125_v2 = vpop.f32.mrf.mxu0 }
  0xb7   :  { %vm163_vm11 = vcmp.ne.f32.partialorder %v125_v2, %v125_v2 }
  0xb8   :  { %v179_v3 = vsel %vm163_vm11, 0.0, %v125_v2  ;;  %vm438_vm12 = vmneg %vm163_vm11 }
  0xb9   :  { %195 = vst [vmem:[%s955_s4 + $0x28] sm:$0xff] %v179_v3  ;;  %439 = vmatmul.msk.f32.gmra.mxu1 %vm438_vm12, %v125_v2  ;;  %471 = vmatmul.msk.f32.gmra.mxu2 %vm438_vm12, %v125_v2 }
  0xbe   :  { %v128_v4 = vpop.f32.mrf.mxu0 }
  0xbf   :  { %vm164_vm13 = vcmp.ne.f32.partialorder %v128_v4, %v128_v4 }
  0xc0   :  { %v180_v5 = vsel %vm164_vm13, 0.0, %v128_v4  ;;  %vm440_vm14 = vmneg %vm164_vm13 }
  0xc1   :  { %196 = vst [vmem:[%s955_s4 + $0x30] sm:$0xff] %v180_v5  ;;  %441 = vmatmul.msk.f32.gmra.mxu1 %vm440_vm14, %v128_v4  ;;  %473 = vmatmul.msk.f32.gmra.mxu2 %vm440_vm14, %v128_v4 }
  0xc6   :  { %v131_v6 = vpop.f32.mrf.mxu0 }
  0xc7   :  { %vm165_vm15 = vcmp.ne.f32.partialorder %v131_v6, %v131_v6 }
  0xc8   :  { %v181_v7 = vsel %vm165_vm15, 0.0, %v131_v6  ;;  %vm442_vm0 = vmneg %vm165_vm15 }
  0xc9   :  { %197 = vst [vmem:[%s955_s4 + $0x38] sm:$0xff] %v181_v7  ;;  %443 = vmatmul.msk.f32.gmra.mxu1 %vm442_vm0, %v131_v6  ;;  %475 = vmatmul.msk.f32.gmra.mxu2 %vm442_vm0, %v131_v6 }
  0xce   :  { %v134_v8 = vpop.f32.mrf.mxu0 }
  0xcf   :  { %vm166_vm1 = vcmp.ne.f32.partialorder %v134_v8, %v134_v8 }
  0xd0   :  { %v182_v9 = vsel %vm166_vm1, 0.0, %v134_v8  ;;  %vm444_vm2 = vmneg %vm166_vm1 }
  0xd1   :  { %198 = vst [vmem:[%s955_s4 + $0x40] sm:$0xff] %v182_v9  ;;  %445 = vmatmul.msk.f32.gmra.mxu1 %vm444_vm2, %v134_v8  ;;  %477 = vmatmul.msk.f32.gmra.mxu2 %vm444_vm2, %v134_v8 }
  0xd6   :  { %v137_v10 = vpop.f32.mrf.mxu0 }
  0xd7   :  { %vm167_vm3 = vcmp.ne.f32.partialorder %v137_v10, %v137_v10 }
  0xd8   :  { %v183_v11 = vsel %vm167_vm3, 0.0, %v137_v10  ;;  %vm446_vm4 = vmneg %vm167_vm3 }
  0xd9   :  { %199 = vst [vmem:[%s955_s4 + $0x48] sm:$0xff] %v183_v11  ;;  %447 = vmatmul.msk.f32.gmra.mxu1 %vm446_vm4, %v137_v10  ;;  %479 = vmatmul.msk.f32.gmra.mxu2 %vm446_vm4, %v137_v10 }
  0xde   :  { %v140_v12 = vpop.f32.mrf.mxu0 }
  0xdf   :  { %vm168_vm5 = vcmp.ne.f32.partialorder %v140_v12, %v140_v12 }
  0xe0   :  { %v184_v13 = vsel %vm168_vm5, 0.0, %v140_v12  ;;  %vm448_vm6 = vmneg %vm168_vm5 }
  0xe1   :  { %200 = vst [vmem:[%s955_s4 + $0x50] sm:$0xff] %v184_v13  ;;  %449 = vmatmul.msk.f32.gmra.mxu1 %vm448_vm6, %v140_v12  ;;  %481 = vmatmul.msk.f32.gmra.mxu2 %vm448_vm6, %v140_v12 }
  0xe6   :  { %v143_v14 = vpop.f32.mrf.mxu0 }
  0xe7   :  { %vm169_vm7 = vcmp.ne.f32.partialorder %v143_v14, %v143_v14 }
  0xe8   :  { %v185_v15 = vsel %vm169_vm7, 0.0, %v143_v14  ;;  %vm450_vm8 = vmneg %vm169_vm7 }
  0xe9   :  { %201 = vst [vmem:[%s955_s4 + $0x58] sm:$0xff] %v185_v15  ;;  %451 = vmatmul.msk.f32.gmra.mxu1 %vm450_vm8, %v143_v14  ;;  %483 = vmatmul.msk.f32.gmra.mxu2 %vm450_vm8, %v143_v14 }
  0xee   :  { %v146_v16 = vpop.f32.mrf.mxu0 }
  0xef   :  { %vm170_vm9 = vcmp.ne.f32.partialorder %v146_v16, %v146_v16 }
  0xf0   :  { %v186_v17 = vsel %vm170_vm9, 0.0, %v146_v16  ;;  %vm811_vm10 = vmneg %vm170_vm9 }
  0xf1   :  { %202 = vst [vmem:[%s955_s4 + $0x60] sm:$0xff] %v186_v17  ;;  %453 = vmatmul.msk.f32.vlgmr.msra.gmra.mxu3 %vm811_vm10, %v146_v16 }
  0xf6   :  { %v149_v19 = vpop.f32.mrf.mxu0 }
  0xf7   :  { %vm171_vm11 = vcmp.ne.f32.partialorder %v149_v19, %v149_v19 }
  0xf8   :  { %v187_v20 = vsel %vm171_vm11, 0.0, %v149_v19  ;;  %vm820_vm12 = vmneg %vm171_vm11 }
  0xf9   :  { %203 = vst [vmem:[%s955_s4 + $0x68] sm:$0xff] %v187_v20  ;;  %455 = vmatmul.msk.f32.gmra.mxu3 %vm820_vm12, %v149_v19 }
  0xfe   :  { %v152_v22 = vpop.f32.mrf.mxu0 }
  0xff   :  { %vm172_vm13 = vcmp.ne.f32.partialorder %v152_v22, %v152_v22 }
 0x100   :  { %v188_v23 = vsel %vm172_vm13, 0.0, %v152_v22  ;;  %vm829_vm14 = vmneg %vm172_vm13 }
 0x101   :  { %204 = vst [vmem:[%s955_s4 + $0x70] sm:$0xff] %v188_v23  ;;  %457 = vmatmul.msk.f32.gmra.mxu3 %vm829_vm14, %v152_v22 }
 0x106   :  { %v155_v25 = vpop.f32.mrf.mxu0 }
 0x107   :  { %vm173_vm15 = vcmp.ne.f32.partialorder %v155_v25, %v155_v25 }
 0x108   :  { %v189_v26 = vsel %vm173_vm15, 0.0, %v155_v25  ;;  %vm838_vm0 = vmneg %vm173_vm15 }
 0x109   :  { %205 = vst [vmem:[%s955_s4 + $0x78] sm:$0xff] %v189_v26  ;;  %459 = vmatmul.msk.f32.gmra.mxu3 %vm838_vm0, %v155_v25 }
 0x10e   :  { %v239_v28 = vpop.f32.mrf.mxu1 }
 0x10f   :  { %287 = vst [vmem:[%s956_s5] sm:$0xff] %v239_v28 }
 0x111   :  { %485 = vmatmul.msk.f32.vlgmr.msrb.gmra.mxu3 %vm811_vm10, %v146_v16 }
 0x114   :  { %v336_v29 = vpop.f32.mrf.mxu2 }
 0x115   :  { %384 = vst [vmem:[%s957_s6] sm:$0xff] %v336_v29 }
 0x116   :  { %v242_v30 = vpop.f32.mrf.mxu1 }
 0x117   :  { %288 = vst [vmem:[%s956_s5 + $0x8] sm:$0xff] %v242_v30 }
 0x119   :  { %487 = vmatmul.msk.f32.gmra.mxu3 %vm820_vm12, %v149_v19 }
 0x11c   :  { %v339_v31 = vpop.f32.mrf.mxu2 }
 0x11d   :  { %385 = vst [vmem:[%s957_s6 + $0x8] sm:$0xff] %v339_v31 }
 0x11e   :  { %v245_v32 = vpop.f32.mrf.mxu1 }
 0x11f   :  { %289 = vst [vmem:[%s956_s5 + $0x10] sm:$0xff] %v245_v32 }
 0x121   :  { %489 = vmatmul.msk.f32.gmra.mxu3 %vm829_vm14, %v152_v22 }
 0x124   :  { %v342_v33 = vpop.f32.mrf.mxu2 }
 0x125   :  { %386 = vst [vmem:[%s957_s6 + $0x10] sm:$0xff] %v342_v33 }
 0x126   :  { %v248_v34 = vpop.f32.mrf.mxu1 }
 0x127   :  { %290 = vst [vmem:[%s956_s5 + $0x18] sm:$0xff] %v248_v34 }
 0x129   :  { %491 = vmatmul.msk.f32.gmra.mxu3 %vm838_vm0, %v155_v25 }
 0x12c   :  { %v345_v35 = vpop.f32.mrf.mxu2 }
 0x12d   :  { %387 = vst [vmem:[%s957_s6 + $0x18] sm:$0xff] %v345_v35 }
 0x12e   :  { %v251_v36 = vpop.f32.mrf.mxu1 }
 0x12f   :  { %291 = vst [vmem:[%s956_s5 + $0x20] sm:$0xff] %v251_v36 }
 0x134   :  { %v348_v37 = vpop.f32.mrf.mxu2 }
 0x135   :  { %388 = vst [vmem:[%s957_s6 + $0x20] sm:$0xff] %v348_v37 }
 0x136   :  { %v254_v38 = vpop.f32.mrf.mxu1 }
 0x137   :  { %292 = vst [vmem:[%s956_s5 + $0x28] sm:$0xff] %v254_v38 }
 0x13c   :  { %v351_v39 = vpop.f32.mrf.mxu2 }
 0x13d   :  { %389 = vst [vmem:[%s957_s6 + $0x28] sm:$0xff] %v351_v39 }
 0x13e   :  { %v257_v40 = vpop.f32.mrf.mxu1 }
 0x13f   :  { %293 = vst [vmem:[%s956_s5 + $0x30] sm:$0xff] %v257_v40 }
 0x144   :  { %v354_v41 = vpop.f32.mrf.mxu2 }
 0x145   :  { %390 = vst [vmem:[%s957_s6 + $0x30] sm:$0xff] %v354_v41 }
 0x146   :  { %v260_v42 = vpop.f32.mrf.mxu1 }
 0x147   :  { %294 = vst [vmem:[%s956_s5 + $0x38] sm:$0xff] %v260_v42 }
 0x14c   :  { %v357_v43 = vpop.f32.mrf.mxu2 }
 0x14d   :  { %391 = vst [vmem:[%s957_s6 + $0x38] sm:$0xff] %v357_v43 }
 0x14e   :  { %v263_v44 = vpop.f32.mrf.mxu1 }
 0x14f   :  { %295 = vst [vmem:[%s956_s5 + $0x40] sm:$0xff] %v263_v44 }
 0x154   :  { %v360_v45 = vpop.f32.mrf.mxu2 }
 0x155   :  { %392 = vst [vmem:[%s957_s6 + $0x40] sm:$0xff] %v360_v45 }
 0x156   :  { %v266_v46 = vpop.f32.mrf.mxu1 }
 0x157   :  { %296 = vst [vmem:[%s956_s5 + $0x48] sm:$0xff] %v266_v46 }
 0x15c   :  { %v363_v47 = vpop.f32.mrf.mxu2 }
 0x15d   :  { %393 = vst [vmem:[%s957_s6 + $0x48] sm:$0xff] %v363_v47 }
 0x15e   :  { %v269_v48 = vpop.f32.mrf.mxu1 }
 0x15f   :  { %297 = vst [vmem:[%s956_s5 + $0x50] sm:$0xff] %v269_v48 }
 0x164   :  { %v366_v49 = vpop.f32.mrf.mxu2 }
 0x165   :  { %394 = vst [vmem:[%s957_s6 + $0x50] sm:$0xff] %v366_v49 }
 0x166   :  { %v272_v50 = vpop.f32.mrf.mxu1 }
 0x167   :  { %298 = vst [vmem:[%s956_s5 + $0x58] sm:$0xff] %v272_v50 }
 0x16c   :  { %v369_v51 = vpop.f32.mrf.mxu2 }
 0x16d   :  { %395 = vst [vmem:[%s957_s6 + $0x58] sm:$0xff] %v369_v51 }
 0x174   :  { %v275_v52 = vpop.f32.mrf.mxu3 }
 0x175   :  { %299 = vst [vmem:[%s956_s5 + $0x60] sm:$0xff] %v275_v52 }
 0x17c   :  { %v278_v53 = vpop.f32.mrf.mxu3 }
 0x17d   :  { %300 = vst [vmem:[%s956_s5 + $0x68] sm:$0xff] %v278_v53 }
 0x184   :  { %v281_v54 = vpop.f32.mrf.mxu3 }
 0x185   :  { %301 = vst [vmem:[%s956_s5 + $0x70] sm:$0xff] %v281_v54 }
 0x18c   :  { %v284_v55 = vpop.f32.mrf.mxu3 }
 0x18d   :  { %302 = vst [vmem:[%s956_s5 + $0x78] sm:$0xff] %v284_v55 }
 0x194   :  { %v372_v56 = vpop.f32.mrf.mxu3 }
 0x195   :  { %396 = vst [vmem:[%s957_s6 + $0x60] sm:$0xff] %v372_v56 }
 0x19c   :  { %v375_v57 = vpop.f32.mrf.mxu3 }
 0x19d   :  { %397 = vst [vmem:[%s957_s6 + $0x68] sm:$0xff] %v375_v57 }
 0x1a4   :  { %v378_v58 = vpop.f32.mrf.mxu3 }
 0x1a5   :  { %398 = vst [vmem:[%s957_s6 + $0x70] sm:$0xff] %v378_v58 }
 0x1ac   :  { %v381_v59 = vpop.f32.mrf.mxu3 }
 0x1ad   :  { %399 = vst [vmem:[%s957_s6 + $0x78] sm:$0xff] %v381_v59 }

// kernel: mygat_conv_forward.4
= control target key start
LH: loop header
LB: loop body
LE: loop exit
PB: predicated region body
PF: predicated region fallthrough
CT: control target
= control target key end

     0   :  { %s2349_s4 = inlined_call_operand.vmem [shape: f32[128,128], index: 4, kind: input, shape index: {}]   ;;  %s2350_s3 = inlined_call_operand.vmem [shape: f32[128,128], index: 3, kind: input, shape index: {}]   ;;  %s2351_s1 = inlined_call_operand.vmem [shape: f32[128,128], index: 1, kind: input, shape index: {}]   ;;  %s2352_s0 = inlined_call_operand.vmem [shape: f32[128,128], index: 0, kind: input, shape index: {}]   ;;  %s2353_s6 = inlined_call_operand.vmem [shape: f32[1,128], index: 6, kind: input, shape index: {}]   ;;  %s2354_s2 = inlined_call_operand.vmem [shape: f32[128,128], index: 2, kind: input, shape index: {}]   ;;  %s2355_s8 = inlined_call_operand.vmem [shape: f32[128,128], index: 8, kind: output, shape index: {0}]   ;;  %s2356_s5 = inlined_call_operand.vmem [shape: f32[128,128], index: 5, kind: input, shape index: {}]   ;;  %s2357_s7 = inlined_call_operand.vmem [shape: f32[128,128], index: 7, kind: input, shape index: {}]   ;;  %s2358_s9 = inlined_call_operand.vmem [shape: f32[128,128], index: 9, kind: output, shape index: {1}]   ;;  %s2359_s10 = inlined_call_operand.vmem [shape: f32[128,128], index: 10, kind: output, shape index: {2}]  }
   0x1   :  { %v131_v0 = vld [vmem:[%s2349_s4 + $0x78] sm:$0xff]  ;;  %v130_v1 = vld [vmem:[%s2349_s4 + $0x70] sm:$0xff]  ;;  %v129_v3 = vld [vmem:[%s2349_s4 + $0x68] sm:$0xff] }
   0x2   :  { %1262 = vmatpush.msra.mxu3 %v131_v0  ;;  %v1440_v2 = vld [vmem:[%s2350_s3 + $0x78] sm:$0xff]  ;;  %132 = vmatpush.msra.mxu0 %v131_v0  ;;  %v1449_v4 = vld [vmem:[%s2350_s3 + $0x70] sm:$0xff]  ;;  %v1454_v5 = vld [vmem:[%s2350_s3 + $0x68] sm:$0xff] }
   0x3   :  { %1278 = vmatpush.msra.mxu1 %v1440_v2  ;;  %v128_v6 = vld [vmem:[%s2349_s4 + $0x60] sm:$0xff]  ;;  %v127_v8 = vld [vmem:[%s2349_s4 + $0x58] sm:$0xff]  ;;  %v126_v10 = vld [vmem:[%s2349_s4 + $0x50] sm:$0xff] }
   0x4   :  { %1263 = vmatpush.msra.mxu3 %v130_v1  ;;  %133 = vmatpush.msra.mxu0 %v130_v1  ;;  %v1463_v7 = vld [vmem:[%s2350_s3 + $0x60] sm:$0xff]  ;;  %v1472_v9 = vld [vmem:[%s2350_s3 + $0x58] sm:$0xff]  ;;  %v1481_v11 = vld [vmem:[%s2350_s3 + $0x50] sm:$0xff] }
   0x5   :  { %1279 = vmatpush.msra.mxu1 %v1449_v4  ;;  %v125_v12 = vld [vmem:[%s2349_s4 + $0x48] sm:$0xff]  ;;  %v124_v14 = vld [vmem:[%s2349_s4 + $0x40] sm:$0xff]  ;;  %v123_v16 = vld [vmem:[%s2349_s4 + $0x38] sm:$0xff] }
   0x6   :  { %1264 = vmatpush.msra.mxu3 %v129_v3  ;;  %134 = vmatpush.msra.mxu0 %v129_v3  ;;  %v1490_v13 = vld [vmem:[%s2350_s3 + $0x48] sm:$0xff]  ;;  %v1499_v15 = vld [vmem:[%s2350_s3 + $0x40] sm:$0xff]  ;;  %v1508_v17 = vld [vmem:[%s2350_s3 + $0x38] sm:$0xff] }
   0x7   :  { %1280 = vmatpush.msra.mxu1 %v1454_v5  ;;  %v122_v18 = vld [vmem:[%s2349_s4 + $0x30] sm:$0xff]  ;;  %v121_v20 = vld [vmem:[%s2349_s4 + $0x28] sm:$0xff]  ;;  %v120_v22 = vld [vmem:[%s2349_s4 + $0x20] sm:$0xff] }
   0x8   :  { %1265 = vmatpush.msra.mxu3 %v128_v6  ;;  %135 = vmatpush.msra.mxu0 %v128_v6  ;;  %v1517_v19 = vld [vmem:[%s2350_s3 + $0x30] sm:$0xff]  ;;  %v1526_v21 = vld [vmem:[%s2350_s3 + $0x28] sm:$0xff]  ;;  %v104_v23 = vld [vmem:[%s2350_s3 + $0x20] sm:$0xff] }
   0x9   :  { %1281 = vmatpush.msra.mxu1 %v1463_v7  ;;  %v119_v24 = vld [vmem:[%s2349_s4 + $0x18] sm:$0xff]  ;;  %v118_v26 = vld [vmem:[%s2349_s4 + $0x10] sm:$0xff]  ;;  %v117_v28 = vld [vmem:[%s2349_s4 + $0x8] sm:$0xff] }
   0xa   :  { %1266 = vmatpush.msra.mxu3 %v127_v8  ;;  %136 = vmatpush.msra.mxu0 %v127_v8  ;;  %v103_v25 = vld [vmem:[%s2350_s3 + $0x18] sm:$0xff]  ;;  %v102_v27 = vld [vmem:[%s2350_s3 + $0x10] sm:$0xff]  ;;  %v101_v29 = vld [vmem:[%s2350_s3 + $0x8] sm:$0xff] }
   0xb   :  { %1282 = vmatpush.msra.mxu1 %v1472_v9  ;;  %v116_v30 = vld [vmem:[%s2349_s4] sm:$0xff]  ;;  %v1583_v35 = vld [vmem:[%s2351_s1 + $0x28] sm:$0xff]  ;;  %v1605_v38 = vld [vmem:[%s2351_s1 + $0x30] sm:$0xff] }
   0xc   :  { %1267 = vmatpush.msra.mxu3 %v126_v10  ;;  %137 = vmatpush.msra.mxu0 %v126_v10  ;;  %v1560_v31 = vld [vmem:[%s2351_s1 + $0x20] sm:$0xff]  ;;  %v1588_v36 = vld [vmem:[%s2352_s0 + $0x28] sm:$0xff]  ;;  %v74_v39 = vld [vmem:[%s2352_s0 + $0x30] sm:$0xff] }
   0xd   :  { %1283 = vmatpush.msra.mxu1 %v1481_v11  ;;  %v100_v32 = vld [vmem:[%s2350_s3] sm:$0xff]  ;;  %v1594_v37 = vld [vmem:[%s2351_s1 + $0x8] sm:$0xff]  ;;  %v1614_v40 = vld [vmem:[%s2351_s1 + $0x10] sm:$0xff] }
   0xe   :  { %1268 = vmatpush.msra.mxu3 %v125_v12  ;;  %138 = vmatpush.msra.mxu0 %v125_v12  ;;  %v1568_v33 = vld [vmem:[%s2352_s0 + $0x20] sm:$0xff]  ;;  %v1624_v41 = vld [vmem:[%s2351_s1 + $0x38] sm:$0xff]  ;;  %v69_v47 = vld [vmem:[%s2352_s0 + $0x8] sm:$0xff] }
   0xf   :  { %1284 = vmatpush.msra.mxu1 %v1490_v13  ;;  %v1573_v34 = vld [vmem:[%s2351_s1] sm:$0xff]  ;;  %v75_v42 = vld [vmem:[%s2352_s0 + $0x38] sm:$0xff]  ;;  %v1655_v48 = vld [vmem:[%s2351_s1 + $0x48] sm:$0xff] }
  0x10   :  { %1269 = vmatpush.msra.mxu3 %v124_v14  ;;  %139 = vmatpush.msra.mxu0 %v124_v14  ;;  %v1633_v43 = vld [vmem:[%s2351_s1 + $0x18] sm:$0xff]  ;;  %v68_v44 = vld [vmem:[%s2352_s0] sm:$0xff]  ;;  %v77_v49 = vld [vmem:[%s2352_s0 + $0x48] sm:$0xff] }
  0x11   :  { %1285 = vmatpush.msra.mxu1 %v1499_v15  ;;  %426 = vxpose.xlu0.b32.start [1/16] %v68_v44, 128  ;;  %v1643_v45 = vld [vmem:[%s2351_s1 + $0x40] sm:$0xff]  ;;  %v70_v50 = vld [vmem:[%s2352_s0 + $0x10] sm:$0xff]  ;;  %v71_v53 = vld [vmem:[%s2352_s0 + $0x18] sm:$0xff] }
  0x12   :  { %1270 = vmatpush.msra.mxu3 %v123_v16  ;;  %140 = vmatpush.msra.mxu0 %v123_v16  ;;  %v76_v46 = vld [vmem:[%s2352_s0 + $0x40] sm:$0xff]  ;;  %v1667_v51 = vld [vmem:[%s2351_s1 + $0x50] sm:$0xff]  ;;  %v1679_v54 = vld [vmem:[%s2351_s1 + $0x58] sm:$0xff] }
  0x13   :  { %1286 = vmatpush.msra.mxu1 %v1508_v17  ;;  %v78_v52 = vld [vmem:[%s2352_s0 + $0x50] sm:$0xff]  ;;  %v79_v55 = vld [vmem:[%s2352_s0 + $0x58] sm:$0xff]  ;;  %v1689_v56 = vld [vmem:[%s2351_s1 + $0x60] sm:$0xff] }
  0x14   :  { %1271 = vmatpush.msra.mxu3 %v122_v18  ;;  %141 = vmatpush.msra.mxu0 %v122_v18  ;;  %v80_v57 = vld [vmem:[%s2352_s0 + $0x60] sm:$0xff]  ;;  %v1699_v58 = vld [vmem:[%s2351_s1 + $0x68] sm:$0xff]  ;;  %v1708_v60 = vld [vmem:[%s2351_s1 + $0x70] sm:$0xff] }
  0x15   :  { %1287 = vmatpush.msra.mxu1 %v1517_v19  ;;  %v81_v59 = vld [vmem:[%s2352_s0 + $0x68] sm:$0xff]  ;;  %v82_v61 = vld [vmem:[%s2352_s0 + $0x70] sm:$0xff]  ;;  %v1717_v62 = vld [vmem:[%s2351_s1 + $0x78] sm:$0xff] }
  0x16   :  { %1272 = vmatpush.msra.mxu3 %v121_v20  ;;  %142 = vmatpush.msra.mxu0 %v121_v20  ;;  %v83_v63 = vld [vmem:[%s2352_s0 + $0x78] sm:$0xff]  ;;  %v266_v3 = vld [vmem:[%s2354_s2 + $0x20] sm:$0xff] }
  0x17   :  { %1288 = vmatpush.msra.mxu1 %v1526_v21  ;;  %v1731_v8 = vld [vmem:[%s2353_s6] ss:$0 sm:$0xff] }
  0x18   :  { %1273 = vmatpush.msra.mxu3 %v120_v22  ;;  %143 = vmatpush.msra.mxu0 %v120_v22 }
  0x19   :  { %1289 = vmatpush.msra.mxu1 %v104_v23  ;;  %427 = vxpose.xlu0.b32.cont [2/16] %v69_v47, 128 }
  0x1a   :  { %1274 = vmatpush.msra.mxu3 %v119_v24  ;;  %144 = vmatpush.msra.mxu0 %v119_v24 }
  0x1b   :  { %1290 = vmatpush.msra.mxu1 %v103_v25 }
  0x1c   :  { %1275 = vmatpush.msra.mxu3 %v118_v26  ;;  %145 = vmatpush.msra.mxu0 %v118_v26 }
  0x1d   :  { %1291 = vmatpush.msra.mxu1 %v102_v27 }
  0x1e   :  { %1276 = vmatpush.msra.mxu3 %v117_v28  ;;  %146 = vmatpush.msra.mxu0 %v117_v28 }
  0x1f   :  { %1292 = vmatpush.msra.mxu1 %v101_v29 }
  0x20   :  { %1277 = vmatpush.msra.mxu3 %v116_v30  ;;  %147 = vmatpush.msra.mxu0 %v116_v30 }
  0x21   :  { %160 = vmatmul.f32.vlgmr.msra.gmra.mxu3 %v1560_v31  ;;  %1293 = vmatpush.msra.mxu1 %v100_v32 }
  0x22   :  { %225 = vmatmul.f32.vlgmr.msra.gmra.mxu1 %v1568_v33  ;;  %148 = vmatmul.f32.vlgmr.msra.gmra.mxu0 %v1573_v34 }
  0x23   :  { %197 = vmatpush.msrb.mxu0 %v1440_v2  ;;  %428 = vxpose.xlu0.b32.cont [3/16] %v70_v50, 128 }
  0x25   :  { %198 = vmatpush.msrb.mxu0 %v1449_v4 }
  0x27   :  { %199 = vmatpush.msrb.mxu0 %v1454_v5 }
  0x29   :  { %163 = vmatmul.f32.gmra.mxu3 %v1583_v35  ;;  %200 = vmatpush.msrb.mxu0 %v1463_v7 }
  0x2a   :  { %228 = vmatmul.f32.gmra.mxu1 %v1588_v36  ;;  %151 = vmatmul.f32.gmra.mxu0 %v1594_v37 }
  0x2b   :  { %201 = vmatpush.msrb.mxu0 %v1472_v9  ;;  %429 = vxpose.xlu0.b32.cont [4/16] %v71_v53, 128 }
  0x2d   :  { %202 = vmatpush.msrb.mxu0 %v1481_v11 }
  0x2f   :  { %203 = vmatpush.msrb.mxu0 %v1490_v13  ;;  %v267_v13 = vld [vmem:[%s2354_s2 + $0x28] sm:$0xff] }
  0x31   :  { %166 = vmatmul.f32.gmra.mxu3 %v1605_v38  ;;  %204 = vmatpush.msrb.mxu0 %v1499_v15 }
  0x32   :  { %231 = vmatmul.f32.gmra.mxu1 %v74_v39  ;;  %154 = vmatmul.f32.gmra.mxu0 %v1614_v40 }
  0x33   :  { %205 = vmatpush.msrb.mxu0 %v1508_v17  ;;  %430 = vxpose.xlu0.b32.cont [5/16] %v1568_v33, 128 }
  0x35   :  { %206 = vmatpush.msrb.mxu0 %v1517_v19 }
  0x37   :  { %207 = vmatpush.msrb.mxu0 %v1526_v21 }
  0x39   :  { %169 = vmatmul.f32.gmra.mxu3 %v1624_v41  ;;  %208 = vmatpush.msrb.mxu0 %v104_v23  ;;  %v268_v23 = vld [vmem:[%s2354_s2 + $0x30] sm:$0xff] }
  0x3a   :  { %234 = vmatmul.f32.gmra.mxu1 %v75_v42  ;;  %157 = vmatmul.f32.gmra.mxu0 %v1633_v43 }
  0x3b   :  { %209 = vmatpush.msrb.mxu0 %v103_v25  ;;  %431 = vxpose.xlu0.b32.cont [6/16] %v1588_v36, 128 }
  0x3d   :  { %210 = vmatpush.msrb.mxu0 %v102_v27 }
  0x3f   :  { %211 = vmatpush.msrb.mxu0 %v101_v29 }
  0x41   :  { %172 = vmatmul.f32.gmra.mxu3 %v1643_v45  ;;  %212 = vmatpush.msrb.mxu0 %v100_v32 }
  0x42   :  { %237 = vmatmul.f32.gmra.mxu1 %v76_v46  ;;  %213 = vmatmul.f32.vlgmr.msrb.gmra.mxu0 %v68_v44 }
  0x43   :  { %432 = vxpose.xlu0.b32.cont [7/16] %v74_v39, 128  ;;  %v269_v39 = vld [vmem:[%s2354_s2 + $0x38] sm:$0xff] }
  0x49   :  { %175 = vmatmul.f32.gmra.mxu3 %v1655_v48 }
  0x4a   :  { %240 = vmatmul.f32.gmra.mxu1 %v77_v49  ;;  %216 = vmatmul.f32.gmra.mxu0 %v69_v47 }
  0x4b   :  { %433 = vxpose.xlu0.b32.cont [8/16] %v75_v42, 128 }
  0x51   :  { %178 = vmatmul.f32.gmra.mxu3 %v1667_v51 }
  0x52   :  { %243 = vmatmul.f32.gmra.mxu1 %v78_v52  ;;  %219 = vmatmul.f32.gmra.mxu0 %v70_v50 }
  0x53   :  { %434 = vxpose.xlu0.b32.cont [9/16] %v76_v46, 128 }
  0x59   :  { %181 = vmatmul.f32.gmra.mxu3 %v1679_v54 }
  0x5a   :  { %246 = vmatmul.f32.gmra.mxu1 %v79_v55  ;;  %222 = vmatmul.f32.gmra.mxu0 %v71_v53 }
  0x5b   :  { %435 = vxpose.xlu0.b32.cont [10/16] %v77_v49, 128 }
  0x61   :  { %184 = vmatmul.f32.gmra.mxu3 %v1689_v56 }
  0x62   :  { %249 = vmatmul.f32.gmra.mxu1 %v80_v57 }
  0x63   :  { %436 = vxpose.xlu0.b32.cont [11/16] %v78_v52, 128  ;;  %v262_v52 = vld [vmem:[%s2354_s2] sm:$0xff] }
  0x69   :  { %187 = vmatmul.f32.gmra.mxu3 %v1699_v58 }
  0x6a   :  { %252 = vmatmul.f32.gmra.mxu1 %v81_v59 }
  0x6b   :  { %437 = vxpose.xlu0.b32.cont [12/16] %v79_v55, 128 }
  0x71   :  { %190 = vmatmul.f32.gmra.mxu3 %v1708_v60 }
  0x72   :  { %255 = vmatmul.f32.gmra.mxu1 %v82_v61 }
  0x73   :  { %438 = vxpose.xlu0.b32.cont [13/16] %v80_v57, 128 }
  0x79   :  { %193 = vmatmul.f32.gmra.mxu3 %v1717_v62 }
  0x7a   :  { %258 = vmatmul.f32.gmra.mxu1 %v83_v63 }
  0x7b   :  { %439 = vxpose.xlu0.b32.cont [14/16] %v81_v59, 128 }
  0x83   :  { %440 = vxpose.xlu0.b32.cont [15/16] %v82_v61, 128 }
  0x8b   :  { %441 = vxpose.xlu0.b32.end [16/16] %v83_v63, 128 }
  0x9f   :  { %v226_v0 = vpop.f32.mrf.mxu1  ;;  %v149_v1 = vpop.f32.mrf.mxu0 }
  0xa4   :  { %v161_v2 = vpop.f32.mrf.mxu3 }
  0xa5   :  { %v227_v4 = vadd.f32 %v226_v0, %v161_v2  ;;  %v270_v0 = vld [vmem:[%s2354_s2 + $0x40] sm:$0xff] }
  0xa7   :  { %v282_v5 = vadd.f32 %v266_v3, %v227_v4  ;;  %v229_v6 = vpop.f32.mrf.mxu1  ;;  %v1726_v7 = vpop.f32.mrf.mxu0 }
  0xa9   :  { %vm298_vm0 = vcmp.gt.f32.partialorder %v282_v5, 0.0  ;;  %v314_v9 = vmul.f32 0.2, %v282_v5 }
  0xab   :  { %v330_v10 = vsel %vm298_vm0, %v282_v5, %v314_v9 }
  0xac   :  { %v350_v11 = vsub.f32 %v330_v10, %v1731_v8  ;;  %v164_v12 = vpop.f32.mrf.mxu3 }
  0xad   :  { %v230_v14 = vadd.f32 %v229_v6, %v164_v12  ;;  %v263_v12 = vld [vmem:[%s2354_s2 + $0x8] sm:$0xff] }
  0xae   :  { %v370_v15 = vmul.f32 1.442695, %v350_v11 }
  0xaf   :  { %v283_v16 = vadd.f32 %v267_v13, %v230_v14  ;;  %v232_v17 = vpop.f32.mrf.mxu1  ;;  %v1737_v18 = vpop.f32.mrf.mxu0 }
  0xb0   :  { %1312 = vpow2.f32 %v370_v15 }
  0xb1   :  { %vm299_vm1 = vcmp.gt.f32.partialorder %v283_v16, 0.0  ;;  %v315_v19 = vmul.f32 0.2, %v283_v16 }
  0xb3   :  { %v331_v20 = vsel %vm299_vm1, %v283_v16, %v315_v19 }
  0xb4   :  { %v351_v21 = vsub.f32 %v331_v20, %v1731_v8  ;;  %v167_v22 = vpop.f32.mrf.mxu3 }
  0xb5   :  { %v233_v24 = vadd.f32 %v232_v17, %v167_v22 }
  0xb6   :  { %v1743_v25 = vpop.eup %1312  ;;  %v372_v26 = vmul.f32 1.442695, %v351_v21  ;;  %v271_v21 = vld [vmem:[%s2354_s2 + $0x48] sm:$0xff] }
  0xb7   :  { %398 = vst [vmem:[%s2355_s8 + $0x20] sm:$0xff] %v1743_v25  ;;  %v284_v27 = vadd.f32 %v268_v23, %v233_v24  ;;  %v235_v28 = vpop.f32.mrf.mxu1  ;;  %v1749_v29 = vpop.f32.mrf.mxu0 }
  0xb8   :  { %1314 = vpow2.f32 %v372_v26 }
  0xb9   :  { %vm300_vm2 = vcmp.gt.f32.partialorder %v284_v27, 0.0  ;;  %v316_v30 = vmul.f32 0.2, %v284_v27 }
  0xbb   :  { %v332_v32 = vsel %vm300_vm2, %v284_v27, %v316_v30 }
  0xbc   :  { %v352_v33 = vsub.f32 %v332_v32, %v1731_v8  ;;  %v170_v36 = vpop.f32.mrf.mxu3 }
  0xbd   :  { %v236_v42 = vadd.f32 %v235_v28, %v170_v36 }
  0xbe   :  { %v1755_v44 = vpop.eup %1314  ;;  %v374_v46 = vmul.f32 1.442695, %v352_v33  ;;  %v264_v33 = vld [vmem:[%s2354_s2 + $0x10] sm:$0xff] }
  0xbf   :  { %399 = vst [vmem:[%s2355_s8 + $0x28] sm:$0xff] %v1755_v44  ;;  %v285_v47 = vadd.f32 %v269_v39, %v236_v42  ;;  %v238_v49 = vpop.f32.mrf.mxu1  ;;  %v214_v50 = vpop.f32.mrf.mxu0 }
  0xc0   :  { %1316 = vpow2.f32 %v374_v46  ;;  %v215_v53 = vadd.f32 %v214_v50, %v149_v1 }
  0xc1   :  { %vm301_vm3 = vcmp.gt.f32.partialorder %v285_v47, 0.0  ;;  %v317_v55 = vmul.f32 0.2, %v285_v47 }
  0xc2   :  { %v278_v57 = vadd.f32 %v262_v52, %v215_v53 }
  0xc3   :  { %v333_v59 = vsel %vm301_vm3, %v285_v47, %v317_v55 }
  0xc4   :  { %v353_v61 = vsub.f32 %v333_v59, %v1731_v8  ;;  %v173_v63 = vpop.f32.mrf.mxu3  ;;  %vm294_vm4 = vcmp.gt.f32.partialorder %v278_v57, 0.0  ;;  %v310_v2 = vmul.f32 0.2, %v278_v57 }
  0xc5   :  { %v239_v3 = vadd.f32 %v238_v49, %v173_v63 }
  0xc6   :  { %v1768_v4 = vpop.eup %1316  ;;  %v376_v5 = vmul.f32 1.442695, %v353_v61  ;;  %v326_v6 = vsel %vm294_vm4, %v278_v57, %v310_v2 }
  0xc7   :  { %400 = vst [vmem:[%s2355_s8 + $0x30] sm:$0xff] %v1768_v4  ;;  %v286_v1 = vadd.f32 %v270_v0, %v239_v3  ;;  %v241_v9 = vpop.f32.mrf.mxu1  ;;  %v346_v10 = vsub.f32 %v326_v6, %v1731_v8  ;;  %v217_v11 = vpop.f32.mrf.mxu0 }
  0xc8   :  { %1318 = vpow2.f32 %v376_v5  ;;  %v218_v13 = vadd.f32 %v217_v11, %v1726_v7  ;;  %v265_v5 = vld [vmem:[%s2354_s2 + $0x18] sm:$0xff] }
  0xc9   :  { %vm302_vm5 = vcmp.gt.f32.partialorder %v286_v1, 0.0  ;;  %v318_v14 = vmul.f32 0.2, %v286_v1  ;;  %v362_v15 = vmul.f32 1.442695, %v346_v10 }
  0xca   :  { %v279_v16 = vadd.f32 %v263_v12, %v218_v13 }
  0xcb   :  { %v334_v17 = vsel %vm302_vm5, %v286_v1, %v318_v14  ;;  %1320 = vpow2.f32 %v362_v15 }
  0xcc   :  { %v354_v19 = vsub.f32 %v334_v17, %v1731_v8  ;;  %v176_v20 = vpop.f32.mrf.mxu3  ;;  %vm295_vm6 = vcmp.gt.f32.partialorder %v279_v16, 0.0  ;;  %v311_v22 = vmul.f32 0.2, %v279_v16 }
  0xcd   :  { %v242_v23 = vadd.f32 %v241_v9, %v176_v20 }
  0xce   :  { %v1783_v24 = vpop.eup %1318  ;;  %v378_v26 = vmul.f32 1.442695, %v354_v19  ;;  %v327_v7 = vsel %vm295_vm6, %v279_v16, %v311_v22 }
  0xcf   :  { %401 = vst [vmem:[%s2355_s8 + $0x38] sm:$0xff] %v1783_v24  ;;  %v287_v27 = vadd.f32 %v271_v21, %v242_v23  ;;  %v244_v28 = vpop.f32.mrf.mxu1  ;;  %v347_v30 = vsub.f32 %v327_v7, %v1731_v8  ;;  %v220_v32 = vpop.f32.mrf.mxu0 }
  0xd0   :  { %1322 = vpow2.f32 %v378_v26  ;;  %v221_v36 = vadd.f32 %v220_v32, %v1737_v18  ;;  %v272_v18 = vld [vmem:[%s2354_s2 + $0x50] sm:$0xff] }
  0xd1   :  { %v1794_v39 = vpop.eup %1320  ;;  %vm303_vm7 = vcmp.gt.f32.partialorder %v287_v27, 0.0  ;;  %v319_v42 = vmul.f32 0.2, %v287_v27  ;;  %v364_v46 = vmul.f32 1.442695, %v347_v30 }
  0xd2   :  { %394 = vst [vmem:[%s2355_s8] sm:$0xff] %v1794_v39  ;;  %v280_v47 = vadd.f32 %v264_v33, %v221_v36  ;;  %v274_v33 = vld [vmem:[%s2354_s2 + $0x60] sm:$0xff] }
  0xd3   :  { %v335_v49 = vsel %vm303_vm7, %v287_v27, %v319_v42  ;;  %1324 = vpow2.f32 %v364_v46 }
  0xd4   :  { %v355_v50 = vsub.f32 %v335_v49, %v1731_v8  ;;  %v179_v52 = vpop.f32.mrf.mxu3  ;;  %vm296_vm8 = vcmp.gt.f32.partialorder %v280_v47, 0.0  ;;  %v312_v53 = vmul.f32 0.2, %v280_v47 }
  0xd5   :  { %v245_v55 = vadd.f32 %v244_v28, %v179_v52 }
  0xd6   :  { %v1804_v57 = vpop.eup %1322  ;;  %v380_v59 = vmul.f32 1.442695, %v355_v50  ;;  %v328_v61 = vsel %vm296_vm8, %v280_v47, %v312_v53 }
  0xd7   :  { %402 = vst [vmem:[%s2355_s8 + $0x40] sm:$0xff] %v1804_v57  ;;  %v288_v63 = vadd.f32 %v272_v18, %v245_v55  ;;  %v247_v0 = vpop.f32.mrf.mxu1  ;;  %v348_v2 = vsub.f32 %v328_v61, %v1731_v8  ;;  %v223_v3 = vpop.f32.mrf.mxu0 }
  0xd8   :  { %1326 = vpow2.f32 %v380_v59  ;;  %v224_v6 = vadd.f32 %v223_v3, %v1749_v29  ;;  %v273_v29 = vld [vmem:[%s2354_s2 + $0x58] sm:$0xff]  ;;  %v275_v59 = vld [vmem:[%s2354_s2 + $0x68] sm:$0xff] }
  0xd9   :  { %v1815_v1 = vpop.eup %1324  ;;  %vm304_vm9 = vcmp.gt.f32.partialorder %v288_v63, 0.0  ;;  %v320_v9 = vmul.f32 0.2, %v288_v63  ;;  %v366_v10 = vmul.f32 1.442695, %v348_v2 }
  0xda   :  { %395 = vst [vmem:[%s2355_s8 + $0x8] sm:$0xff] %v1815_v1  ;;  %v281_v11 = vadd.f32 %v265_v5, %v224_v6 }
  0xdb   :  { %v336_v12 = vsel %vm304_vm9, %v288_v63, %v320_v9  ;;  %1328 = vpow2.f32 %v366_v10 }
  0xdc   :  { %v356_v13 = vsub.f32 %v336_v12, %v1731_v8  ;;  %v182_v14 = vpop.f32.mrf.mxu3  ;;  %vm297_vm10 = vcmp.gt.f32.partialorder %v281_v11, 0.0  ;;  %v313_v15 = vmul.f32 0.2, %v281_v11 }
  0xdd   :  { %v248_v16 = vadd.f32 %v247_v0, %v182_v14 }
  0xde   :  { %v1825_v17 = vpop.eup %1326  ;;  %v382_v19 = vmul.f32 1.442695, %v356_v13  ;;  %v329_v20 = vsel %vm297_vm10, %v281_v11, %v313_v15  ;;  %v276_v11 = vld [vmem:[%s2354_s2 + $0x70] sm:$0xff] }
  0xdf   :  { %403 = vst [vmem:[%s2355_s8 + $0x48] sm:$0xff] %v1825_v17  ;;  %v289_v21 = vadd.f32 %v273_v29, %v248_v16  ;;  %v250_v22 = vpop.f32.mrf.mxu1  ;;  %v349_v23 = vsub.f32 %v329_v20, %v1731_v8 }
  0xe0   :  { %1330 = vpow2.f32 %v382_v19 }
  0xe1   :  { %v1832_v26 = vpop.eup %1328  ;;  %vm305_vm11 = vcmp.gt.f32.partialorder %v289_v21, 0.0  ;;  %v321_v7 = vmul.f32 0.2, %v289_v21  ;;  %v368_v27 = vmul.f32 1.442695, %v349_v23 }
  0xe2   :  { %396 = vst [vmem:[%s2355_s8 + $0x10] sm:$0xff] %v1832_v26 }
  0xe3   :  { %v337_v28 = vsel %vm305_vm11, %v289_v21, %v321_v7  ;;  %1332 = vpow2.f32 %v368_v27 }
  0xe4   :  { %v357_v30 = vsub.f32 %v337_v28, %v1731_v8  ;;  %v185_v32 = vpop.f32.mrf.mxu3 }
  0xe5   :  { %v251_v36 = vadd.f32 %v250_v22, %v185_v32  ;;  %v277_v22 = vld [vmem:[%s2354_s2 + $0x78] sm:$0xff] }
  0xe6   :  { %v1842_v42 = vpop.eup %1330  ;;  %v384_v46 = vmul.f32 1.442695, %v357_v30 }
  0xe7   :  { %404 = vst [vmem:[%s2355_s8 + $0x50] sm:$0xff] %v1842_v42  ;;  %v290_v47 = vadd.f32 %v274_v33, %v251_v36  ;;  %v253_v49 = vpop.f32.mrf.mxu1 }
  0xe8   :  { %1334 = vpow2.f32 %v384_v46 }
  0xe9   :  { %v1848_v50 = vpop.eup %1332  ;;  %vm306_vm12 = vcmp.gt.f32.partialorder %v290_v47, 0.0  ;;  %v322_v52 = vmul.f32 0.2, %v290_v47 }
  0xea   :  { %397 = vst [vmem:[%s2355_s8 + $0x18] sm:$0xff] %v1848_v50 }
  0xeb   :  { %v338_v18 = vsel %vm306_vm12, %v290_v47, %v322_v52  ;;  %v570_v47 = vld [vmem:[%s2356_s5 + $0x78] sm:$0xff]  ;;  %v568_v52 = vld [vmem:[%s2356_s5 + $0x68] sm:$0xff] }
  0xec   :  { %v358_v53 = vsub.f32 %v338_v18, %v1731_v8  ;;  %v188_v55 = vpop.f32.mrf.mxu3  ;;  %571 = vmatpush.msrb.mxu3 %v570_v47  ;;  %v639_v47 = vld [vmem:[%s2357_s7 + $0x18] sm:$0xff] }
  0xed   :  { %v254_v61 = vadd.f32 %v253_v49, %v188_v55  ;;  %v569_v49 = vld [vmem:[%s2356_s5 + $0x70] sm:$0xff]  ;;  %v566_v55 = vld [vmem:[%s2356_s5 + $0x58] sm:$0xff] }
  0xee   :  { %v1858_v63 = vpop.eup %1334  ;;  %v386_v0 = vmul.f32 1.442695, %v358_v53  ;;  %572 = vmatpush.msrb.mxu3 %v569_v49  ;;  %v567_v53 = vld [vmem:[%s2356_s5 + $0x60] sm:$0xff] }
  0xef   :  { %405 = vst [vmem:[%s2355_s8 + $0x58] sm:$0xff] %v1858_v63  ;;  %v291_v2 = vadd.f32 %v275_v59, %v254_v61  ;;  %v256_v3 = vpop.f32.mrf.mxu1  ;;  %v565_v59 = vld [vmem:[%s2356_s5 + $0x50] sm:$0xff] }
  0xf0   :  { %1336 = vpow2.f32 %v386_v0  ;;  %573 = vmatpush.msrb.mxu3 %v568_v52  ;;  %v564_v0 = vld [vmem:[%s2356_s5 + $0x48] sm:$0xff]  ;;  %v638_v52 = vld [vmem:[%s2357_s7 + $0x10] sm:$0xff] }
  0xf1   :  { %vm307_vm13 = vcmp.gt.f32.partialorder %v291_v2, 0.0  ;;  %v323_v5 = vmul.f32 0.2, %v291_v2 }
  0xf2   :  { %574 = vmatpush.msrb.mxu3 %v567_v53  ;;  %v636_v53 = vld [vmem:[%s2357_s7] sm:$0xff] }
  0xf3   :  { %v339_v6 = vsel %vm307_vm13, %v291_v2, %v323_v5  ;;  %v563_v2 = vld [vmem:[%s2356_s5 + $0x40] sm:$0xff]  ;;  %v561_v5 = vld [vmem:[%s2356_s5 + $0x30] sm:$0xff] }
  0xf4   :  { %v359_v9 = vsub.f32 %v339_v6, %v1731_v8  ;;  %v191_v10 = vpop.f32.mrf.mxu3  ;;  %575 = vmatpush.msrb.mxu3 %v566_v55 }
  0xf5   :  { %v257_v12 = vadd.f32 %v256_v3, %v191_v10  ;;  %v562_v3 = vld [vmem:[%s2356_s5 + $0x38] sm:$0xff]  ;;  %v559_v10 = vld [vmem:[%s2356_s5 + $0x20] sm:$0xff] }
  0xf6   :  { %v1868_v13 = vpop.eup %1336  ;;  %v388_v14 = vmul.f32 1.442695, %v359_v9  ;;  %576 = vmatpush.msrb.mxu3 %v565_v59  ;;  %v560_v9 = vld [vmem:[%s2356_s5 + $0x28] sm:$0xff] }
  0xf7   :  { %406 = vst [vmem:[%s2355_s8 + $0x60] sm:$0xff] %v1868_v13  ;;  %v292_v29 = vadd.f32 %v276_v11, %v257_v12  ;;  %v259_v16 = vpop.f32.mrf.mxu1  ;;  %v558_v11 = vld [vmem:[%s2356_s5 + $0x18] sm:$0xff]  ;;  %v557_v12 = vld [vmem:[%s2356_s5 + $0x10] sm:$0xff] }
  0xf8   :  { %1338 = vpow2.f32 %v388_v14  ;;  %577 = vmatpush.msrb.mxu3 %v564_v0 }
  0xf9   :  { %vm308_vm14 = vcmp.gt.f32.partialorder %v292_v29, 0.0  ;;  %v324_v15 = vmul.f32 0.2, %v292_v29 }
  0xfa   :  { %578 = vmatpush.msrb.mxu3 %v563_v2 }
  0xfb   :  { %v340_v19 = vsel %vm308_vm14, %v292_v29, %v324_v15  ;;  %v556_v29 = vld [vmem:[%s2356_s5 + $0x8] sm:$0xff]  ;;  %v555_v15 = vld [vmem:[%s2356_s5] sm:$0xff] }
  0xfc   :  { %v360_v20 = vsub.f32 %v340_v19, %v1731_v8  ;;  %v194_v21 = vpop.f32.mrf.mxu3  ;;  %579 = vmatpush.msrb.mxu3 %v562_v3 }
  0xfd   :  { %v260_v23 = vadd.f32 %v259_v16, %v194_v21  ;;  %v651_v16 = vld [vmem:[%s2357_s7 + $0x78] sm:$0xff]  ;;  %v648_v21 = vld [vmem:[%s2357_s7 + $0x60] sm:$0xff] }
  0xfe   :  { %v1878_v7 = vpop.eup %1338  ;;  %v390_v27 = vmul.f32 1.442695, %v360_v20  ;;  %580 = vmatpush.msrb.mxu3 %v561_v5  ;;  %v649_v20 = vld [vmem:[%s2357_s7 + $0x68] sm:$0xff] }
  0xff   :  { %407 = vst [vmem:[%s2355_s8 + $0x68] sm:$0xff] %v1878_v7  ;;  %v293_v28 = vadd.f32 %v277_v22, %v260_v23  ;;  %v647_v22 = vld [vmem:[%s2357_s7 + $0x58] sm:$0xff] }
 0x100   :  { %1340 = vpow2.f32 %v390_v27  ;;  %581 = vmatpush.msrb.mxu3 %v560_v9  ;;  %v646_v27 = vld [vmem:[%s2357_s7 + $0x50] sm:$0xff] }
 0x101   :  { %vm309_vm15 = vcmp.gt.f32.partialorder %v293_v28, 0.0  ;;  %v325_v30 = vmul.f32 0.2, %v293_v28 }
 0x102   :  { %582 = vmatpush.msrb.mxu3 %v559_v10 }
 0x103   :  { %v341_v32 = vsel %vm309_vm15, %v293_v28, %v325_v30  ;;  %v644_v28 = vld [vmem:[%s2357_s7 + $0x40] sm:$0xff]  ;;  %v643_v30 = vld [vmem:[%s2357_s7 + $0x38] sm:$0xff] }
 0x104   :  { %v361_v33 = vsub.f32 %v341_v32, %v1731_v8  ;;  %v1897_v8 = vpop.trf.xlu0  ;;  %583 = vmatpush.msrb.mxu3 %v558_v11 }
 0x106   :  { %v1885_v36 = vpop.eup %1340  ;;  %v392_v46 = vmul.f32 1.442695, %v361_v33  ;;  %584 = vmatpush.msrb.mxu3 %v557_v12  ;;  %v642_v33 = vld [vmem:[%s2357_s7 + $0x30] sm:$0xff] }
 0x107   :  { %408 = vst [vmem:[%s2355_s8 + $0x70] sm:$0xff] %v1885_v36 }
 0x108   :  { %1342 = vpow2.f32 %v392_v46  ;;  %585 = vmatpush.msrb.mxu3 %v556_v29  ;;  %v640_v46 = vld [vmem:[%s2357_s7 + $0x20] sm:$0xff] }
 0x10a   :  { %586 = vmatpush.msrb.mxu3 %v555_v15 }
 0x10b   :  { %587 = vmatmul.f32.vlgmr.msrb.gmra.mxu3 %v1573_v34  ;;  %v650_v34 = vld [vmem:[%s2357_s7 + $0x70] sm:$0xff] }
 0x10c   :  { %v1923_v61 = vpop.trf.xlu0 }
 0x10e   :  { %v1902_v18 = vpop.eup %1342 }
 0x10f   :  { %409 = vst [vmem:[%s2355_s8 + $0x78] sm:$0xff] %v1902_v18  ;;  %458 = vmatpush.msra.mxu0 %v1902_v18  ;;  %1294 = vmatpush.msra.mxu2 %v1902_v18 }
 0x111   :  { %459 = vmatpush.msra.mxu0 %v1885_v36  ;;  %1295 = vmatpush.msra.mxu2 %v1885_v36 }
 0x113   :  { %460 = vmatpush.msra.mxu0 %v1878_v7  ;;  %1296 = vmatpush.msra.mxu2 %v1878_v7 }
 0x114   :  { %v1945_v6 = vpop.trf.xlu0  ;;  %590 = vmatmul.f32.gmra.mxu3 %v1594_v37  ;;  %v645_v37 = vld [vmem:[%s2357_s7 + $0x48] sm:$0xff] }
 0x115   :  { %461 = vmatpush.msra.mxu0 %v1868_v13  ;;  %1297 = vmatpush.msra.mxu2 %v1868_v13 }
 0x117   :  { %462 = vmatpush.msra.mxu0 %v1858_v63  ;;  %1298 = vmatpush.msra.mxu2 %v1858_v63 }
 0x119   :  { %463 = vmatpush.msra.mxu0 %v1842_v42  ;;  %1299 = vmatpush.msra.mxu2 %v1842_v42 }
 0x11b   :  { %464 = vmatpush.msra.mxu0 %v1825_v17  ;;  %1300 = vmatpush.msra.mxu2 %v1825_v17 }
 0x11c   :  { %v1967_v14 = vpop.trf.xlu0  ;;  %593 = vmatmul.f32.gmra.mxu3 %v1614_v40  ;;  %v641_v40 = vld [vmem:[%s2357_s7 + $0x28] sm:$0xff] }
 0x11d   :  { %465 = vmatpush.msra.mxu0 %v1804_v57  ;;  %1301 = vmatpush.msra.mxu2 %v1804_v57 }
 0x11f   :  { %466 = vmatpush.msra.mxu0 %v1783_v24  ;;  %1302 = vmatpush.msra.mxu2 %v1783_v24 }
 0x121   :  { %467 = vmatpush.msra.mxu0 %v1768_v4  ;;  %1303 = vmatpush.msra.mxu2 %v1768_v4 }
 0x123   :  { %468 = vmatpush.msra.mxu0 %v1755_v44  ;;  %1304 = vmatpush.msra.mxu2 %v1755_v44 }
 0x124   :  { %v1989_v19 = vpop.trf.xlu0  ;;  %596 = vmatmul.f32.gmra.mxu3 %v1633_v43  ;;  %v637_v43 = vld [vmem:[%s2357_s7 + $0x8] sm:$0xff] }
 0x125   :  { %469 = vmatpush.msra.mxu0 %v1743_v25  ;;  %1305 = vmatpush.msra.mxu2 %v1743_v25 }
 0x127   :  { %470 = vmatpush.msra.mxu0 %v1848_v50  ;;  %1306 = vmatpush.msra.mxu2 %v1848_v50 }
 0x129   :  { %471 = vmatpush.msra.mxu0 %v1832_v26  ;;  %1307 = vmatpush.msra.mxu2 %v1832_v26 }
 0x12b   :  { %472 = vmatpush.msra.mxu0 %v1815_v1  ;;  %1308 = vmatpush.msra.mxu2 %v1815_v1 }
 0x12c   :  { %v2006_v23 = vpop.trf.xlu0  ;;  %599 = vmatmul.f32.gmra.mxu3 %v1560_v31 }
 0x12d   :  { %473 = vmatpush.msra.mxu0 %v1794_v39  ;;  %1309 = vmatpush.msra.mxu2 %v1794_v39 }
 0x12e   :  { %474 = vmatmul.f32.vlgmr.msra.gmra.mxu0 %v1897_v8  ;;  %486 = vmatmul.f32.vlgmr.msra.gmra.mxu2 %v1989_v19 }
 0x12f   :  { %652 = vmatpush.msrb.mxu0 %v651_v16  ;;  %881 = vmatpush.msrb.mxu2 %v651_v16 }
 0x131   :  { %653 = vmatpush.msrb.mxu0 %v650_v34  ;;  %882 = vmatpush.msrb.mxu2 %v650_v34 }
 0x133   :  { %654 = vmatpush.msrb.mxu0 %v649_v20  ;;  %883 = vmatpush.msrb.mxu2 %v649_v20 }
 0x134   :  { %v2023_v32 = vpop.trf.xlu0  ;;  %602 = vmatmul.f32.gmra.mxu3 %v1583_v35 }
 0x135   :  { %655 = vmatpush.msrb.mxu0 %v648_v21  ;;  %884 = vmatpush.msrb.mxu2 %v648_v21 }
 0x136   :  { %477 = vmatmul.f32.gmra.mxu0 %v1923_v61  ;;  %489 = vmatmul.f32.gmra.mxu2 %v2006_v23 }
 0x137   :  { %656 = vmatpush.msrb.mxu0 %v647_v22  ;;  %885 = vmatpush.msrb.mxu2 %v647_v22 }
 0x139   :  { %657 = vmatpush.msrb.mxu0 %v646_v27  ;;  %886 = vmatpush.msrb.mxu2 %v646_v27 }
 0x13b   :  { %658 = vmatpush.msrb.mxu0 %v645_v37  ;;  %887 = vmatpush.msrb.mxu2 %v645_v37 }
 0x13c   :  { %v2040_v49 = vpop.trf.xlu0  ;;  %605 = vmatmul.f32.gmra.mxu3 %v1605_v38 }
 0x13d   :  { %659 = vmatpush.msrb.mxu0 %v644_v28  ;;  %888 = vmatpush.msrb.mxu2 %v644_v28 }
 0x13e   :  { %480 = vmatmul.f32.gmra.mxu0 %v1945_v6  ;;  %492 = vmatmul.f32.gmra.mxu2 %v2023_v32 }
 0x13f   :  { %660 = vmatpush.msrb.mxu0 %v643_v30  ;;  %889 = vmatpush.msrb.mxu2 %v643_v30 }
 0x141   :  { %661 = vmatpush.msrb.mxu0 %v642_v33  ;;  %890 = vmatpush.msrb.mxu2 %v642_v33 }
 0x143   :  { %662 = vmatpush.msrb.mxu0 %v641_v40  ;;  %891 = vmatpush.msrb.mxu2 %v641_v40 }
 0x144   :  { %v2054_v55 = vpop.trf.xlu0  ;;  %608 = vmatmul.f32.gmra.mxu3 %v1624_v41 }
 0x145   :  { %663 = vmatpush.msrb.mxu0 %v640_v46  ;;  %892 = vmatpush.msrb.mxu2 %v640_v46 }
 0x146   :  { %483 = vmatmul.f32.gmra.mxu0 %v1967_v14  ;;  %495 = vmatmul.f32.gmra.mxu2 %v2040_v49 }
 0x147   :  { %664 = vmatpush.msrb.mxu0 %v639_v47  ;;  %893 = vmatpush.msrb.mxu2 %v639_v47 }
 0x149   :  { %665 = vmatpush.msrb.mxu0 %v638_v52  ;;  %894 = vmatpush.msrb.mxu2 %v638_v52 }
 0x14b   :  { %666 = vmatpush.msrb.mxu0 %v637_v43  ;;  %895 = vmatpush.msrb.mxu2 %v637_v43 }
 0x14c   :  { %v2059_v59 = vpop.trf.xlu0  ;;  %611 = vmatmul.f32.gmra.mxu3 %v1643_v45 }
 0x14d   :  { %667 = vmatpush.msrb.mxu0 %v636_v53  ;;  %896 = vmatpush.msrb.mxu2 %v636_v53 }
 0x14e   :  { %668 = vmatmul.f32.vlgmr.msrb.gmra.mxu0 %v1794_v39  ;;  %498 = vmatmul.f32.gmra.mxu2 %v2054_v55 }
 0x154   :  { %v2064_v31 = vpop.trf.xlu0  ;;  %614 = vmatmul.f32.gmra.mxu3 %v1655_v48 }
 0x156   :  { %671 = vmatmul.f32.gmra.mxu0 %v1815_v1  ;;  %501 = vmatmul.f32.gmra.mxu2 %v2059_v59 }
 0x15c   :  { %v2069_v39 = vpop.trf.xlu0  ;;  %617 = vmatmul.f32.gmra.mxu3 %v1667_v51 }
 0x15e   :  { %674 = vmatmul.f32.gmra.mxu0 %v1832_v26  ;;  %504 = vmatmul.f32.gmra.mxu2 %v2064_v31 }
 0x164   :  { %v2074_v35 = vpop.trf.xlu0  ;;  %620 = vmatmul.f32.gmra.mxu3 %v1679_v54 }
 0x166   :  { %677 = vmatmul.f32.gmra.mxu0 %v1848_v50  ;;  %507 = vmatmul.f32.gmra.mxu2 %v2069_v39 }
 0x16c   :  { %v2079_v38 = vpop.trf.xlu0  ;;  %623 = vmatmul.f32.gmra.mxu3 %v1689_v56 }
 0x16e   :  { %680 = vmatmul.f32.gmra.mxu0 %v1743_v25  ;;  %510 = vmatmul.f32.gmra.mxu2 %v2074_v35 }
 0x174   :  { %v2084_v41 = vpop.trf.xlu0  ;;  %626 = vmatmul.f32.gmra.mxu3 %v1699_v58 }
 0x176   :  { %683 = vmatmul.f32.gmra.mxu0 %v1755_v44  ;;  %513 = vmatmul.f32.gmra.mxu2 %v2079_v38 }
 0x17c   :  { %v2089_v45 = vpop.trf.xlu0  ;;  %629 = vmatmul.f32.gmra.mxu3 %v1708_v60 }
 0x17e   :  { %686 = vmatmul.f32.gmra.mxu0 %v1768_v4  ;;  %516 = vmatmul.f32.gmra.mxu2 %v2084_v41 }
 0x184   :  { %632 = vmatmul.f32.gmra.mxu3 %v1717_v62 }
 0x186   :  { %689 = vmatmul.f32.gmra.mxu0 %v1783_v24  ;;  %519 = vmatmul.f32.gmra.mxu2 %v2089_v45 }
 0x18e   :  { %692 = vmatmul.f32.gmra.mxu0 %v1804_v57  ;;  %v588_v51 = vpop.f32.mrf.mxu3 }
 0x196   :  { %695 = vmatmul.f32.gmra.mxu0 %v1825_v17 }
 0x197   :  { %v591_v58 = vpop.f32.mrf.mxu3 }
 0x19e   :  { %698 = vmatmul.f32.gmra.mxu0 %v1842_v42 }
 0x19f   :  { %v594_v25 = vpop.f32.mrf.mxu3 }
 0x1a6   :  { %701 = vmatmul.f32.gmra.mxu0 %v1858_v63 }
 0x1a7   :  { %v597_v24 = vpop.f32.mrf.mxu3 }
 0x1ab   :  { %v475_v48 = vpop.f32.mrf.mxu0 }
 0x1ac   :  { %539 = vst [vmem:[%s2358_s9] sm:$0xff] %v475_v48  ;;  %897 = vmatmul.f32.vlgmr.msrb.gmra.mxu2 %v475_v48 }
 0x1ae   :  { %704 = vmatmul.f32.gmra.mxu0 %v1868_v13 }
 0x1af   :  { %v600_v50 = vpop.f32.mrf.mxu3 }
 0x1b1   :  { %v487_v54 = vpop.f32.mrf.mxu2 }
 0x1b2   :  { %543 = vst [vmem:[%s2358_s9 + $0x20] sm:$0xff] %v487_v54 }
 0x1b3   :  { %v478_v56 = vpop.f32.mrf.mxu0 }
 0x1b4   :  { %540 = vst [vmem:[%s2358_s9 + $0x8] sm:$0xff] %v478_v56  ;;  %900 = vmatmul.f32.gmra.mxu2 %v478_v56 }
 0x1b6   :  { %707 = vmatmul.f32.gmra.mxu0 %v1878_v7 }
 0x1b9   :  { %v490_v60 = vpop.f32.mrf.mxu2 }
 0x1ba   :  { %544 = vst [vmem:[%s2358_s9 + $0x28] sm:$0xff] %v490_v60 }
 0x1bb   :  { %v481_v62 = vpop.f32.mrf.mxu0 }
 0x1bc   :  { %541 = vst [vmem:[%s2358_s9 + $0x10] sm:$0xff] %v481_v62  ;;  %903 = vmatmul.f32.gmra.mxu2 %v481_v62 }
 0x1be   :  { %710 = vmatmul.f32.gmra.mxu0 %v1885_v36 }
 0x1c1   :  { %v493_v44 = vpop.f32.mrf.mxu2 }
 0x1c2   :  { %545 = vst [vmem:[%s2358_s9 + $0x30] sm:$0xff] %v493_v44 }
 0x1c3   :  { %v484_v4 = vpop.f32.mrf.mxu0 }
 0x1c4   :  { %542 = vst [vmem:[%s2358_s9 + $0x18] sm:$0xff] %v484_v4  ;;  %906 = vmatmul.f32.gmra.mxu2 %v484_v4 }
 0x1c6   :  { %713 = vmatmul.f32.gmra.mxu0 %v1902_v18  ;;  %v603_v18 = vpop.f32.mrf.mxu3 }
 0x1c9   :  { %v496_v57 = vpop.f32.mrf.mxu2 }
 0x1ca   :  { %546 = vst [vmem:[%s2358_s9 + $0x38] sm:$0xff] %v496_v57 }
 0x1cb   :  { %v669_v1 = vpop.f32.mrf.mxu0 }
 0x1cc   :  { %v2126_v17 = vmul.f32 %v669_v1, %v588_v51  ;;  %909 = vmatmul.f32.gmra.mxu2 %v487_v54 }
 0x1ce   :  { %v606_v5 = vpop.f32.mrf.mxu3 }
 0x1d1   :  { %v499_v26 = vpop.f32.mrf.mxu2 }
 0x1d2   :  { %547 = vst [vmem:[%s2358_s9 + $0x40] sm:$0xff] %v499_v26 }
 0x1d3   :  { %v672_v42 = vpop.f32.mrf.mxu0 }
 0x1d4   :  { %v2131_v63 = vmul.f32 %v672_v42, %v591_v58  ;;  %912 = vmatmul.f32.gmra.mxu2 %v490_v60 }
 0x1d6   :  { %v609_v12 = vpop.f32.mrf.mxu3 }
 0x1d9   :  { %v502_v13 = vpop.f32.mrf.mxu2 }
 0x1da   :  { %548 = vst [vmem:[%s2358_s9 + $0x48] sm:$0xff] %v502_v13 }
 0x1db   :  { %v675_v7 = vpop.f32.mrf.mxu0 }
 0x1dc   :  { %v2136_v36 = vmul.f32 %v675_v7, %v594_v25  ;;  %915 = vmatmul.f32.gmra.mxu2 %v493_v44 }
 0x1de   :  { %v612_v21 = vpop.f32.mrf.mxu3 }
 0x1e1   :  { %v505_v0 = vpop.f32.mrf.mxu2 }
 0x1e2   :  { %549 = vst [vmem:[%s2358_s9 + $0x50] sm:$0xff] %v505_v0 }
 0x1e3   :  { %v678_v2 = vpop.f32.mrf.mxu0 }
 0x1e4   :  { %v2141_v3 = vmul.f32 %v678_v2, %v597_v24  ;;  %918 = vmatmul.f32.gmra.mxu2 %v496_v57 }
 0x1e6   :  { %v615_v30 = vpop.f32.mrf.mxu3 }
 0x1e9   :  { %v508_v9 = vpop.f32.mrf.mxu2 }
 0x1ea   :  { %550 = vst [vmem:[%s2358_s9 + $0x58] sm:$0xff] %v508_v9 }
 0x1eb   :  { %v681_v10 = vpop.f32.mrf.mxu0 }
 0x1ec   :  { %v737_v11 = vmul.f32 %v681_v10, %v600_v50  ;;  %921 = vmatmul.f32.gmra.mxu2 %v499_v26 }
 0x1ee   :  { %v618_v47 = vpop.f32.mrf.mxu3 }
 0x1f1   :  { %v511_v29 = vpop.f32.mrf.mxu2 }
 0x1f2   :  { %551 = vst [vmem:[%s2358_s9 + $0x60] sm:$0xff] %v511_v29 }
 0x1f3   :  { %v684_v15 = vpop.f32.mrf.mxu0 }
 0x1f4   :  { %v738_v16 = vmul.f32 %v684_v15, %v603_v18  ;;  %924 = vmatmul.f32.gmra.mxu2 %v502_v13 }
 0x1f6   :  { %v621_v43 = vpop.f32.mrf.mxu3 }
 0x1f9   :  { %v514_v34 = vpop.f32.mrf.mxu2 }
 0x1fa   :  { %552 = vst [vmem:[%s2358_s9 + $0x68] sm:$0xff] %v514_v34 }
 0x1fb   :  { %v687_v20 = vpop.f32.mrf.mxu0 }
 0x1fc   :  { %v739_v22 = vmul.f32 %v687_v20, %v606_v5  ;;  %927 = vmatmul.f32.gmra.mxu2 %v505_v0 }
 0x1fe   :  { %v624_v51 = vpop.f32.mrf.mxu3 }
 0x201   :  { %v517_v27 = vpop.f32.mrf.mxu2 }
 0x202   :  { %553 = vst [vmem:[%s2358_s9 + $0x70] sm:$0xff] %v517_v27 }
 0x203   :  { %v690_v37 = vpop.f32.mrf.mxu0 }
 0x204   :  { %v740_v28 = vmul.f32 %v690_v37, %v609_v12  ;;  %930 = vmatmul.f32.gmra.mxu2 %v508_v9 }
 0x206   :  { %v627_v56 = vpop.f32.mrf.mxu3 }
 0x209   :  { %v520_v40 = vpop.f32.mrf.mxu2 }
 0x20a   :  { %554 = vst [vmem:[%s2358_s9 + $0x78] sm:$0xff] %v520_v40 }
 0x20b   :  { %v693_v33 = vpop.f32.mrf.mxu0 }
 0x20c   :  { %v741_v46 = vmul.f32 %v693_v33, %v612_v21  ;;  %933 = vmatmul.f32.gmra.mxu2 %v511_v29 }
 0x20e   :  { %v630_v60 = vpop.f32.mrf.mxu3 }
 0x213   :  { %v696_v52 = vpop.f32.mrf.mxu0 }
 0x214   :  { %936 = vmatmul.f32.gmra.mxu2 %v514_v34  ;;  %v742_v50 = vmul.f32 %v696_v52, %v615_v30 }
 0x216   :  { %v633_v25 = vpop.f32.mrf.mxu3 }
 0x21b   :  { %v699_v53 = vpop.f32.mrf.mxu0 }
 0x21c   :  { %939 = vmatmul.f32.gmra.mxu2 %v517_v27  ;;  %v743_v42 = vmul.f32 %v699_v53, %v618_v47 }
 0x223   :  { %v702_v48 = vpop.f32.mrf.mxu0 }
 0x224   :  { %942 = vmatmul.f32.gmra.mxu2 %v520_v40  ;;  %v744_v26 = vmul.f32 %v702_v48, %v621_v43 }
 0x22b   :  { %v705_v54 = vpop.f32.mrf.mxu0 }
 0x22c   :  { %v745_v1 = vmul.f32 %v705_v54, %v624_v51 }
 0x233   :  { %v708_v58 = vpop.f32.mrf.mxu0 }
 0x234   :  { %v746_v57 = vmul.f32 %v708_v58, %v627_v56 }
 0x23b   :  { %v711_v62 = vpop.f32.mrf.mxu0 }
 0x23c   :  { %v747_v24 = vmul.f32 %v711_v62, %v630_v60 }
 0x243   :  { %v714_v44 = vpop.f32.mrf.mxu0 }
 0x244   :  { %v748_v4 = vmul.f32 %v714_v44, %v633_v25 }
 0x246   :  { %749 = vmatpush.msrb.mxu1 %v748_v4 }
 0x248   :  { %750 = vmatpush.msrb.mxu1 %v747_v24 }
 0x24a   :  { %751 = vmatpush.msrb.mxu1 %v746_v57 }
 0x24c   :  { %752 = vmatpush.msrb.mxu1 %v745_v1 }
 0x24e   :  { %753 = vmatpush.msrb.mxu1 %v744_v26 }
 0x250   :  { %754 = vmatpush.msrb.mxu1 %v743_v42 }
 0x252   :  { %755 = vmatpush.msrb.mxu1 %v742_v50 }
 0x254   :  { %756 = vmatpush.msrb.mxu1 %v741_v46 }
 0x256   :  { %757 = vmatpush.msrb.mxu1 %v740_v28 }
 0x258   :  { %758 = vmatpush.msrb.mxu1 %v739_v22 }
 0x25a   :  { %759 = vmatpush.msrb.mxu1 %v738_v16 }
 0x25c   :  { %760 = vmatpush.msrb.mxu1 %v737_v11 }
 0x25e   :  { %761 = vmatpush.msrb.mxu1 %v2141_v3 }
 0x260   :  { %762 = vmatpush.msrb.mxu1 %v2136_v36 }
 0x262   :  { %763 = vmatpush.msrb.mxu1 %v2131_v63  ;;  %v898_v63 = vpop.f32.mrf.mxu2 }
 0x263   :  { %1344 = vrcp.f32 %v898_v63  ;;  %vm983_vm1 = vweird.f32 %v898_v63  ;;  %v987_v13 = vand.u32 2147483647, %v898_v63  ;;  %vm946_vm5 = vcmp.gt.f32.partialorder %v898_v63, 0.0 }
 0x264   :  { %764 = vmatpush.msrb.mxu1 %v2126_v17  ;;  %v989_v17 = vand.u32 2147483648, %v898_v63 }
 0x265   :  { %765 = vmatmul.f32.vlgmr.msrb.gmra.mxu1 %v1897_v8  ;;  %vm988_vm3 = vcmp.eq.f32.partialorder %v987_v13, 8.507059e+37 }
 0x266   :  { %v990_v18 = vor.u32 1.1754944e-38, %v989_v17 }
 0x26a   :  { %v2175_v8 = vpop.f32.mrf.mxu2 }
 0x26b   :  { %1346 = vrcp.f32 %v2175_v8  ;;  %v1004_v11 = vand.u32 2147483648, %v2175_v8  ;;  %vm998_vm6 = vweird.f32 %v2175_v8  ;;  %v1002_v12 = vand.u32 2147483647, %v2175_v8 }
 0x26c   :  { %vm947_vm10 = vcmp.gt.f32.partialorder %v2175_v8, 0.0 }
 0x26d   :  { %768 = vmatmul.f32.gmra.mxu1 %v1923_v61  ;;  %v1005_v20 = vor.u32 1.1754944e-38, %v1004_v11  ;;  %vm1003_vm8 = vcmp.eq.f32.partialorder %v1002_v12, 8.507059e+37 }
 0x272   :  { %v2178_v61 = vpop.f32.mrf.mxu2 }
 0x273   :  { %1348 = vrcp.f32 %v2178_v61  ;;  %v1019_v40 = vand.u32 2147483648, %v2178_v61  ;;  %vm1013_vm11 = vweird.f32 %v2178_v61  ;;  %v1017_v46 = vand.u32 2147483647, %v2178_v61 }
 0x274   :  { %vm948_vm15 = vcmp.gt.f32.partialorder %v2178_v61, 0.0 }
 0x275   :  { %771 = vmatmul.f32.gmra.mxu1 %v1945_v6  ;;  %v1020_v48 = vor.u32 1.1754944e-38, %v1019_v40  ;;  %vm1018_vm13 = vcmp.eq.f32.partialorder %v1017_v46, 8.507059e+37 }
 0x27a   :  { %v2182_v6 = vpop.f32.mrf.mxu2 }
 0x27b   :  { %1350 = vrcp.f32 %v2182_v6  ;;  %v1034_v25 = vand.u32 2147483648, %v2182_v6  ;;  %v1032_v44 = vand.u32 2147483647, %v2182_v6 }
 0x27d   :  { %774 = vmatmul.f32.gmra.mxu1 %v1967_v14  ;;  %v1345_v14 = vpop.eup %1344  ;;  %v1035_v42 = vor.u32 1.1754944e-38, %v1034_v25 }
 0x27e   :  { %vm984_vm0 = vweird.f32 %v1345_v14 }
 0x27f   :  { %vm985_vm2 = vmor %vm983_vm1, %vm984_vm0  ;;  %vm1028_vm0 = vweird.f32 %v2182_v6 }
 0x285   :  { %777 = vmatmul.f32.gmra.mxu1 %v1989_v19  ;;  %v2185_v19 = vpop.f32.mrf.mxu2 }
 0x286   :  { %1352 = vrcp.f32 %v2185_v19 }
 0x28d   :  { %780 = vmatmul.f32.gmra.mxu1 %v2006_v23  ;;  %v979_v23 = vmul.f32 %v1345_v14, %v898_v63 }
 0x295   :  { %783 = vmatmul.f32.gmra.mxu1 %v2023_v32  ;;  %v980_v32 = vsub.f32 1.0, %v979_v23  ;;  %v1047_v23 = vand.u32 2147483647, %v2185_v19 }
 0x29d   :  { %786 = vmatmul.f32.gmra.mxu1 %v2040_v49  ;;  %v1347_v49 = vpop.eup %1346 }
 0x29e   :  { %vm999_vm4 = vweird.f32 %v1347_v49 }
 0x29f   :  { %vm1000_vm7 = vmor %vm998_vm6, %vm999_vm4 }
 0x2a5   :  { %789 = vmatmul.f32.gmra.mxu1 %v2054_v55  ;;  %v981_v55 = vmul.f32 %v1345_v14, %v980_v32 }
 0x2ad   :  { %792 = vmatmul.f32.gmra.mxu1 %v2059_v59  ;;  %v994_v59 = vmul.f32 %v1347_v49, %v2175_v8  ;;  %v1049_v8 = vand.u32 2147483648, %v2185_v19 }
 0x2b5   :  { %795 = vmatmul.f32.gmra.mxu1 %v2064_v31  ;;  %v2191_v31 = vpop.f32.mrf.mxu2 }
 0x2b6   :  { %1354 = vrcp.f32 %v2191_v31 }
 0x2bd   :  { %798 = vmatmul.f32.gmra.mxu1 %v2069_v39  ;;  %v982_v39 = vadd.f32 %v1345_v14, %v981_v55  ;;  %v2196_v2 = vpop.f32.mrf.mxu2 }
 0x2be   :  { %1356 = vrcp.f32 %v2196_v2 }
 0x2c5   :  { %801 = vmatmul.f32.gmra.mxu1 %v2074_v35  ;;  %v995_v35 = vsub.f32 1.0, %v994_v59  ;;  %v2206_v30 = vpop.f32.mrf.mxu2  ;;  %v1050_v59 = vor.u32 1.1754944e-38, %v1049_v8 }
 0x2c6   :  { %1358 = vrcp.f32 %v2206_v30 }
 0x2c7   :  { %v996_v7 = vmul.f32 %v1347_v49, %v995_v35 }
 0x2c9   :  { %v997_v5 = vadd.f32 %v1347_v49, %v996_v7 }
 0x2cb   :  { %v1001_v15 = vsel %vm1000_vm7, %v1347_v49, %v997_v5  ;;  %vm1048_vm7 = vcmp.eq.f32.partialorder %v1047_v23, 8.507059e+37 }
 0x2cc   :  { %v1006_v22 = vsel %vm1003_vm8, %v1005_v20, %v1001_v15  ;;  %vm1058_vm8 = vweird.f32 %v2191_v31  ;;  %v1079_v15 = vand.u32 2147483648, %v2196_v2  ;;  %v1077_v20 = vand.u32 2147483647, %v2196_v2 }
 0x2cd   :  { %804 = vmatmul.f32.gmra.mxu1 %v2079_v38  ;;  %v1349_v38 = vpop.eup %1348  ;;  %v2221_v24 = vpop.f32.mrf.mxu2 }
 0x2ce   :  { %v1009_v36 = vmul.f32 %v1349_v38, %v2178_v61  ;;  %v1351_v10 = vpop.eup %1350  ;;  %vm1014_vm9 = vweird.f32 %v1349_v38  ;;  %1360 = vrcp.f32 %v2221_v24 }
 0x2cf   :  { %v1024_v34 = vmul.f32 %v1351_v10, %v2182_v6  ;;  %v1353_v33 = vpop.eup %1352  ;;  %vm1015_vm12 = vmor %vm1013_vm11, %vm1014_vm9  ;;  %vm1029_vm14 = vweird.f32 %v1351_v10 }
 0x2d0   :  { %v1039_v53 = vmul.f32 %v1353_v33, %v2185_v19  ;;  %v1355_v62 = vpop.eup %1354  ;;  %vm1030_vm1 = vmor %vm1028_vm0, %vm1029_vm14  ;;  %vm1044_vm4 = vweird.f32 %v1353_v33 }
 0x2d1   :  { %v1025_v37 = vsub.f32 1.0, %v1024_v34  ;;  %v1054_v26 = vmul.f32 %v1355_v62, %v2191_v31  ;;  %v1357_v49 = vpop.eup %1356  ;;  %vm1059_vm9 = vweird.f32 %v1355_v62 }
 0x2d2   :  { %v1040_v60 = vsub.f32 1.0, %v1039_v53  ;;  %vm1060_vm11 = vmor %vm1058_vm8, %vm1059_vm9  ;;  %vm1074_vm14 = vweird.f32 %v1357_v49  ;;  %v1092_v53 = vand.u32 2147483647, %v2206_v30  ;;  %vm953_vm9 = vcmp.gt.f32.partialorder %v2206_v30, 0.0 }
 0x2d3   :  { %v1026_v43 = vmul.f32 %v1351_v10, %v1025_v37  ;;  %v1055_v32 = vsub.f32 1.0, %v1054_v26  ;;  %v1080_v37 = vor.u32 1.1754944e-38, %v1079_v15  ;;  %v1107_v26 = vand.u32 2147483647, %v2221_v24 }
 0x2d4   :  { %v1041_v1 = vmul.f32 %v1353_v33, %v1040_v60 }
 0x2d5   :  { %807 = vmatmul.f32.gmra.mxu1 %v2084_v41  ;;  %v986_v41 = vsel %vm985_vm2, %v1345_v14, %v982_v39  ;;  %v1027_v56 = vadd.f32 %v1351_v10, %v1026_v43  ;;  %vm1033_vm2 = vcmp.eq.f32.partialorder %v1032_v44, 8.507059e+37  ;;  %v1056_v35 = vmul.f32 %v1355_v62, %v1055_v32  ;;  %v2237_v17 = vpop.f32.mrf.mxu2 }
 0x2d6   :  { %v991_v3 = vsel %vm988_vm3, %v990_v18, %v986_v41  ;;  %vm1043_vm3 = vweird.f32 %v2185_v19  ;;  %v1042_v14 = vadd.f32 %v1353_v33, %v1041_v1  ;;  %v1064_v41 = vand.u32 2147483648, %v2191_v31 }
 0x2d7   :  { %v1031_v57 = vsel %vm1030_vm1, %v1351_v10, %v1027_v56  ;;  %vm1045_vm6 = vmor %vm1043_vm3, %vm1044_vm4  ;;  %v1062_v18 = vand.u32 2147483647, %v2191_v31  ;;  %1362 = vrcp.f32 %v2237_v17  ;;  %vm1078_vm1 = vcmp.eq.f32.partialorder %v1077_v20, 8.507059e+37 }
 0x2d8   :  { %v1036_v63 = vsel %vm1033_vm2, %v1035_v42, %v1031_v57  ;;  %v1046_v39 = vsel %vm1045_vm6, %v1353_v33, %v1042_v14  ;;  %vm1088_vm2 = vweird.f32 %v2206_v30  ;;  %vm952_vm4 = vcmp.gt.f32.partialorder %v2196_v2, 0.0 }
 0x2d9   :  { %vm1093_vm6 = vcmp.eq.f32.partialorder %v1092_v53, 8.507059e+37 }
 0x2dd   :  { %810 = vmatmul.f32.gmra.mxu1 %v2089_v45  ;;  %v1010_v45 = vsub.f32 1.0, %v1009_v36  ;;  %v1057_v36 = vadd.f32 %v1355_v62, %v1056_v35  ;;  %v1122_v35 = vand.u32 2147483647, %v2237_v17 }
 0x2df   :  { %v1011_v16 = vmul.f32 %v1349_v38, %v1010_v45  ;;  %v1065_v45 = vor.u32 1.1754944e-38, %v1064_v41 }
 0x2e1   :  { %v1012_v27 = vadd.f32 %v1349_v38, %v1011_v16 }
 0x2e2   :  { %v766_v0 = vpop.f32.mrf.mxu1 }
 0x2e3   :  { %v992_v9 = vmul.f32 %v991_v3, %v766_v0  ;;  %v1016_v52 = vsel %vm1015_vm12, %v1349_v38, %v1012_v27  ;;  %v1069_v38 = vmul.f32 %v1357_v49, %v2196_v2  ;;  %v1359_v3 = vpop.eup %1358  ;;  %vm1063_vm12 = vcmp.eq.f32.partialorder %v1062_v18, 8.507059e+37 }
 0x2e4   :  { %v1021_v54 = vsel %vm1018_vm13, %v1020_v48, %v1016_v52  ;;  %v1084_v11 = vmul.f32 %v1359_v3, %v2206_v30  ;;  %vm1073_vm13 = vweird.f32 %v2196_v2  ;;  %vm1089_vm3 = vweird.f32 %v1359_v3 }
 0x2e5   :  { %v1218_v29 = vsel %vm946_vm5, %v992_v9, 0.0  ;;  %vm949_vm5 = vcmp.gt.f32.partialorder %v2182_v6, 0.0  ;;  %v1051_v6 = vsel %vm1048_vm7, %v1050_v59, %v1046_v39  ;;  %v1070_v0 = vsub.f32 1.0, %v1069_v38  ;;  %vm1075_vm0 = vmor %vm1073_vm13, %vm1074_vm14 }
 0x2e6   :  { %1234 = vst [vmem:[%s2359_s10] sm:$0xff] %v1218_v29  ;;  %v1061_v9 = vsel %vm1060_vm11, %v1355_v62, %v1057_v36  ;;  %v2249_v29 = vpop.f32.mrf.mxu2  ;;  %vm1103_vm7 = vweird.f32 %v2221_v24  ;;  %v1109_v2 = vand.u32 2147483648, %v2221_v24  ;;  %vm1108_vm11 = vcmp.eq.f32.partialorder %v1107_v26, 8.507059e+37 }
 0x2e7   :  { %v1071_v10 = vmul.f32 %v1357_v49, %v1070_v0  ;;  %1364 = vrcp.f32 %v2249_v29  ;;  %vm954_vm14 = vcmp.gt.f32.partialorder %v2221_v24, 0.0 }
 0x2e9   :  { %v1072_v34 = vadd.f32 %v1357_v49, %v1071_v10  ;;  %v1137_v10 = vand.u32 2147483647, %v2249_v29 }
 0x2ea   :  { %v769_v21 = vpop.f32.mrf.mxu1 }
 0x2eb   :  { %v1007_v28 = vmul.f32 %v1006_v22, %v769_v21  ;;  %v1085_v21 = vsub.f32 1.0, %v1084_v11  ;;  %v1361_v22 = vpop.eup %1360 }
 0x2ec   :  { %v1099_v40 = vmul.f32 %v1361_v22, %v2221_v24  ;;  %vm1104_vm8 = vweird.f32 %v1361_v22 }
 0x2ed   :  { %v1219_v47 = vsel %vm947_vm10, %v1007_v28, 0.0  ;;  %vm950_vm10 = vcmp.gt.f32.partialorder %v2185_v19, 0.0  ;;  %v1066_v19 = vsel %vm1063_vm12, %v1065_v45, %v1061_v9  ;;  %v1076_v28 = vsel %vm1075_vm0, %v1357_v49, %v1072_v34 }
 0x2ee   :  { %1235 = vst [vmem:[%s2359_s10 + $0x8] sm:$0xff] %v1219_v47  ;;  %v1086_v33 = vmul.f32 %v1359_v3, %v1085_v21  ;;  %v1081_v47 = vsel %vm1078_vm1, %v1080_v37, %v1076_v28  ;;  %v1100_v48 = vsub.f32 1.0, %v1099_v40  ;;  %vm1118_vm12 = vweird.f32 %v2237_v17 }
 0x2ef   :  { %vm1123_vm0 = vcmp.eq.f32.partialorder %v1122_v35, 8.507059e+37  ;;  %vm1133_vm1 = vweird.f32 %v2249_v29 }
 0x2f0   :  { %v1087_v43 = vadd.f32 %v1359_v3, %v1086_v33  ;;  %v1101_v62 = vmul.f32 %v1361_v22, %v1100_v48 }
 0x2f2   :  { %v772_v51 = vpop.f32.mrf.mxu1  ;;  %v1102_v1 = vadd.f32 %v1361_v22, %v1101_v62 }
 0x2f3   :  { %v1022_v58 = vmul.f32 %v1021_v54, %v772_v51  ;;  %v2262_v51 = vpop.f32.mrf.mxu2  ;;  %v1363_v54 = vpop.eup %1362 }
 0x2f4   :  { %v1114_v25 = vmul.f32 %v1363_v54, %v2237_v17  ;;  %1366 = vrcp.f32 %v2262_v51  ;;  %vm1119_vm13 = vweird.f32 %v1363_v54  ;;  %v1152_v33 = vand.u32 2147483647, %v2262_v51 }
 0x2f5   :  { %v1220_v4 = vsel %vm948_vm15, %v1022_v58, 0.0  ;;  %vm951_vm15 = vcmp.gt.f32.partialorder %v2191_v31, 0.0  ;;  %v1094_v31 = vand.u32 2147483648, %v2206_v30 }
 0x2f6   :  { %1236 = vst [vmem:[%s2359_s10 + $0x10] sm:$0xff] %v1220_v4  ;;  %v1115_v42 = vsub.f32 1.0, %v1114_v25 }
 0x2f7   :  { %v1095_v58 = vor.u32 1.1754944e-38, %v1094_v31 }
 0x2f8   :  { %v1116_v23 = vmul.f32 %v1363_v54, %v1115_v42 }
 0x2fa   :  { %v775_v50 = vpop.f32.mrf.mxu1  ;;  %v1117_v39 = vadd.f32 %v1363_v54, %v1116_v23 }
 0x2fb   :  { %v1037_v61 = vmul.f32 %v1036_v63, %v775_v50  ;;  %v1365_v50 = vpop.eup %1364  ;;  %v2274_v8 = vpop.f32.mrf.mxu2 }
 0x2fc   :  { %v1129_v32 = vmul.f32 %v1365_v50, %v2249_v29  ;;  %1368 = vrcp.f32 %v2274_v8 }
 0x2fd   :  { %v1221_v55 = vsel %vm949_vm5, %v1037_v61, 0.0  ;;  %vm1090_vm5 = vmor %vm1088_vm2, %vm1089_vm3  ;;  %v1110_v61 = vor.u32 1.1754944e-38, %v1109_v2  ;;  %vm1134_vm2 = vweird.f32 %v1365_v50  ;;  %vm955_vm3 = vcmp.gt.f32.partialorder %v2237_v17, 0.0 }
 0x2fe   :  { %1237 = vst [vmem:[%s2359_s10 + $0x18] sm:$0xff] %v1221_v55  ;;  %v1091_v60 = vsel %vm1090_vm5, %v1359_v3, %v1087_v43  ;;  %v1124_v55 = vand.u32 2147483648, %v2237_v17  ;;  %v1130_v38 = vsub.f32 1.0, %v1129_v32  ;;  %vm1138_vm5 = vcmp.eq.f32.partialorder %v1137_v10, 8.507059e+37 }
 0x2ff   :  { %v1096_v4 = vsel %vm1093_vm6, %v1095_v58, %v1091_v60  ;;  %vm1148_vm6 = vweird.f32 %v2262_v51  ;;  %v1167_v60 = vand.u32 2147483647, %v2274_v8 }
 0x300   :  { %v1125_v41 = vor.u32 1.1754944e-38, %v1124_v55  ;;  %v1131_v36 = vmul.f32 %v1365_v50, %v1130_v38 }
 0x302   :  { %v778_v13 = vpop.f32.mrf.mxu1  ;;  %v1132_v9 = vadd.f32 %v1365_v50, %v1131_v36 }
 0x303   :  { %v1052_v7 = vmul.f32 %v1051_v6, %v778_v13  ;;  %v1367_v13 = vpop.eup %1366  ;;  %v2290_v0 = vpop.f32.mrf.mxu2 }
 0x304   :  { %v1144_v18 = vmul.f32 %v1367_v13, %v2262_v51  ;;  %1370 = vrcp.f32 %v2290_v0 }
 0x305   :  { %v1222_v5 = vsel %vm950_vm10, %v1052_v7, 0.0  ;;  %vm1105_vm10 = vmor %vm1103_vm7, %vm1104_vm8  ;;  %vm1149_vm7 = vweird.f32 %v1367_v13  ;;  %vm956_vm8 = vcmp.gt.f32.partialorder %v2249_v29, 0.0 }
 0x306   :  { %1238 = vst [vmem:[%s2359_s10 + $0x20] sm:$0xff] %v1222_v5  ;;  %v1106_v14 = vsel %vm1105_vm10, %v1361_v22, %v1102_v1  ;;  %v1139_v5 = vand.u32 2147483648, %v2249_v29  ;;  %v1145_v11 = vsub.f32 1.0, %v1144_v18  ;;  %vm1153_vm10 = vcmp.eq.f32.partialorder %v1152_v33, 8.507059e+37 }
 0x307   :  { %v1111_v30 = vsel %vm1108_vm11, %v1110_v61, %v1106_v14  ;;  %vm1163_vm11 = vweird.f32 %v2274_v8  ;;  %v1169_v29 = vand.u32 2147483648, %v2274_v8  ;;  %v1182_v14 = vand.u32 2147483647, %v2290_v0 }
 0x308   :  { %v1140_v15 = vor.u32 1.1754944e-38, %v1139_v5  ;;  %v1146_v34 = vmul.f32 %v1367_v13, %v1145_v11 }
 0x309   :  { %v1170_v2 = vor.u32 1.1754944e-38, %v1169_v29 }
 0x30a   :  { %v781_v12 = vpop.f32.mrf.mxu1  ;;  %v1147_v28 = vadd.f32 %v1367_v13, %v1146_v34 }
 0x30b   :  { %v1067_v16 = vmul.f32 %v1066_v19, %v781_v12  ;;  %v1369_v12 = vpop.eup %1368  ;;  %v2302_v22 = vpop.f32.mrf.mxu2 }
 0x30c   :  { %v1159_v20 = vmul.f32 %v1369_v12, %v2274_v8  ;;  %1372 = vrcp.f32 %v2302_v22 }
 0x30d   :  { %v1223_v27 = vsel %vm951_vm15, %v1067_v16, 0.0  ;;  %vm1120_vm15 = vmor %vm1118_vm12, %vm1119_vm13  ;;  %vm1164_vm12 = vweird.f32 %v1369_v12  ;;  %vm957_vm13 = vcmp.gt.f32.partialorder %v2262_v51, 0.0 }
 0x30e   :  { %1239 = vst [vmem:[%s2359_s10 + $0x28] sm:$0xff] %v1223_v27  ;;  %v1121_v7 = vsel %vm1120_vm15, %v1363_v54, %v1117_v39  ;;  %v1154_v27 = vand.u32 2147483648, %v2262_v51  ;;  %v1160_v40 = vsub.f32 1.0, %v1159_v20  ;;  %vm1168_vm15 = vcmp.eq.f32.partialorder %v1167_v60, 8.507059e+37 }
 0x30f   :  { %v1126_v24 = vsel %vm1123_vm0, %v1125_v41, %v1121_v7  ;;  %vm1178_vm0 = vweird.f32 %v2290_v0  ;;  %v1184_v51 = vand.u32 2147483648, %v2290_v0  ;;  %v1197_v41 = vand.u32 2147483647, %v2302_v22 }
 0x310   :  { %v1155_v31 = vor.u32 1.1754944e-38, %v1154_v27  ;;  %v1161_v43 = vmul.f32 %v1369_v12, %v1160_v40 }
 0x312   :  { %v784_v46 = vpop.f32.mrf.mxu1  ;;  %v1162_v58 = vadd.f32 %v1369_v12, %v1161_v43 }
 0x313   :  { %v1082_v52 = vmul.f32 %v1081_v47, %v784_v46  ;;  %v1371_v46 = vpop.eup %1370  ;;  %v2315_v25 = vpop.f32.mrf.mxu2 }
 0x314   :  { %v1174_v53 = vmul.f32 %v1371_v46, %v2290_v0  ;;  %1374 = vrcp.f32 %v2315_v25 }
 0x315   :  { %v1224_v56 = vsel %vm952_vm4, %v1082_v52, 0.0  ;;  %vm1135_vm4 = vmor %vm1133_vm1, %vm1134_vm2  ;;  %vm1179_vm1 = vweird.f32 %v1371_v46  ;;  %vm958_vm2 = vcmp.gt.f32.partialorder %v2274_v8, 0.0 }
 0x316   :  { %1240 = vst [vmem:[%s2359_s10 + $0x30] sm:$0xff] %v1224_v56  ;;  %v1136_v16 = vsel %vm1135_vm4, %v1365_v50, %v1132_v9  ;;  %v1175_v62 = vsub.f32 1.0, %v1174_v53  ;;  %vm1183_vm4 = vcmp.eq.f32.partialorder %v1182_v14, 8.507059e+37  ;;  %v1214_v9 = vand.u32 2147483648, %v2315_v25 }
 0x317   :  { %v1141_v17 = vsel %vm1138_vm5, %v1140_v15, %v1136_v16  ;;  %vm1193_vm5 = vweird.f32 %v2302_v22 }
 0x318   :  { %v1176_v1 = vmul.f32 %v1371_v46, %v1175_v62 }
 0x31a   :  { %v787_v44 = vpop.f32.mrf.mxu1  ;;  %v1177_v61 = vadd.f32 %v1371_v46, %v1176_v1 }
 0x31b   :  { %v1097_v57 = vmul.f32 %v1096_v4, %v787_v44  ;;  %v1373_v44 = vpop.eup %1372 }
 0x31c   :  { %v1189_v26 = vmul.f32 %v1373_v44, %v2302_v22  ;;  %v1375_v32 = vpop.eup %1374 }
 0x31d   :  { %v1225_v63 = vsel %vm953_vm9, %v1097_v57, 0.0  ;;  %vm1150_vm9 = vmor %vm1148_vm6, %vm1149_vm7  ;;  %v1204_v39 = vmul.f32 %v1375_v32, %v2315_v25  ;;  %vm1194_vm6 = vweird.f32 %v1373_v44  ;;  %vm959_vm7 = vcmp.gt.f32.partialorder %v2290_v0, 0.0 }
 0x31e   :  { %1241 = vst [vmem:[%s2359_s10 + $0x38] sm:$0xff] %v1225_v63  ;;  %v1151_v52 = vsel %vm1150_vm9, %v1367_v13, %v1147_v28  ;;  %v1190_v23 = vsub.f32 1.0, %v1189_v26  ;;  %v1199_v13 = vand.u32 2147483648, %v2302_v22  ;;  %vm1198_vm9 = vcmp.eq.f32.partialorder %v1197_v41, 8.507059e+37 }
 0x31f   :  { %v1156_v54 = vsel %vm1153_vm10, %v1155_v31, %v1151_v52  ;;  %v1205_v7 = vsub.f32 1.0, %v1204_v39  ;;  %vm1208_vm10 = vweird.f32 %v2315_v25  ;;  %v1212_v0 = vand.u32 2147483647, %v2315_v25 }
 0x320   :  { %v1200_v18 = vor.u32 1.1754944e-38, %v1199_v13 }
 0x322   :  { %v790_v49 = vpop.f32.mrf.mxu1 }
 0x323   :  { %v1112_v59 = vmul.f32 %v1111_v30, %v790_v49  ;;  %v1185_v30 = vor.u32 1.1754944e-38, %v1184_v51 }
 0x325   :  { %v1226_v6 = vsel %vm954_vm14, %v1112_v59, 0.0  ;;  %vm1165_vm14 = vmor %vm1163_vm11, %vm1164_vm12  ;;  %v1191_v59 = vmul.f32 %v1373_v44, %v1190_v23  ;;  %vm1209_vm11 = vweird.f32 %v1375_v32  ;;  %vm960_vm12 = vcmp.gt.f32.partialorder %v2302_v22, 0.0 }
 0x326   :  { %1242 = vst [vmem:[%s2359_s10 + $0x40] sm:$0xff] %v1226_v6  ;;  %v1166_v57 = vsel %vm1165_vm14, %v1369_v12, %v1162_v58  ;;  %vm1213_vm14 = vcmp.eq.f32.partialorder %v1212_v0, 8.507059e+37 }
 0x327   :  { %v1171_v50 = vsel %vm1168_vm15, %v1170_v2, %v1166_v57  ;;  %v1192_v6 = vadd.f32 %v1373_v44, %v1191_v59  ;;  %vm961_vm15 = vcmp.gt.f32.partialorder %v2315_v25, 0.0 }
 0x32a   :  { %v793_v3 = vpop.f32.mrf.mxu1 }
 0x32b   :  { %v1127_v45 = vmul.f32 %v1126_v24, %v793_v3  ;;  %v1206_v24 = vmul.f32 %v1375_v32, %v1205_v7 }
 0x32d   :  { %v1227_v19 = vsel %vm955_vm3, %v1127_v45, 0.0  ;;  %vm1180_vm3 = vmor %vm1178_vm0, %vm1179_vm1  ;;  %v1207_v11 = vadd.f32 %v1375_v32, %v1206_v24 }
 0x32e   :  { %1243 = vst [vmem:[%s2359_s10 + $0x48] sm:$0xff] %v1227_v19  ;;  %v1181_v55 = vsel %vm1180_vm3, %v1371_v46, %v1177_v61  ;;  %v1215_v19 = vor.u32 1.1754944e-38, %v1214_v9 }
 0x32f   :  { %v1186_v38 = vsel %vm1183_vm4, %v1185_v30, %v1181_v55 }
 0x332   :  { %v796_v21 = vpop.f32.mrf.mxu1 }
 0x333   :  { %v1142_v37 = vmul.f32 %v1141_v17, %v796_v21 }
 0x335   :  { %v1228_v47 = vsel %vm956_vm8, %v1142_v37, 0.0  ;;  %vm1195_vm8 = vmor %vm1193_vm5, %vm1194_vm6 }
 0x336   :  { %1244 = vst [vmem:[%s2359_s10 + $0x50] sm:$0xff] %v1228_v47  ;;  %v1196_v3 = vsel %vm1195_vm8, %v1373_v44, %v1192_v6 }
 0x337   :  { %v1201_v45 = vsel %vm1198_vm9, %v1200_v18, %v1196_v3 }
 0x33a   :  { %v799_v48 = vpop.f32.mrf.mxu1 }
 0x33b   :  { %v1157_v56 = vmul.f32 %v1156_v54, %v799_v48 }
 0x33d   :  { %v1229_v4 = vsel %vm957_vm13, %v1157_v56, 0.0  ;;  %vm1210_vm13 = vmor %vm1208_vm10, %vm1209_vm11 }
 0x33e   :  { %1245 = vst [vmem:[%s2359_s10 + $0x58] sm:$0xff] %v1229_v4  ;;  %v1211_v15 = vsel %vm1210_vm13, %v1375_v32, %v1207_v11 }
 0x33f   :  { %v1216_v34 = vsel %vm1213_vm14, %v1215_v19, %v1211_v15 }
 0x342   :  { %v802_v42 = vpop.f32.mrf.mxu1 }
 0x343   :  { %v1172_v63 = vmul.f32 %v1171_v50, %v802_v42 }
 0x345   :  { %v1230_v49 = vsel %vm958_vm2, %v1172_v63, 0.0 }
 0x346   :  { %1246 = vst [vmem:[%s2359_s10 + $0x60] sm:$0xff] %v1230_v49 }
 0x34a   :  { %v805_v35 = vpop.f32.mrf.mxu1 }
 0x34b   :  { %v1187_v8 = vmul.f32 %v1186_v38, %v805_v35 }
 0x34d   :  { %v1231_v36 = vsel %vm959_vm7, %v1187_v8, 0.0 }
 0x34e   :  { %1247 = vst [vmem:[%s2359_s10 + $0x68] sm:$0xff] %v1231_v36 }
 0x352   :  { %v808_v5 = vpop.f32.mrf.mxu1 }
 0x353   :  { %v1202_v10 = vmul.f32 %v1201_v45, %v808_v5 }
 0x355   :  { %v1232_v12 = vsel %vm960_vm12, %v1202_v10, 0.0 }
 0x356   :  { %1248 = vst [vmem:[%s2359_s10 + $0x70] sm:$0xff] %v1232_v12 }
 0x35a   :  { %v811_v16 = vpop.f32.mrf.mxu1 }
 0x35b   :  { %v1217_v20 = vmul.f32 %v1216_v34, %v811_v16 }
 0x35d   :  { %v1233_v21 = vsel %vm961_vm15, %v1217_v20, 0.0 }
 0x35e   :  { %1249 = vst [vmem:[%s2359_s10 + $0x78] sm:$0xff] %v1233_v21 }

</bundles_post_ra>
